<compile_context>
chip_gen: v6e
topology: v6e:2x2x1
jax: 0.10.0
libtpu: 0.0.40
codegen_flags: <defaults>
</compile_context>

<pallas_src>
import functools

import jax
import jax.numpy as jnp
from jax import lax
from jax.experimental import pallas as pl
from jax.experimental.pallas import tpu as pltpu

# matmul-operand dtype at the MXU boundary; accumulation is always f32 via
# preferred_element_type.  Elementwise math (LN/softmax/GELU/BN) stays f32.
MXU_DTYPE = jnp.bfloat16

CFG = dict(img=16, in_chans=3, patch=8, embed=128, depth=2, heads=4,
           mlp_ratio=4, num_classes=128, batch=2)


# --------------------------- in-kernel helpers ------------------------------

def _layernorm(x, g, b, eps):
    mu = jnp.mean(x, axis=-1, keepdims=True)
    var = jnp.mean((x - mu) ** 2, axis=-1, keepdims=True)
    return (x - mu) * lax.rsqrt(var + eps) * g + b


_ERF_A = (0.254829592, -0.284496736, 1.421413741, -1.453152027, 1.061405429)
_ERF_P = 0.3275911


def _erf(x):
    # Abramowitz & Stegun 7.1.26 rational approximation (|err| < 1.5e-7),
    # divide done with an EUP approx reciprocal + one Newton refinement step.
    a1, a2, a3, a4, a5 = _ERF_A
    ax = jnp.abs(x)
    y = 1.0 + _ERF_P * ax
    t = pl.reciprocal(y, approx=True)
    t = t * (2.0 - y * t)                     # Newton step -> ~f32 accuracy
    poly = ((((a5 * t + a4) * t + a3) * t + a2) * t + a1) * t
    e = 1.0 - poly * jnp.exp(-ax * ax)
    return jnp.where(x >= 0.0, e, -e)


def _gelu_exact(x):
    # torch.nn.GELU default (exact erf form); erf via the approximation above.
    return 0.5 * x * (1.0 + _erf(x * 0.7071067811865476))


def _rep_spec(a):
    """Replicated input: constant block index across the depth grid axis."""
    nd = a.ndim
    return pl.BlockSpec(a.shape, lambda l, _z=(0,) * nd: _z)


def _blk_spec(a):
    """Stacked per-block weight (depth, r, c): block index follows grid step."""
    return pl.BlockSpec((1,) + a.shape[1:], lambda l: (l, 0, 0))


# ------------------------------ fused kernel --------------------------------

def _fused_vit_kernel(
        # embed inputs
        patches_ref, pw_ref, pb_ref, clspos_ref, postok_ref,
        # stacked per-block weights, indexed by grid step l
        ln1_g_ref, ln1_b_ref, qkv_w_ref, qkv_b_ref, proj_w_ref, proj_b_ref,
        ln2_g_ref, ln2_b_ref, fc1_w_ref, fc1_b_ref, fc2_w_ref, fc2_b_ref,
        # head params
        norm_g_ref, norm_b_ref, bn_g_ref, bn_b_ref, cls_w_ref,
        # outputs
        score_ref, feat_ref,
        # VMEM carry for the token activations
        x_scr,
        *, batch, n_patches, seq, seq_pad, heads, ln_eps, bn_eps):
    l = pl.program_id(0)
    d = x_scr.shape[-1]
    dh = d // heads
    scale = float(dh) ** -0.5
    mxu = qkv_w_ref.dtype

    # ---- stage 0: patch-embed matmul (whole batch) + cls token + pos embed --
    @pl.when(l == 0)
    def _():
        tok = jnp.dot(patches_ref[...].astype(pw_ref.dtype), pw_ref[...],
                      preferred_element_type=jnp.float32) + pb_ref[...]  # (B*N, D)
        pieces = []
        pad = seq_pad - seq
        for b in range(batch):
            pieces.append(clspos_ref[...])                               # (1, D)
            pieces.append(tok[b * n_patches:(b + 1) * n_patches, :]
                          + postok_ref[...])                             # (N, D)
            if pad:
                pieces.append(jnp.zeros((pad, d), jnp.float32))          # pad rows
        x_scr[...] = jnp.concatenate(pieces, axis=0)                     # (B*Sp, D)

    # ---- transformer block l (every grid step) ------------------------------
    x = x_scr[...]                                                       # (B*Sp, D)

    # attention branch (batch folded into rows for LN / QKV / proj)
    h = _layernorm(x, ln1_g_ref[0], ln1_b_ref[0], ln_eps)
    qkv = jnp.dot(h.astype(mxu), qkv_w_ref[0],
                  preferred_element_type=jnp.float32) + qkv_b_ref[0]     # (B*Sp, 3D)

    # mask padded key columns before softmax
    col = lax.broadcasted_iota(jnp.int32, (1, seq_pad), 1)
    key_mask = jnp.where(col < seq, 0.0, -1e30).astype(jnp.float32)      # (1, Sp)

    # TODO(synk): at real dh=64 align head chunks to 128-lane vreg boundaries
    #             (or keep a leading head axis) to avoid sub-128-lane slices.
    ctx_rows = []
    for b in range(batch):                        # static unroll over batch
        r0 = b * seq_pad
        per_head = []
        for hd in range(heads):                   # static unroll over heads
            lo = hd * dh
            qh = (qkv[r0:r0 + seq_pad, lo:lo + dh] * scale).astype(mxu)
            kh = qkv[r0:r0 + seq_pad, d + lo:d + lo + dh].astype(mxu)
            vh = qkv[r0:r0 + seq_pad, 2 * d + lo:2 * d + lo + dh].astype(mxu)
            sc = lax.dot_general(qh, kh, (((1,), (1,)), ((), ())),
                                 preferred_element_type=jnp.float32)     # (Sp, Sp)
            sc = sc + key_mask
            sc = sc - jnp.max(sc, axis=-1, keepdims=True)
            p = jnp.exp(sc)
            p = p * pl.reciprocal(jnp.sum(p, axis=-1, keepdims=True), approx=True)
            per_head.append(jnp.dot(p.astype(mxu), vh,
                                    preferred_element_type=jnp.float32))  # (Sp, dh)
        ctx_rows.append(jnp.concatenate(per_head, axis=-1))               # (Sp, D)
    ctx = jnp.concatenate(ctx_rows, axis=0)                               # (B*Sp, D)

    # single full-K output projection (head merge folded into the concat above)
    attn = jnp.dot(ctx.astype(mxu), proj_w_ref[0],
                   preferred_element_type=jnp.float32) + proj_b_ref[0]
    x = x + attn                                                          # residual 1

    # MLP branch
    h2 = _layernorm(x, ln2_g_ref[0], ln2_b_ref[0], ln_eps)
    hid = jnp.dot(h2.astype(mxu), fc1_w_ref[0],
                  preferred_element_type=jnp.float32) + fc1_b_ref[0]
    hid = _gelu_exact(hid)
    mlp = jnp.dot(hid.astype(mxu), fc2_w_ref[0],
                  preferred_element_type=jnp.float32) + fc2_b_ref[0]
    x = x + mlp                                                           # residual 2
    x_scr[...] = x

    # ---- last stage: final LN (cls token) + BatchNorm1d + Linear classifier -
    @pl.when(l == pl.num_programs(0) - 1)
    def _():
        cls_rows = jnp.concatenate(
            [x[b * seq_pad:b * seq_pad + 1, :] for b in range(batch)], axis=0)
        gfeat = _layernorm(cls_rows, norm_g_ref[...], norm_b_ref[...], ln_eps)
        feat_ref[...] = gfeat                                             # global_feat
        # BatchNorm1d training-mode normalization (biased batch statistics).
        # TODO(synk): running_mean/var are not updated (forward-only).
        mu = jnp.mean(gfeat, axis=0, keepdims=True)
        var = jnp.mean((gfeat - mu) ** 2, axis=0, keepdims=True)
        feat = (gfeat - mu) * lax.rsqrt(var + bn_eps) * bn_g_ref[...] + bn_b_ref[...]
        # Linear classifier (bias=False), bf16 operands, f32 accumulate.
        score_ref[...] = jnp.dot(feat.astype(cls_w_ref.dtype), cls_w_ref[...],
                                 preferred_element_type=jnp.float32)


# ------------------------------- parameters ----------------------------------

def init_params(key, cfg):
    d = cfg['embed']
    ps = cfg['patch']
    c = cfg['in_chans']
    hidden = d * cfg['mlp_ratio']
    n = (cfg['img'] // ps) ** 2
    depth = cfg['depth']
    kit = iter(jax.random.split(key, 16))

    def nrm(shape, std=0.02, dtype=jnp.float32):
        return (jax.random.normal(next(kit), shape, jnp.float32) * std).astype(dtype)

    return {
        # conv2d(C, D, kernel=ps, stride=ps) weight reshaped to (C*ps*ps, D)
        'patch_w': nrm((c * ps * ps, d), dtype=MXU_DTYPE),
        'patch_b': jnp.zeros((1, d), jnp.float32),
        'cls_token': nrm((1, d)),
        'pos_cls': nrm((1, d)),           # pos_embed row 0 (cls token)
        'pos_tok': nrm((n, d)),           # pos_embed rows 1..N
        'norm_g': jnp.ones((1, d), jnp.float32),
        'norm_b': jnp.zeros((1, d), jnp.float32),
        'bn_gamma': jnp.ones((1, d), jnp.float32),   # weights_init_kaiming: BN w=1
        'bn_beta': jnp.zeros((1, d), jnp.float32),   # BN bias=0 (and frozen)
        'cls_w_t': nrm((d, cfg['num_classes']), std=0.001, dtype=MXU_DTYPE),
        'blocks': {                                   # stacked along depth
            'ln1_g': jnp.ones((depth, 1, d), jnp.float32),
            'ln1_b': jnp.zeros((depth, 1, d), jnp.float32),
            'qkv_w': nrm((depth, d, 3 * d), dtype=MXU_DTYPE),
            'qkv_b': jnp.zeros((depth, 1, 3 * d), jnp.float32),
            'proj_w': nrm((depth, d, d), dtype=MXU_DTYPE),
            'proj_b': jnp.zeros((depth, 1, d), jnp.float32),
            'ln2_g': jnp.ones((depth, 1, d), jnp.float32),
            'ln2_b': jnp.zeros((depth, 1, d), jnp.float32),
            'fc1_w': nrm((depth, d, hidden), dtype=MXU_DTYPE),
            'fc1_b': jnp.zeros((depth, 1, hidden), jnp.float32),
            'fc2_w': nrm((depth, hidden, d), dtype=MXU_DTYPE),
            'fc2_b': jnp.zeros((depth, 1, d), jnp.float32),
        },
    }


# ------------------------------ forward pass ---------------------------------

def build_transformer_forward(x_nchw, params, cfg):
    """Training-mode forward of build_transformer -> (cls_score, global_feat)."""
    b, c, hi, wi = x_nchw.shape
    ps = cfg['patch']
    nh, nw = hi // ps, wi // ps
    n = nh * nw
    d = cfg['embed']
    s = n + 1
    s_pad = ((s + 7) // 8) * 8
    nc = cfg['num_classes']
    depth = cfg['depth']

    # patch extraction: pure layout glue; stride-ps conv expressed as a matmul
    patches = x_nchw.reshape(b, c, nh, ps, nw, ps).transpose(0, 2, 4, 1, 3, 5)
    patches = patches.reshape(b * n, c * ps * ps)

    # fold cls token + its positional row once (parameter preprocessing)
    cls_pos = params['cls_token'] + params['pos_cls']
    blk = params['blocks']
    # TODO(synk): SIE camera/view embeddings skipped (camera_num=view_num=0);
    #             dropout / drop_path rates are 0 -> identity.

    kernel = functools.partial(
        _fused_vit_kernel, batch=b, n_patches=n, seq=s, seq_pad=s_pad,
        heads=cfg['heads'], ln_eps=1e-6, bn_eps=1e-5)

    rep_inputs = (patches, params['patch_w'], params['patch_b'], cls_pos,
                  params['pos_tok'])
    blk_names = ('ln1_g', 'ln1_b', 'qkv_w', 'qkv_b', 'proj_w', 'proj_b',
                 'ln2_g', 'ln2_b', 'fc1_w', 'fc1_b', 'fc2_w', 'fc2_b')
    head_inputs = (params['norm_g'], params['norm_b'], params['bn_gamma'],
                   params['bn_beta'], params['cls_w_t'])

    in_specs = ([_rep_spec(a) for a in rep_inputs]
                + [_blk_spec(blk[k]) for k in blk_names]
                + [_rep_spec(a) for a in head_inputs])

    cls_score, global_feat = pl.pallas_call(
        kernel,
        out_shape=(jax.ShapeDtypeStruct((b, nc), jnp.float32),
                   jax.ShapeDtypeStruct((b, d), jnp.float32)),
        grid=(depth,),
        in_specs=in_specs,
        out_specs=(pl.BlockSpec((b, nc), lambda l: (0, 0)),
                   pl.BlockSpec((b, d), lambda l: (0, 0))),
        scratch_shapes=[pltpu.VMEM((b * s_pad, d), jnp.float32)],
        compiler_params=pltpu.CompilerParams(
            dimension_semantics=("arbitrary",),
            vmem_limit_bytes=32 * 1024 * 1024),
    )(*rep_inputs, *[blk[k] for k in blk_names], *head_inputs)
    return cls_score, global_feat


# ------------------------ pure-JAX f32 reference ------------------------------

def _reference_forward(x_nchw, params, cfg):
    b, c, hi, wi = x_nchw.shape
    ps, d, heads = cfg['patch'], cfg['embed'], cfg['heads']
    nh, nw = hi // ps, wi // ps
    n = nh * nw
    f32 = lambda a: a.astype(jnp.float32)

    patches = x_nchw.reshape(b, c, nh, ps, nw, ps).transpose(0, 2, 4, 1, 3, 5)
    patches = patches.reshape(b, n, c * ps * ps)
    tok = patches @ f32(params['patch_w']) + params['patch_b']
    cls = jnp.broadcast_to(params['cls_token'] + params['pos_cls'], (b, 1, d))
    x = jnp.concatenate([cls, tok + params['pos_tok']], axis=1)

    def ln(v, g, bt, eps=1e-6):
        mu = v.mean(-1, keepdims=True)
        var = ((v - mu) ** 2).mean(-1, keepdims=True)
        return (v - mu) / jnp.sqrt(var + eps) * g + bt

    blk = params['blocks']
    dh = d // heads
    for i in range(cfg['depth']):
        h = ln(x, blk['ln1_g'][i], blk['ln1_b'][i])
        qkv = h @ f32(blk['qkv_w'][i]) + blk['qkv_b'][i]
        q, k, v = jnp.split(qkv, 3, axis=-1)
        sp = lambda t: t.reshape(b, -1, heads, dh).transpose(0, 2, 1, 3)
        q, k, v = sp(q), sp(k), sp(v)
        att = jnp.einsum('bhqd,bhkd->bhqk', q * dh ** -0.5, k)
        att = jax.nn.softmax(att, axis=-1)
        ctx = jnp.einsum('bhqk,bhkd->bhqd', att, v)
        ctx = ctx.transpose(0, 2, 1, 3).reshape(b, -1, d)
        x = x + ctx @ f32(blk['proj_w'][i]) + blk['proj_b'][i]
        h2 = ln(x, blk['ln2_g'][i], blk['ln2_b'][i])
        hid = h2 @ f32(blk['fc1_w'][i]) + blk['fc1_b'][i]
        hid = 0.5 * hid * (1.0 + lax.erf(hid / jnp.sqrt(2.0)))
        x = x + hid @ f32(blk['fc2_w'][i]) + blk['fc2_b'][i]

    gfeat = ln(x[:, 0, :], params['norm_g'], params['norm_b'])
    mu = gfeat.mean(0, keepdims=True)
    var = ((gfeat - mu) ** 2).mean(0, keepdims=True)
    feat = (gfeat - mu) / jnp.sqrt(var + 1e-5) * params['bn_gamma'] + params['bn_beta']
    score = feat @ f32(params['cls_w_t'])
    return score, gfeat


# ----------------------------------- main ------------------------------------

if __name__ == "__main__":
    cfg = CFG
    key = jax.random.PRNGKey(0)
    pkey, xkey = jax.random.split(key)
    params = init_params(pkey, cfg)
    x = jax.random.normal(
        xkey, (cfg['batch'], cfg['in_chans'], cfg['img'], cfg['img']),
        dtype=jnp.float32)

    fwd = jax.jit(functools.partial(build_transformer_forward, cfg=cfg))
    cls_score, global_feat = fwd(x, params)
    jax.block_until_ready((cls_score, global_feat))

    assert cls_score.shape == (cfg['batch'], cfg['num_classes'])
    assert global_feat.shape == (cfg['batch'], cfg['embed'])
    assert bool(jnp.all(jnp.isfinite(cls_score)))
    assert bool(jnp.all(jnp.isfinite(global_feat)))

    # sanity check the backbone feature against a pure-JAX f32 reference
    # (bf16 operands + approx reciprocals in the kernel -> loose tolerance)
    ref_score, ref_feat = jax.jit(functools.partial(_reference_forward, cfg=cfg))(x, params)
    rel = jnp.linalg.norm(global_feat - ref_feat) / (jnp.linalg.norm(ref_feat) + 1e-12)
    assert float(rel) < 0.05, f"global_feat mismatch: rel L2 = {float(rel):.4f}"

    print("KERNEL_OK")
</pallas_src>

<mosaic_0001>
module attributes {stable_mosaic.version = 11 : i64} {
  func.func @_fused_vit_kernel(%arg0: i32, %arg1: memref<8x192xf32, #tpu.memory_space<vmem>>, %arg2: memref<192x128xbf16, #tpu.memory_space<vmem>>, %arg3: memref<1x128xf32, #tpu.memory_space<vmem>>, %arg4: memref<1x128xf32, #tpu.memory_space<vmem>>, %arg5: memref<4x128xf32, #tpu.memory_space<vmem>>, %arg6: memref<1x1x128xf32, #tpu.memory_space<vmem>>, %arg7: memref<1x1x128xf32, #tpu.memory_space<vmem>>, %arg8: memref<1x128x384xbf16, #tpu.memory_space<vmem>>, %arg9: memref<1x1x384xf32, #tpu.memory_space<vmem>>, %arg10: memref<1x128x128xbf16, #tpu.memory_space<vmem>>, %arg11: memref<1x1x128xf32, #tpu.memory_space<vmem>>, %arg12: memref<1x1x128xf32, #tpu.memory_space<vmem>>, %arg13: memref<1x1x128xf32, #tpu.memory_space<vmem>>, %arg14: memref<1x128x512xbf16, #tpu.memory_space<vmem>>, %arg15: memref<1x1x512xf32, #tpu.memory_space<vmem>>, %arg16: memref<1x512x128xbf16, #tpu.memory_space<vmem>>, %arg17: memref<1x1x128xf32, #tpu.memory_space<vmem>>, %arg18: memref<1x128xf32, #tpu.memory_space<vmem>>, %arg19: memref<1x128xf32, #tpu.memory_space<vmem>>, %arg20: memref<1x128xf32, #tpu.memory_space<vmem>>, %arg21: memref<1x128xf32, #tpu.memory_space<vmem>>, %arg22: memref<128x128xbf16, #tpu.memory_space<vmem>>, %arg23: memref<2x128xf32, #tpu.memory_space<vmem>>, %arg24: memref<2x128xf32, #tpu.memory_space<vmem>>, %arg25: memref<16x128xf32, #tpu.memory_space<vmem>>) attributes {dimension_semantics = [#tpu.dimension_semantics<arbitrary>], iteration_bounds = array<i64: 2>, scalar_prefetch = 0 : i64, scratch_operands = 1 : i64, tpu.core_type = #tpu.core_type<tc>, window_params = [{pipeline_mode = #tpu.pipeline_mode<synchronous>, transform_indices = @transform_0, window_bounds = array<i64: 8, 192>}, {pipeline_mode = #tpu.pipeline_mode<synchronous>, transform_indices = @transform_1, window_bounds = array<i64: 192, 128>}, {pipeline_mode = #tpu.pipeline_mode<synchronous>, transform_indices = @transform_2, window_bounds = array<i64: 1, 128>}, {pipeline_mode = #tpu.pipeline_mode<synchronous>, transform_indices = @transform_3, window_bounds = array<i64: 1, 128>}, {pipeline_mode = #tpu.pipeline_mode<synchronous>, transform_indices = @transform_4, window_bounds = array<i64: 4, 128>}, {transform_indices = @transform_5, window_bounds = array<i64: 1, 1, 128>}, {transform_indices = @transform_6, window_bounds = array<i64: 1, 1, 128>}, {transform_indices = @transform_7, window_bounds = array<i64: 1, 128, 384>}, {transform_indices = @transform_8, window_bounds = array<i64: 1, 1, 384>}, {transform_indices = @transform_9, window_bounds = array<i64: 1, 128, 128>}, {transform_indices = @transform_10, window_bounds = array<i64: 1, 1, 128>}, {transform_indices = @transform_11, window_bounds = array<i64: 1, 1, 128>}, {transform_indices = @transform_12, window_bounds = array<i64: 1, 1, 128>}, {transform_indices = @transform_13, window_bounds = array<i64: 1, 128, 512>}, {transform_indices = @transform_14, window_bounds = array<i64: 1, 1, 512>}, {transform_indices = @transform_15, window_bounds = array<i64: 1, 512, 128>}, {transform_indices = @transform_16, window_bounds = array<i64: 1, 1, 128>}, {pipeline_mode = #tpu.pipeline_mode<synchronous>, transform_indices = @transform_17, window_bounds = array<i64: 1, 128>}, {pipeline_mode = #tpu.pipeline_mode<synchronous>, transform_indices = @transform_18, window_bounds = array<i64: 1, 128>}, {pipeline_mode = #tpu.pipeline_mode<synchronous>, transform_indices = @transform_19, window_bounds = array<i64: 1, 128>}, {pipeline_mode = #tpu.pipeline_mode<synchronous>, transform_indices = @transform_20, window_bounds = array<i64: 1, 128>}, {pipeline_mode = #tpu.pipeline_mode<synchronous>, transform_indices = @transform_21, window_bounds = array<i64: 128, 128>}, {pipeline_mode = #tpu.pipeline_mode<synchronous>, transform_indices = @transform_22, window_bounds = array<i64: 2, 128>}, {pipeline_mode = #tpu.pipeline_mode<synchronous>, transform_indices = @transform_23, window_bounds = array<i64: 2, 128>}]} {
    %c0_i32 = arith.constant 0 : i32
    %0 = arith.cmpi eq, %arg0, %c0_i32 : i32
    %1 = arith.extui %0 : i1 to i32
    %c0_i32_0 = arith.constant 0 : i32
    %2 = arith.cmpi ne, %1, %c0_i32_0 : i32
    scf.if %2 {
      %c0_111 = arith.constant 0 : index
      %c0_112 = arith.constant 0 : index
      %330 = vector.load %arg1[%c0_111, %c0_112] : memref<8x192xf32, #tpu.memory_space<vmem>>, vector<8x192xf32>
      %331 = arith.truncf %330 : vector<8x192xf32> to vector<8x192xbf16>
      %c0_113 = arith.constant 0 : index
      %c0_114 = arith.constant 0 : index
      %332 = vector.load %arg2[%c0_113, %c0_114] : memref<192x128xbf16, #tpu.memory_space<vmem>>, vector<192x128xbf16>
      %cst_115 = arith.constant dense<0.000000e+00> : vector<8x128xf32>
      %333 = tpu.matmul %331, %332, %cst_115 {dimension_numbers = #tpu.dot_dimension_numbers<[1], [0], [0], [1], [0, 0, 1, 1], [], []>} : vector<8x192xbf16>, vector<192x128xbf16>, vector<8x128xf32> -> vector<8x128xf32>
      %c0_116 = arith.constant 0 : index
      %c0_117 = arith.constant 0 : index
      %334 = vector.load %arg3[%c0_116, %c0_117] : memref<1x128xf32, #tpu.memory_space<vmem>>, vector<1x128xf32>
      %335 = vector.broadcast %334 : vector<1x128xf32> to vector<8x128xf32>
      %336 = arith.addf %333, %335 : vector<8x128xf32>
      %c0_118 = arith.constant 0 : index
      %c0_119 = arith.constant 0 : index
      %337 = vector.load %arg4[%c0_118, %c0_119] : memref<1x128xf32, #tpu.memory_space<vmem>>, vector<1x128xf32>
      %338 = vector.extract_strided_slice %336 {offsets = [0, 0], sizes = [4, 128], strides = [1, 1]} : vector<8x128xf32> to vector<4x128xf32>
      %c0_120 = arith.constant 0 : index
      %c0_121 = arith.constant 0 : index
      %339 = vector.load %arg5[%c0_120, %c0_121] : memref<4x128xf32, #tpu.memory_space<vmem>>, vector<4x128xf32>
      %340 = arith.addf %338, %339 : vector<4x128xf32>
      %cst_122 = arith.constant 0.000000e+00 : f32
      %341 = vector.broadcast %cst_122 : f32 to vector<3x128xf32>
      %c0_123 = arith.constant 0 : index
      %c0_124 = arith.constant 0 : index
      %342 = vector.load %arg4[%c0_123, %c0_124] : memref<1x128xf32, #tpu.memory_space<vmem>>, vector<1x128xf32>
      %343 = vector.extract_strided_slice %336 {offsets = [4, 0], sizes = [4, 128], strides = [1, 1]} : vector<8x128xf32> to vector<4x128xf32>
      %c0_125 = arith.constant 0 : index
      %c0_126 = arith.constant 0 : index
      %344 = vector.load %arg5[%c0_125, %c0_126] : memref<4x128xf32, #tpu.memory_space<vmem>>, vector<4x128xf32>
      %345 = arith.addf %343, %344 : vector<4x128xf32>
      %cst_127 = arith.constant 0.000000e+00 : f32
      %346 = vector.broadcast %cst_127 : f32 to vector<3x128xf32>
      %347 = tpu.concatenate %337, %340, %341, %342, %345, %346 in 0 : vector<1x128xf32>, vector<4x128xf32>, vector<3x128xf32>, vector<1x128xf32>, vector<4x128xf32>, vector<3x128xf32> -> vector<16x128xf32>
      %c0_128 = arith.constant 0 : index
      %c0_129 = arith.constant 0 : index
      %348 = vector.load %arg25[%c0_128, %c0_129] : memref<16x128xf32, #tpu.memory_space<vmem>>, vector<16x128xf32>
      tpu.vector_store %arg25[%c0_128, %c0_129], %347 {strides = array<i32>} : memref<16x128xf32, #tpu.memory_space<vmem>>, vector<16x128xf32>,
    } else {
    }
    %c0 = arith.constant 0 : index
    %c0_1 = arith.constant 0 : index
    %3 = vector.load %arg25[%c0, %c0_1] : memref<16x128xf32, #tpu.memory_space<vmem>>, vector<16x128xf32>
    %c0_2 = arith.constant 0 : index
    %c0_3 = arith.constant 0 : index
    %c0_4 = arith.constant 0 : index
    %4 = vector.load %arg6[%c0_2, %c0_3, %c0_4] : memref<1x1x128xf32, #tpu.memory_space<vmem>>, vector<1x1x128xf32>
    %5 = vector.shape_cast %4 : vector<1x1x128xf32> to vector<1x128xf32>
    %c0_5 = arith.constant 0 : index
    %c0_6 = arith.constant 0 : index
    %c0_7 = arith.constant 0 : index
    %6 = vector.load %arg7[%c0_5, %c0_6, %c0_7] : memref<1x1x128xf32, #tpu.memory_space<vmem>>, vector<1x1x128xf32>
    %7 = vector.shape_cast %6 : vector<1x1x128xf32> to vector<1x128xf32>
    %cst = arith.constant dense<0.000000e+00> : vector<16xf32>
    %8 = vector.multi_reduction <add>, %3, %cst [1] : vector<16x128xf32> to vector<16xf32>
    %9 = vector.shape_cast %8 : vector<16xf32> to vector<16x1xf32>
    %cst_8 = arith.constant 1.280000e+02 : f32
    %10 = vector.broadcast %cst_8 : f32 to vector<16x1xf32>
    %11 = arith.divf %9, %10 : vector<16x1xf32>
    %12 = vector.broadcast %11 : vector<16x1xf32> to vector<16x128xf32>
    %13 = arith.subf %3, %12 : vector<16x128xf32>
    %14 = arith.mulf %13, %13 : vector<16x128xf32>
    %cst_9 = arith.constant dense<0.000000e+00> : vector<16xf32>
    %15 = vector.multi_reduction <add>, %14, %cst_9 [1] : vector<16x128xf32> to vector<16xf32>
    %16 = vector.shape_cast %15 : vector<16xf32> to vector<16x1xf32>
    %cst_10 = arith.constant 1.280000e+02 : f32
    %17 = vector.broadcast %cst_10 : f32 to vector<16x1xf32>
    %18 = arith.divf %16, %17 : vector<16x1xf32>
    %19 = vector.broadcast %11 : vector<16x1xf32> to vector<16x128xf32>
    %20 = arith.subf %3, %19 : vector<16x128xf32>
    %cst_11 = arith.constant 9.99999997E-7 : f32
    %21 = vector.broadcast %cst_11 : f32 to vector<16x1xf32>
    %22 = arith.addf %18, %21 : vector<16x1xf32>
    %23 = math.rsqrt %22 : vector<16x1xf32>
    %24 = vector.broadcast %23 : vector<16x1xf32> to vector<16x128xf32>
    %25 = arith.mulf %20, %24 : vector<16x128xf32>
    %26 = vector.broadcast %5 : vector<1x128xf32> to vector<16x128xf32>
    %27 = arith.mulf %25, %26 : vector<16x128xf32>
    %28 = vector.broadcast %7 : vector<1x128xf32> to vector<16x128xf32>
    %29 = arith.addf %27, %28 : vector<16x128xf32>
    %30 = arith.truncf %29 : vector<16x128xf32> to vector<16x128xbf16>
    %c0_12 = arith.constant 0 : index
    %c0_13 = arith.constant 0 : index
    %c0_14 = arith.constant 0 : index
    %31 = vector.load %arg8[%c0_12, %c0_13, %c0_14] : memref<1x128x384xbf16, #tpu.memory_space<vmem>>, vector<1x128x384xbf16>
    %32 = vector.shape_cast %31 : vector<1x128x384xbf16> to vector<128x384xbf16>
    %cst_15 = arith.constant dense<0.000000e+00> : vector<16x384xf32>
    %33 = tpu.matmul %30, %32, %cst_15 {dimension_numbers = #tpu.dot_dimension_numbers<[1], [0], [0], [1], [0, 0, 1, 1], [], []>} : vector<16x128xbf16>, vector<128x384xbf16>, vector<16x384xf32> -> vector<16x384xf32>
    %c0_16 = arith.constant 0 : index
    %c0_17 = arith.constant 0 : index
    %c0_18 = arith.constant 0 : index
    %34 = vector.load %arg9[%c0_16, %c0_17, %c0_18] : memref<1x1x384xf32, #tpu.memory_space<vmem>>, vector<1x1x384xf32>
    %35 = vector.shape_cast %34 : vector<1x1x384xf32> to vector<1x384xf32>
    %36 = vector.broadcast %35 : vector<1x384xf32> to vector<16x384xf32>
    %37 = arith.addf %33, %36 : vector<16x384xf32>
    %38 = tpu.iota {dimensions = array<i32: 1>} : vector<1x8xi32>
    %c5_i32 = arith.constant 5 : i32
    %39 = vector.broadcast %c5_i32 : i32 to vector<1x8xi32>
    %40 = arith.cmpi slt, %38, %39 : vector<1x8xi32>
    %cst_19 = arith.constant 0.000000e+00 : f32
    %cst_20 = arith.constant -1.000000e+30 : f32
    %41 = vector.broadcast %cst_19 : f32 to vector<1x8xf32>
    %42 = vector.broadcast %cst_20 : f32 to vector<1x8xf32>
    %43 = arith.select %40, %41, %42 : vector<1x8xi1>, vector<1x8xf32>
    %44 = vector.extract_strided_slice %37 {offsets = [0, 0], sizes = [8, 32], strides = [1, 1]} : vector<16x384xf32> to vector<8x32xf32>
    %cst_21 = arith.constant 0.176776692 : f32
    %45 = vector.broadcast %cst_21 : f32 to vector<8x32xf32>
    %46 = arith.mulf %44, %45 : vector<8x32xf32>
    %47 = arith.truncf %46 : vector<8x32xf32> to vector<8x32xbf16>
    %48 = vector.extract_strided_slice %37 {offsets = [0, 128], sizes = [8, 32], strides = [1, 1]} : vector<16x384xf32> to vector<8x32xf32>
    %49 = arith.truncf %48 : vector<8x32xf32> to vector<8x32xbf16>
    %50 = vector.extract_strided_slice %37 {offsets = [0, 256], sizes = [8, 32], strides = [1, 1]} : vector<16x384xf32> to vector<8x32xf32>
    %51 = arith.truncf %50 : vector<8x32xf32> to vector<8x32xbf16>
    %cst_22 = arith.constant dense<0.000000e+00> : vector<8x8xf32>
    %52 = tpu.matmul %47, %49, %cst_22 {dimension_numbers = #tpu.dot_dimension_numbers<[1], [1], [0], [0], [0, 0, 1, 0], [], []>} : vector<8x32xbf16>, vector<8x32xbf16>, vector<8x8xf32> -> vector<8x8xf32>
    %53 = vector.broadcast %43 : vector<1x8xf32> to vector<8x8xf32>
    %54 = arith.addf %52, %53 : vector<8x8xf32>
    %cst_23 = arith.constant dense<0xFF800000> : vector<8xf32>
    %55 = vector.multi_reduction <maximumf>, %54, %cst_23 [1] : vector<8x8xf32> to vector<8xf32>
    %56 = vector.shape_cast %55 : vector<8xf32> to vector<8x1xf32>
    %57 = vector.broadcast %56 : vector<8x1xf32> to vector<8x8xf32>
    %58 = arith.subf %54, %57 : vector<8x8xf32>
    %59 = math.exp %58 : vector<8x8xf32>
    %cst_24 = arith.constant dense<0.000000e+00> : vector<8xf32>
    %60 = vector.multi_reduction <add>, %59, %cst_24 [1] : vector<8x8xf32> to vector<8xf32>
    %61 = vector.shape_cast %60 : vector<8xf32> to vector<8x1xf32>
    %62 = tpu.reciprocal %61 {approx = true} : vector<8x1xf32> -> vector<8x1xf32>
    %63 = vector.broadcast %62 : vector<8x1xf32> to vector<8x8xf32>
    %64 = arith.mulf %59, %63 : vector<8x8xf32>
    %65 = arith.truncf %64 : vector<8x8xf32> to vector<8x8xbf16>
    %cst_25 = arith.constant dense<0.000000e+00> : vector<8x32xf32>
    %66 = tpu.matmul %65, %51, %cst_25 {dimension_numbers = #tpu.dot_dimension_numbers<[1], [0], [0], [1], [0, 0, 1, 1], [], []>} : vector<8x8xbf16>, vector<8x32xbf16>, vector<8x32xf32> -> vector<8x32xf32>
    %67 = vector.extract_strided_slice %37 {offsets = [0, 32], sizes = [8, 32], strides = [1, 1]} : vector<16x384xf32> to vector<8x32xf32>
    %cst_26 = arith.constant 0.176776692 : f32
    %68 = vector.broadcast %cst_26 : f32 to vector<8x32xf32>
    %69 = arith.mulf %67, %68 : vector<8x32xf32>
    %70 = arith.truncf %69 : vector<8x32xf32> to vector<8x32xbf16>
    %71 = vector.extract_strided_slice %37 {offsets = [0, 160], sizes = [8, 32], strides = [1, 1]} : vector<16x384xf32> to vector<8x32xf32>
    %72 = arith.truncf %71 : vector<8x32xf32> to vector<8x32xbf16>
    %73 = vector.extract_strided_slice %37 {offsets = [0, 288], sizes = [8, 32], strides = [1, 1]} : vector<16x384xf32> to vector<8x32xf32>
    %74 = arith.truncf %73 : vector<8x32xf32> to vector<8x32xbf16>
    %cst_27 = arith.constant dense<0.000000e+00> : vector<8x8xf32>
    %75 = tpu.matmul %70, %72, %cst_27 {dimension_numbers = #tpu.dot_dimension_numbers<[1], [1], [0], [0], [0, 0, 1, 0], [], []>} : vector<8x32xbf16>, vector<8x32xbf16>, vector<8x8xf32> -> vector<8x8xf32>
    %76 = vector.broadcast %43 : vector<1x8xf32> to vector<8x8xf32>
    %77 = arith.addf %75, %76 : vector<8x8xf32>
    %cst_28 = arith.constant dense<0xFF800000> : vector<8xf32>
    %78 = vector.multi_reduction <maximumf>, %77, %cst_28 [1] : vector<8x8xf32> to vector<8xf32>
    %79 = vector.shape_cast %78 : vector<8xf32> to vector<8x1xf32>
    %80 = vector.broadcast %79 : vector<8x1xf32> to vector<8x8xf32>
    %81 = arith.subf %77, %80 : vector<8x8xf32>
    %82 = math.exp %81 : vector<8x8xf32>
    %cst_29 = arith.constant dense<0.000000e+00> : vector<8xf32>
    %83 = vector.multi_reduction <add>, %82, %cst_29 [1] : vector<8x8xf32> to vector<8xf32>
    %84 = vector.shape_cast %83 : vector<8xf32> to vector<8x1xf32>
    %85 = tpu.reciprocal %84 {approx = true} : vector<8x1xf32> -> vector<8x1xf32>
    %86 = vector.broadcast %85 : vector<8x1xf32> to vector<8x8xf32>
    %87 = arith.mulf %82, %86 : vector<8x8xf32>
    %88 = arith.truncf %87 : vector<8x8xf32> to vector<8x8xbf16>
    %cst_30 = arith.constant dense<0.000000e+00> : vector<8x32xf32>
    %89 = tpu.matmul %88, %74, %cst_30 {dimension_numbers = #tpu.dot_dimension_numbers<[1], [0], [0], [1], [0, 0, 1, 1], [], []>} : vector<8x8xbf16>, vector<8x32xbf16>, vector<8x32xf32> -> vector<8x32xf32>
    %90 = vector.extract_strided_slice %37 {offsets = [0, 64], sizes = [8, 32], strides = [1, 1]} : vector<16x384xf32> to vector<8x32xf32>
    %cst_31 = arith.constant 0.176776692 : f32
    %91 = vector.broadcast %cst_31 : f32 to vector<8x32xf32>
    %92 = arith.mulf %90, %91 : vector<8x32xf32>
    %93 = arith.truncf %92 : vector<8x32xf32> to vector<8x32xbf16>
    %94 = vector.extract_strided_slice %37 {offsets = [0, 192], sizes = [8, 32], strides = [1, 1]} : vector<16x384xf32> to vector<8x32xf32>
    %95 = arith.truncf %94 : vector<8x32xf32> to vector<8x32xbf16>
    %96 = vector.extract_strided_slice %37 {offsets = [0, 320], sizes = [8, 32], strides = [1, 1]} : vector<16x384xf32> to vector<8x32xf32>
    %97 = arith.truncf %96 : vector<8x32xf32> to vector<8x32xbf16>
    %cst_32 = arith.constant dense<0.000000e+00> : vector<8x8xf32>
    %98 = tpu.matmul %93, %95, %cst_32 {dimension_numbers = #tpu.dot_dimension_numbers<[1], [1], [0], [0], [0, 0, 1, 0], [], []>} : vector<8x32xbf16>, vector<8x32xbf16>, vector<8x8xf32> -> vector<8x8xf32>
    %99 = vector.broadcast %43 : vector<1x8xf32> to vector<8x8xf32>
    %100 = arith.addf %98, %99 : vector<8x8xf32>
    %cst_33 = arith.constant dense<0xFF800000> : vector<8xf32>
    %101 = vector.multi_reduction <maximumf>, %100, %cst_33 [1] : vector<8x8xf32> to vector<8xf32>
    %102 = vector.shape_cast %101 : vector<8xf32> to vector<8x1xf32>
    %103 = vector.broadcast %102 : vector<8x1xf32> to vector<8x8xf32>
    %104 = arith.subf %100, %103 : vector<8x8xf32>
    %105 = math.exp %104 : vector<8x8xf32>
    %cst_34 = arith.constant dense<0.000000e+00> : vector<8xf32>
    %106 = vector.multi_reduction <add>, %105, %cst_34 [1] : vector<8x8xf32> to vector<8xf32>
    %107 = vector.shape_cast %106 : vector<8xf32> to vector<8x1xf32>
    %108 = tpu.reciprocal %107 {approx = true} : vector<8x1xf32> -> vector<8x1xf32>
    %109 = vector.broadcast %108 : vector<8x1xf32> to vector<8x8xf32>
    %110 = arith.mulf %105, %109 : vector<8x8xf32>
    %111 = arith.truncf %110 : vector<8x8xf32> to vector<8x8xbf16>
    %cst_35 = arith.constant dense<0.000000e+00> : vector<8x32xf32>
    %112 = tpu.matmul %111, %97, %cst_35 {dimension_numbers = #tpu.dot_dimension_numbers<[1], [0], [0], [1], [0, 0, 1, 1], [], []>} : vector<8x8xbf16>, vector<8x32xbf16>, vector<8x32xf32> -> vector<8x32xf32>
    %113 = vector.extract_strided_slice %37 {offsets = [0, 96], sizes = [8, 32], strides = [1, 1]} : vector<16x384xf32> to vector<8x32xf32>
    %cst_36 = arith.constant 0.176776692 : f32
    %114 = vector.broadcast %cst_36 : f32 to vector<8x32xf32>
    %115 = arith.mulf %113, %114 : vector<8x32xf32>
    %116 = arith.truncf %115 : vector<8x32xf32> to vector<8x32xbf16>
    %117 = vector.extract_strided_slice %37 {offsets = [0, 224], sizes = [8, 32], strides = [1, 1]} : vector<16x384xf32> to vector<8x32xf32>
    %118 = arith.truncf %117 : vector<8x32xf32> to vector<8x32xbf16>
    %119 = vector.extract_strided_slice %37 {offsets = [0, 352], sizes = [8, 32], strides = [1, 1]} : vector<16x384xf32> to vector<8x32xf32>
    %120 = arith.truncf %119 : vector<8x32xf32> to vector<8x32xbf16>
    %cst_37 = arith.constant dense<0.000000e+00> : vector<8x8xf32>
    %121 = tpu.matmul %116, %118, %cst_37 {dimension_numbers = #tpu.dot_dimension_numbers<[1], [1], [0], [0], [0, 0, 1, 0], [], []>} : vector<8x32xbf16>, vector<8x32xbf16>, vector<8x8xf32> -> vector<8x8xf32>
    %122 = vector.broadcast %43 : vector<1x8xf32> to vector<8x8xf32>
    %123 = arith.addf %121, %122 : vector<8x8xf32>
    %cst_38 = arith.constant dense<0xFF800000> : vector<8xf32>
    %124 = vector.multi_reduction <maximumf>, %123, %cst_38 [1] : vector<8x8xf32> to vector<8xf32>
    %125 = vector.shape_cast %124 : vector<8xf32> to vector<8x1xf32>
    %126 = vector.broadcast %125 : vector<8x1xf32> to vector<8x8xf32>
    %127 = arith.subf %123, %126 : vector<8x8xf32>
    %128 = math.exp %127 : vector<8x8xf32>
    %cst_39 = arith.constant dense<0.000000e+00> : vector<8xf32>
    %129 = vector.multi_reduction <add>, %128, %cst_39 [1] : vector<8x8xf32> to vector<8xf32>
    %130 = vector.shape_cast %129 : vector<8xf32> to vector<8x1xf32>
    %131 = tpu.reciprocal %130 {approx = true} : vector<8x1xf32> -> vector<8x1xf32>
    %132 = vector.broadcast %131 : vector<8x1xf32> to vector<8x8xf32>
    %133 = arith.mulf %128, %132 : vector<8x8xf32>
    %134 = arith.truncf %133 : vector<8x8xf32> to vector<8x8xbf16>
    %cst_40 = arith.constant dense<0.000000e+00> : vector<8x32xf32>
    %135 = tpu.matmul %134, %120, %cst_40 {dimension_numbers = #tpu.dot_dimension_numbers<[1], [0], [0], [1], [0, 0, 1, 1], [], []>} : vector<8x8xbf16>, vector<8x32xbf16>, vector<8x32xf32> -> vector<8x32xf32>
    %136 = tpu.concatenate %66, %89, %112, %135 in 1 : vector<8x32xf32>, vector<8x32xf32>, vector<8x32xf32>, vector<8x32xf32> -> vector<8x128xf32>
    %137 = vector.extract_strided_slice %37 {offsets = [8, 0], sizes = [8, 32], strides = [1, 1]} : vector<16x384xf32> to vector<8x32xf32>
    %cst_41 = arith.constant 0.176776692 : f32
    %138 = vector.broadcast %cst_41 : f32 to vector<8x32xf32>
    %139 = arith.mulf %137, %138 : vector<8x32xf32>
    %140 = arith.truncf %139 : vector<8x32xf32> to vector<8x32xbf16>
    %141 = vector.extract_strided_slice %37 {offsets = [8, 128], sizes = [8, 32], strides = [1, 1]} : vector<16x384xf32> to vector<8x32xf32>
    %142 = arith.truncf %141 : vector<8x32xf32> to vector<8x32xbf16>
    %143 = vector.extract_strided_slice %37 {offsets = [8, 256], sizes = [8, 32], strides = [1, 1]} : vector<16x384xf32> to vector<8x32xf32>
    %144 = arith.truncf %143 : vector<8x32xf32> to vector<8x32xbf16>
    %cst_42 = arith.constant dense<0.000000e+00> : vector<8x8xf32>
    %145 = tpu.matmul %140, %142, %cst_42 {dimension_numbers = #tpu.dot_dimension_numbers<[1], [1], [0], [0], [0, 0, 1, 0], [], []>} : vector<8x32xbf16>, vector<8x32xbf16>, vector<8x8xf32> -> vector<8x8xf32>
    %146 = vector.broadcast %43 : vector<1x8xf32> to vector<8x8xf32>
    %147 = arith.addf %145, %146 : vector<8x8xf32>
    %cst_43 = arith.constant dense<0xFF800000> : vector<8xf32>
    %148 = vector.multi_reduction <maximumf>, %147, %cst_43 [1] : vector<8x8xf32> to vector<8xf32>
    %149 = vector.shape_cast %148 : vector<8xf32> to vector<8x1xf32>
    %150 = vector.broadcast %149 : vector<8x1xf32> to vector<8x8xf32>
    %151 = arith.subf %147, %150 : vector<8x8xf32>
    %152 = math.exp %151 : vector<8x8xf32>
    %cst_44 = arith.constant dense<0.000000e+00> : vector<8xf32>
    %153 = vector.multi_reduction <add>, %152, %cst_44 [1] : vector<8x8xf32> to vector<8xf32>
    %154 = vector.shape_cast %153 : vector<8xf32> to vector<8x1xf32>
    %155 = tpu.reciprocal %154 {approx = true} : vector<8x1xf32> -> vector<8x1xf32>
    %156 = vector.broadcast %155 : vector<8x1xf32> to vector<8x8xf32>
    %157 = arith.mulf %152, %156 : vector<8x8xf32>
    %158 = arith.truncf %157 : vector<8x8xf32> to vector<8x8xbf16>
    %cst_45 = arith.constant dense<0.000000e+00> : vector<8x32xf32>
    %159 = tpu.matmul %158, %144, %cst_45 {dimension_numbers = #tpu.dot_dimension_numbers<[1], [0], [0], [1], [0, 0, 1, 1], [], []>} : vector<8x8xbf16>, vector<8x32xbf16>, vector<8x32xf32> -> vector<8x32xf32>
    %160 = vector.extract_strided_slice %37 {offsets = [8, 32], sizes = [8, 32], strides = [1, 1]} : vector<16x384xf32> to vector<8x32xf32>
    %cst_46 = arith.constant 0.176776692 : f32
    %161 = vector.broadcast %cst_46 : f32 to vector<8x32xf32>
    %162 = arith.mulf %160, %161 : vector<8x32xf32>
    %163 = arith.truncf %162 : vector<8x32xf32> to vector<8x32xbf16>
    %164 = vector.extract_strided_slice %37 {offsets = [8, 160], sizes = [8, 32], strides = [1, 1]} : vector<16x384xf32> to vector<8x32xf32>
    %165 = arith.truncf %164 : vector<8x32xf32> to vector<8x32xbf16>
    %166 = vector.extract_strided_slice %37 {offsets = [8, 288], sizes = [8, 32], strides = [1, 1]} : vector<16x384xf32> to vector<8x32xf32>
    %167 = arith.truncf %166 : vector<8x32xf32> to vector<8x32xbf16>
    %cst_47 = arith.constant dense<0.000000e+00> : vector<8x8xf32>
    %168 = tpu.matmul %163, %165, %cst_47 {dimension_numbers = #tpu.dot_dimension_numbers<[1], [1], [0], [0], [0, 0, 1, 0], [], []>} : vector<8x32xbf16>, vector<8x32xbf16>, vector<8x8xf32> -> vector<8x8xf32>
    %169 = vector.broadcast %43 : vector<1x8xf32> to vector<8x8xf32>
    %170 = arith.addf %168, %169 : vector<8x8xf32>
    %cst_48 = arith.constant dense<0xFF800000> : vector<8xf32>
    %171 = vector.multi_reduction <maximumf>, %170, %cst_48 [1] : vector<8x8xf32> to vector<8xf32>
    %172 = vector.shape_cast %171 : vector<8xf32> to vector<8x1xf32>
    %173 = vector.broadcast %172 : vector<8x1xf32> to vector<8x8xf32>
    %174 = arith.subf %170, %173 : vector<8x8xf32>
    %175 = math.exp %174 : vector<8x8xf32>
    %cst_49 = arith.constant dense<0.000000e+00> : vector<8xf32>
    %176 = vector.multi_reduction <add>, %175, %cst_49 [1] : vector<8x8xf32> to vector<8xf32>
    %177 = vector.shape_cast %176 : vector<8xf32> to vector<8x1xf32>
    %178 = tpu.reciprocal %177 {approx = true} : vector<8x1xf32> -> vector<8x1xf32>
    %179 = vector.broadcast %178 : vector<8x1xf32> to vector<8x8xf32>
    %180 = arith.mulf %175, %179 : vector<8x8xf32>
    %181 = arith.truncf %180 : vector<8x8xf32> to vector<8x8xbf16>
    %cst_50 = arith.constant dense<0.000000e+00> : vector<8x32xf32>
    %182 = tpu.matmul %181, %167, %cst_50 {dimension_numbers = #tpu.dot_dimension_numbers<[1], [0], [0], [1], [0, 0, 1, 1], [], []>} : vector<8x8xbf16>, vector<8x32xbf16>, vector<8x32xf32> -> vector<8x32xf32>
    %183 = vector.extract_strided_slice %37 {offsets = [8, 64], sizes = [8, 32], strides = [1, 1]} : vector<16x384xf32> to vector<8x32xf32>
    %cst_51 = arith.constant 0.176776692 : f32
    %184 = vector.broadcast %cst_51 : f32 to vector<8x32xf32>
    %185 = arith.mulf %183, %184 : vector<8x32xf32>
    %186 = arith.truncf %185 : vector<8x32xf32> to vector<8x32xbf16>
    %187 = vector.extract_strided_slice %37 {offsets = [8, 192], sizes = [8, 32], strides = [1, 1]} : vector<16x384xf32> to vector<8x32xf32>
    %188 = arith.truncf %187 : vector<8x32xf32> to vector<8x32xbf16>
    %189 = vector.extract_strided_slice %37 {offsets = [8, 320], sizes = [8, 32], strides = [1, 1]} : vector<16x384xf32> to vector<8x32xf32>
    %190 = arith.truncf %189 : vector<8x32xf32> to vector<8x32xbf16>
    %cst_52 = arith.constant dense<0.000000e+00> : vector<8x8xf32>
    %191 = tpu.matmul %186, %188, %cst_52 {dimension_numbers = #tpu.dot_dimension_numbers<[1], [1], [0], [0], [0, 0, 1, 0], [], []>} : vector<8x32xbf16>, vector<8x32xbf16>, vector<8x8xf32> -> vector<8x8xf32>
    %192 = vector.broadcast %43 : vector<1x8xf32> to vector<8x8xf32>
    %193 = arith.addf %191, %192 : vector<8x8xf32>
    %cst_53 = arith.constant dense<0xFF800000> : vector<8xf32>
    %194 = vector.multi_reduction <maximumf>, %193, %cst_53 [1] : vector<8x8xf32> to vector<8xf32>
    %195 = vector.shape_cast %194 : vector<8xf32> to vector<8x1xf32>
    %196 = vector.broadcast %195 : vector<8x1xf32> to vector<8x8xf32>
    %197 = arith.subf %193, %196 : vector<8x8xf32>
    %198 = math.exp %197 : vector<8x8xf32>
    %cst_54 = arith.constant dense<0.000000e+00> : vector<8xf32>
    %199 = vector.multi_reduction <add>, %198, %cst_54 [1] : vector<8x8xf32> to vector<8xf32>
    %200 = vector.shape_cast %199 : vector<8xf32> to vector<8x1xf32>
    %201 = tpu.reciprocal %200 {approx = true} : vector<8x1xf32> -> vector<8x1xf32>
    %202 = vector.broadcast %201 : vector<8x1xf32> to vector<8x8xf32>
    %203 = arith.mulf %198, %202 : vector<8x8xf32>
    %204 = arith.truncf %203 : vector<8x8xf32> to vector<8x8xbf16>
    %cst_55 = arith.constant dense<0.000000e+00> : vector<8x32xf32>
    %205 = tpu.matmul %204, %190, %cst_55 {dimension_numbers = #tpu.dot_dimension_numbers<[1], [0], [0], [1], [0, 0, 1, 1], [], []>} : vector<8x8xbf16>, vector<8x32xbf16>, vector<8x32xf32> -> vector<8x32xf32>
    %206 = vector.extract_strided_slice %37 {offsets = [8, 96], sizes = [8, 32], strides = [1, 1]} : vector<16x384xf32> to vector<8x32xf32>
    %cst_56 = arith.constant 0.176776692 : f32
    %207 = vector.broadcast %cst_56 : f32 to vector<8x32xf32>
    %208 = arith.mulf %206, %207 : vector<8x32xf32>
    %209 = arith.truncf %208 : vector<8x32xf32> to vector<8x32xbf16>
    %210 = vector.extract_strided_slice %37 {offsets = [8, 224], sizes = [8, 32], strides = [1, 1]} : vector<16x384xf32> to vector<8x32xf32>
    %211 = arith.truncf %210 : vector<8x32xf32> to vector<8x32xbf16>
    %212 = vector.extract_strided_slice %37 {offsets = [8, 352], sizes = [8, 32], strides = [1, 1]} : vector<16x384xf32> to vector<8x32xf32>
    %213 = arith.truncf %212 : vector<8x32xf32> to vector<8x32xbf16>
    %cst_57 = arith.constant dense<0.000000e+00> : vector<8x8xf32>
    %214 = tpu.matmul %209, %211, %cst_57 {dimension_numbers = #tpu.dot_dimension_numbers<[1], [1], [0], [0], [0, 0, 1, 0], [], []>} : vector<8x32xbf16>, vector<8x32xbf16>, vector<8x8xf32> -> vector<8x8xf32>
    %215 = vector.broadcast %43 : vector<1x8xf32> to vector<8x8xf32>
    %216 = arith.addf %214, %215 : vector<8x8xf32>
    %cst_58 = arith.constant dense<0xFF800000> : vector<8xf32>
    %217 = vector.multi_reduction <maximumf>, %216, %cst_58 [1] : vector<8x8xf32> to vector<8xf32>
    %218 = vector.shape_cast %217 : vector<8xf32> to vector<8x1xf32>
    %219 = vector.broadcast %218 : vector<8x1xf32> to vector<8x8xf32>
    %220 = arith.subf %216, %219 : vector<8x8xf32>
    %221 = math.exp %220 : vector<8x8xf32>
    %cst_59 = arith.constant dense<0.000000e+00> : vector<8xf32>
    %222 = vector.multi_reduction <add>, %221, %cst_59 [1] : vector<8x8xf32> to vector<8xf32>
    %223 = vector.shape_cast %222 : vector<8xf32> to vector<8x1xf32>
    %224 = tpu.reciprocal %223 {approx = true} : vector<8x1xf32> -> vector<8x1xf32>
    %225 = vector.broadcast %224 : vector<8x1xf32> to vector<8x8xf32>
    %226 = arith.mulf %221, %225 : vector<8x8xf32>
    %227 = arith.truncf %226 : vector<8x8xf32> to vector<8x8xbf16>
    %cst_60 = arith.constant dense<0.000000e+00> : vector<8x32xf32>
    %228 = tpu.matmul %227, %213, %cst_60 {dimension_numbers = #tpu.dot_dimension_numbers<[1], [0], [0], [1], [0, 0, 1, 1], [], []>} : vector<8x8xbf16>, vector<8x32xbf16>, vector<8x32xf32> -> vector<8x32xf32>
    %229 = tpu.concatenate %159, %182, %205, %228 in 1 : vector<8x32xf32>, vector<8x32xf32>, vector<8x32xf32>, vector<8x32xf32> -> vector<8x128xf32>
    %230 = tpu.concatenate %136, %229 in 0 : vector<8x128xf32>, vector<8x128xf32> -> vector<16x128xf32>
    %231 = arith.truncf %230 : vector<16x128xf32> to vector<16x128xbf16>
    %c0_61 = arith.constant 0 : index
    %c0_62 = arith.constant 0 : index
    %c0_63 = arith.constant 0 : index
    %232 = vector.load %arg10[%c0_61, %c0_62, %c0_63] : memref<1x128x128xbf16, #tpu.memory_space<vmem>>, vector<1x128x128xbf16>
    %233 = vector.shape_cast %232 : vector<1x128x128xbf16> to vector<128x128xbf16>
    %cst_64 = arith.constant dense<0.000000e+00> : vector<16x128xf32>
    %234 = tpu.matmul %231, %233, %cst_64 {dimension_numbers = #tpu.dot_dimension_numbers<[1], [0], [0], [1], [0, 0, 1, 1], [], []>} : vector<16x128xbf16>, vector<128x128xbf16>, vector<16x128xf32> -> vector<16x128xf32>
    %c0_65 = arith.constant 0 : index
    %c0_66 = arith.constant 0 : index
    %c0_67 = arith.constant 0 : index
    %235 = vector.load %arg11[%c0_65, %c0_66, %c0_67] : memref<1x1x128xf32, #tpu.memory_space<vmem>>, vector<1x1x128xf32>
    %236 = vector.shape_cast %235 : vector<1x1x128xf32> to vector<1x128xf32>
    %237 = vector.broadcast %236 : vector<1x128xf32> to vector<16x128xf32>
    %238 = arith.addf %234, %237 : vector<16x128xf32>
    %239 = arith.addf %3, %238 : vector<16x128xf32>
    %c0_68 = arith.constant 0 : index
    %c0_69 = arith.constant 0 : index
    %c0_70 = arith.constant 0 : index
    %240 = vector.load %arg12[%c0_68, %c0_69, %c0_70] : memref<1x1x128xf32, #tpu.memory_space<vmem>>, vector<1x1x128xf32>
    %241 = vector.shape_cast %240 : vector<1x1x128xf32> to vector<1x128xf32>
    %c0_71 = arith.constant 0 : index
    %c0_72 = arith.constant 0 : index
    %c0_73 = arith.constant 0 : index
    %242 = vector.load %arg13[%c0_71, %c0_72, %c0_73] : memref<1x1x128xf32, #tpu.memory_space<vmem>>, vector<1x1x128xf32>
    %243 = vector.shape_cast %242 : vector<1x1x128xf32> to vector<1x128xf32>
    %cst_74 = arith.constant dense<0.000000e+00> : vector<16xf32>
    %244 = vector.multi_reduction <add>, %239, %cst_74 [1] : vector<16x128xf32> to vector<16xf32>
    %245 = vector.shape_cast %244 : vector<16xf32> to vector<16x1xf32>
    %cst_75 = arith.constant 1.280000e+02 : f32
    %246 = vector.broadcast %cst_75 : f32 to vector<16x1xf32>
    %247 = arith.divf %245, %246 : vector<16x1xf32>
    %248 = vector.broadcast %247 : vector<16x1xf32> to vector<16x128xf32>
    %249 = arith.subf %239, %248 : vector<16x128xf32>
    %250 = arith.mulf %249, %249 : vector<16x128xf32>
    %cst_76 = arith.constant dense<0.000000e+00> : vector<16xf32>
    %251 = vector.multi_reduction <add>, %250, %cst_76 [1] : vector<16x128xf32> to vector<16xf32>
    %252 = vector.shape_cast %251 : vector<16xf32> to vector<16x1xf32>
    %cst_77 = arith.constant 1.280000e+02 : f32
    %253 = vector.broadcast %cst_77 : f32 to vector<16x1xf32>
    %254 = arith.divf %252, %253 : vector<16x1xf32>
    %255 = vector.broadcast %247 : vector<16x1xf32> to vector<16x128xf32>
    %256 = arith.subf %239, %255 : vector<16x128xf32>
    %cst_78 = arith.constant 9.99999997E-7 : f32
    %257 = vector.broadcast %cst_78 : f32 to vector<16x1xf32>
    %258 = arith.addf %254, %257 : vector<16x1xf32>
    %259 = math.rsqrt %258 : vector<16x1xf32>
    %260 = vector.broadcast %259 : vector<16x1xf32> to vector<16x128xf32>
    %261 = arith.mulf %256, %260 : vector<16x128xf32>
    %262 = vector.broadcast %241 : vector<1x128xf32> to vector<16x128xf32>
    %263 = arith.mulf %261, %262 : vector<16x128xf32>
    %264 = vector.broadcast %243 : vector<1x128xf32> to vector<16x128xf32>
    %265 = arith.addf %263, %264 : vector<16x128xf32>
    %266 = arith.truncf %265 : vector<16x128xf32> to vector<16x128xbf16>
    %c0_79 = arith.constant 0 : index
    %c0_80 = arith.constant 0 : index
    %c0_81 = arith.constant 0 : index
    %267 = vector.load %arg14[%c0_79, %c0_80, %c0_81] : memref<1x128x512xbf16, #tpu.memory_space<vmem>>, vector<1x128x512xbf16>
    %268 = vector.shape_cast %267 : vector<1x128x512xbf16> to vector<128x512xbf16>
    %cst_82 = arith.constant dense<0.000000e+00> : vector<16x512xf32>
    %269 = tpu.matmul %266, %268, %cst_82 {dimension_numbers = #tpu.dot_dimension_numbers<[1], [0], [0], [1], [0, 0, 1, 1], [], []>} : vector<16x128xbf16>, vector<128x512xbf16>, vector<16x512xf32> -> vector<16x512xf32>
    %c0_83 = arith.constant 0 : index
    %c0_84 = arith.constant 0 : index
    %c0_85 = arith.constant 0 : index
    %270 = vector.load %arg15[%c0_83, %c0_84, %c0_85] : memref<1x1x512xf32, #tpu.memory_space<vmem>>, vector<1x1x512xf32>
    %271 = vector.shape_cast %270 : vector<1x1x512xf32> to vector<1x512xf32>
    %272 = vector.broadcast %271 : vector<1x512xf32> to vector<16x512xf32>
    %273 = arith.addf %269, %272 : vector<16x512xf32>
    %cst_86 = arith.constant 5.000000e-01 : f32
    %274 = vector.broadcast %cst_86 : f32 to vector<16x512xf32>
    %275 = arith.mulf %274, %273 : vector<16x512xf32>
    %cst_87 = arith.constant 0.707106769 : f32
    %276 = vector.broadcast %cst_87 : f32 to vector<16x512xf32>
    %277 = arith.mulf %273, %276 : vector<16x512xf32>
    %278 = math.absf %277 : vector<16x512xf32>
    %cst_88 = arith.constant 0.327591091 : f32
    %279 = vector.broadcast %cst_88 : f32 to vector<16x512xf32>
    %280 = arith.mulf %279, %278 : vector<16x512xf32>
    %cst_89 = arith.constant 1.000000e+00 : f32
    %281 = vector.broadcast %cst_89 : f32 to vector<16x512xf32>
    %282 = arith.addf %281, %280 : vector<16x512xf32>
    %283 = tpu.reciprocal %282 {approx = true} : vector<16x512xf32> -> vector<16x512xf32>
    %284 = arith.mulf %282, %283 : vector<16x512xf32>
    %cst_90 = arith.constant 2.000000e+00 : f32
    %285 = vector.broadcast %cst_90 : f32 to vector<16x512xf32>
    %286 = arith.subf %285, %284 : vector<16x512xf32>
    %287 = arith.mulf %283, %286 : vector<16x512xf32>
    %cst_91 = arith.constant 1.06140542 : f32
    %288 = vector.broadcast %cst_91 : f32 to vector<16x512xf32>
    %289 = arith.mulf %288, %287 : vector<16x512xf32>
    %cst_92 = arith.constant -1.45315206 : f32
    %290 = vector.broadcast %cst_92 : f32 to vector<16x512xf32>
    %291 = arith.addf %289, %290 : vector<16x512xf32>
    %292 = arith.mulf %291, %287 : vector<16x512xf32>
    %cst_93 = arith.constant 1.42141378 : f32
    %293 = vector.broadcast %cst_93 : f32 to vector<16x512xf32>
    %294 = arith.addf %292, %293 : vector<16x512xf32>
    %295 = arith.mulf %294, %287 : vector<16x512xf32>
    %cst_94 = arith.constant -0.284496725 : f32
    %296 = vector.broadcast %cst_94 : f32 to vector<16x512xf32>
    %297 = arith.addf %295, %296 : vector<16x512xf32>
    %298 = arith.mulf %297, %287 : vector<16x512xf32>
    %cst_95 = arith.constant 0.254829586 : f32
    %299 = vector.broadcast %cst_95 : f32 to vector<16x512xf32>
    %300 = arith.addf %298, %299 : vector<16x512xf32>
    %301 = arith.mulf %300, %287 : vector<16x512xf32>
    %cst_96 = arith.constant 0.000000e+00 : f32
    %302 = vector.broadcast %cst_96 : f32 to vector<16x512xf32>
    %303 = arith.subf %302, %278 : vector<16x512xf32>
    %304 = arith.mulf %303, %278 : vector<16x512xf32>
    %305 = math.exp %304 : vector<16x512xf32>
    %306 = arith.mulf %301, %305 : vector<16x512xf32>
    %cst_97 = arith.constant 1.000000e+00 : f32
    %307 = vector.broadcast %cst_97 : f32 to vector<16x512xf32>
    %308 = arith.subf %307, %306 : vector<16x512xf32>
    %cst_98 = arith.constant 0.000000e+00 : f32
    %309 = vector.broadcast %cst_98 : f32 to vector<16x512xf32>
    %310 = arith.cmpf oge, %277, %309 : vector<16x512xf32>
    %cst_99 = arith.constant 0.000000e+00 : f32
    %311 = vector.broadcast %cst_99 : f32 to vector<16x512xf32>
    %312 = arith.subf %311, %308 : vector<16x512xf32>
    %313 = arith.select %310, %308, %312 : vector<16x512xi1>, vector<16x512xf32>
    %cst_100 = arith.constant 1.000000e+00 : f32
    %314 = vector.broadcast %cst_100 : f32 to vector<16x512xf32>
    %315 = arith.addf %314, %313 : vector<16x512xf32>
    %316 = arith.mulf %275, %315 : vector<16x512xf32>
    %317 = arith.truncf %316 : vector<16x512xf32> to vector<16x512xbf16>
    %c0_101 = arith.constant 0 : index
    %c0_102 = arith.constant 0 : index
    %c0_103 = arith.constant 0 : index
    %318 = vector.load %arg16[%c0_101, %c0_102, %c0_103] : memref<1x512x128xbf16, #tpu.memory_space<vmem>>, vector<1x512x128xbf16>
    %319 = vector.shape_cast %318 : vector<1x512x128xbf16> to vector<512x128xbf16>
    %cst_104 = arith.constant dense<0.000000e+00> : vector<16x128xf32>
    %320 = tpu.matmul %317, %319, %cst_104 {dimension_numbers = #tpu.dot_dimension_numbers<[1], [0], [0], [1], [0, 0, 1, 1], [], []>} : vector<16x512xbf16>, vector<512x128xbf16>, vector<16x128xf32> -> vector<16x128xf32>
    %c0_105 = arith.constant 0 : index
    %c0_106 = arith.constant 0 : index
    %c0_107 = arith.constant 0 : index
    %321 = vector.load %arg17[%c0_105, %c0_106, %c0_107] : memref<1x1x128xf32, #tpu.memory_space<vmem>>, vector<1x1x128xf32>
    %322 = vector.shape_cast %321 : vector<1x1x128xf32> to vector<1x128xf32>
    %323 = vector.broadcast %322 : vector<1x128xf32> to vector<16x128xf32>
    %324 = arith.addf %320, %323 : vector<16x128xf32>
    %325 = arith.addf %239, %324 : vector<16x128xf32>
    %c0_108 = arith.constant 0 : index
    %c0_109 = arith.constant 0 : index
    %326 = vector.load %arg25[%c0_108, %c0_109] : memref<16x128xf32, #tpu.memory_space<vmem>>, vector<16x128xf32>
    tpu.vector_store %arg25[%c0_108, %c0_109], %325 {strides = array<i32>} : memref<16x128xf32, #tpu.memory_space<vmem>>, vector<16x128xf32>,
    %c1_i32 = arith.constant 1 : i32
    %327 = arith.cmpi eq, %arg0, %c1_i32 : i32
    %328 = arith.extui %327 : i1 to i32
    %c0_i32_110 = arith.constant 0 : i32
    %329 = arith.cmpi ne, %328, %c0_i32_110 : i32
    scf.if %329 {
      %330 = vector.extract_strided_slice %325 {offsets = [0, 0], sizes = [1, 128], strides = [1, 1]} : vector<16x128xf32> to vector<1x128xf32>
      %331 = vector.extract_strided_slice %325 {offsets = [8, 0], sizes = [1, 128], strides = [1, 1]} : vector<16x128xf32> to vector<1x128xf32>
      %332 = tpu.concatenate %330, %331 in 0 : vector<1x128xf32>, vector<1x128xf32> -> vector<2x128xf32>
      %c0_111 = arith.constant 0 : index
      %c0_112 = arith.constant 0 : index
      %333 = vector.load %arg18[%c0_111, %c0_112] : memref<1x128xf32, #tpu.memory_space<vmem>>, vector<1x128xf32>
      %c0_113 = arith.constant 0 : index
      %c0_114 = arith.constant 0 : index
      %334 = vector.load %arg19[%c0_113, %c0_114] : memref<1x128xf32, #tpu.memory_space<vmem>>, vector<1x128xf32>
      %cst_115 = arith.constant dense<0.000000e+00> : vector<2xf32>
      %335 = vector.multi_reduction <add>, %332, %cst_115 [1] : vector<2x128xf32> to vector<2xf32>
      %336 = vector.shape_cast %335 : vector<2xf32> to vector<2x1xf32>
      %cst_116 = arith.constant 1.280000e+02 : f32
      %337 = vector.broadcast %cst_116 : f32 to vector<2x1xf32>
      %338 = arith.divf %336, %337 : vector<2x1xf32>
      %339 = vector.broadcast %338 : vector<2x1xf32> to vector<2x128xf32>
      %340 = arith.subf %332, %339 : vector<2x128xf32>
      %341 = arith.mulf %340, %340 : vector<2x128xf32>
      %cst_117 = arith.constant dense<0.000000e+00> : vector<2xf32>
      %342 = vector.multi_reduction <add>, %341, %cst_117 [1] : vector<2x128xf32> to vector<2xf32>
      %343 = vector.shape_cast %342 : vector<2xf32> to vector<2x1xf32>
      %cst_118 = arith.constant 1.280000e+02 : f32
      %344 = vector.broadcast %cst_118 : f32 to vector<2x1xf32>
      %345 = arith.divf %343, %344 : vector<2x1xf32>
      %346 = vector.broadcast %338 : vector<2x1xf32> to vector<2x128xf32>
      %347 = arith.subf %332, %346 : vector<2x128xf32>
      %cst_119 = arith.constant 9.99999997E-7 : f32
      %348 = vector.broadcast %cst_119 : f32 to vector<2x1xf32>
      %349 = arith.addf %345, %348 : vector<2x1xf32>
      %350 = math.rsqrt %349 : vector<2x1xf32>
      %351 = vector.broadcast %350 : vector<2x1xf32> to vector<2x128xf32>
      %352 = arith.mulf %347, %351 : vector<2x128xf32>
      %353 = vector.broadcast %333 : vector<1x128xf32> to vector<2x128xf32>
      %354 = arith.mulf %352, %353 : vector<2x128xf32>
      %355 = vector.broadcast %334 : vector<1x128xf32> to vector<2x128xf32>
      %356 = arith.addf %354, %355 : vector<2x128xf32>
      %c0_120 = arith.constant 0 : index
      %c0_121 = arith.constant 0 : index
      %357 = vector.load %arg24[%c0_120, %c0_121] : memref<2x128xf32, #tpu.memory_space<vmem>>, vector<2x128xf32>
      tpu.vector_store %arg24[%c0_120, %c0_121], %356 {strides = array<i32>} : memref<2x128xf32, #tpu.memory_space<vmem>>, vector<2x128xf32>,
      %cst_122 = arith.constant dense<0.000000e+00> : vector<128xf32>
      %358 = vector.multi_reduction <add>, %356, %cst_122 [0] : vector<2x128xf32> to vector<128xf32>
      %359 = vector.shape_cast %358 : vector<128xf32> to vector<1x128xf32>
      %cst_123 = arith.constant 2.000000e+00 : f32
      %360 = vector.broadcast %cst_123 : f32 to vector<1x128xf32>
      %361 = arith.divf %359, %360 : vector<1x128xf32>
      %362 = vector.broadcast %361 : vector<1x128xf32> to vector<2x128xf32>
      %363 = arith.subf %356, %362 : vector<2x128xf32>
      %364 = arith.mulf %363, %363 : vector<2x128xf32>
      %cst_124 = arith.constant dense<0.000000e+00> : vector<128xf32>
      %365 = vector.multi_reduction <add>, %364, %cst_124 [0] : vector<2x128xf32> to vector<128xf32>
      %366 = vector.shape_cast %365 : vector<128xf32> to vector<1x128xf32>
      %cst_125 = arith.constant 2.000000e+00 : f32
      %367 = vector.broadcast %cst_125 : f32 to vector<1x128xf32>
      %368 = arith.divf %366, %367 : vector<1x128xf32>
      %369 = vector.broadcast %361 : vector<1x128xf32> to vector<2x128xf32>
      %370 = arith.subf %356, %369 : vector<2x128xf32>
      %cst_126 = arith.constant 9.99999974E-6 : f32
      %371 = vector.broadcast %cst_126 : f32 to vector<1x128xf32>
      %372 = arith.addf %368, %371 : vector<1x128xf32>
      %373 = math.rsqrt %372 : vector<1x128xf32>
      %374 = vector.broadcast %373 : vector<1x128xf32> to vector<2x128xf32>
      %375 = arith.mulf %370, %374 : vector<2x128xf32>
      %c0_127 = arith.constant 0 : index
      %c0_128 = arith.constant 0 : index
      %376 = vector.load %arg20[%c0_127, %c0_128] : memref<1x128xf32, #tpu.memory_space<vmem>>, vector<1x128xf32>
      %377 = vector.broadcast %376 : vector<1x128xf32> to vector<2x128xf32>
      %378 = arith.mulf %375, %377 : vector<2x128xf32>
      %c0_129 = arith.constant 0 : index
      %c0_130 = arith.constant 0 : index
      %379 = vector.load %arg21[%c0_129, %c0_130] : memref<1x128xf32, #tpu.memory_space<vmem>>, vector<1x128xf32>
      %380 = vector.broadcast %379 : vector<1x128xf32> to vector<2x128xf32>
      %381 = arith.addf %378, %380 : vector<2x128xf32>
      %382 = arith.truncf %381 : vector<2x128xf32> to vector<2x128xbf16>
      %c0_131 = arith.constant 0 : index
      %c0_132 = arith.constant 0 : index
      %383 = vector.load %arg22[%c0_131, %c0_132] : memref<128x128xbf16, #tpu.memory_space<vmem>>, vector<128x128xbf16>
      %cst_133 = arith.constant dense<0.000000e+00> : vector<2x128xf32>
      %384 = tpu.matmul %382, %383, %cst_133 {dimension_numbers = #tpu.dot_dimension_numbers<[1], [0], [0], [1], [0, 0, 1, 1], [], []>} : vector<2x128xbf16>, vector<128x128xbf16>, vector<2x128xf32> -> vector<2x128xf32>
      %c0_134 = arith.constant 0 : index
      %c0_135 = arith.constant 0 : index
      %385 = vector.load %arg23[%c0_134, %c0_135] : memref<2x128xf32, #tpu.memory_space<vmem>>, vector<2x128xf32>
      tpu.vector_store %arg23[%c0_134, %c0_135], %384 {strides = array<i32>} : memref<2x128xf32, #tpu.memory_space<vmem>>, vector<2x128xf32>,
    } else {
    }
    return
  }
  func.func @transform_0(%arg0: i32) -> (i32, i32) {
    %c0_i32 = arith.constant 0 : i32
    %c0_i32_0 = arith.constant 0 : i32
    %c0_i32_1 = arith.constant 0 : i32
    return %c0_i32, %c0_i32_0 : i32, i32
  }
  func.func @transform_1(%arg0: i32) -> (i32, i32) {
    %c0_i32 = arith.constant 0 : i32
    %c0_i32_0 = arith.constant 0 : i32
    %c0_i32_1 = arith.constant 0 : i32
    return %c0_i32, %c0_i32_0 : i32, i32
  }
  func.func @transform_2(%arg0: i32) -> (i32, i32) {
    %c0_i32 = arith.constant 0 : i32
    %c0_i32_0 = arith.constant 0 : i32
    %c0_i32_1 = arith.constant 0 : i32
    return %c0_i32, %c0_i32_0 : i32, i32
  }
  func.func @transform_3(%arg0: i32) -> (i32, i32) {
    %c0_i32 = arith.constant 0 : i32
    %c0_i32_0 = arith.constant 0 : i32
    %c0_i32_1 = arith.constant 0 : i32
    return %c0_i32, %c0_i32_0 : i32, i32
  }
  func.func @transform_4(%arg0: i32) -> (i32, i32) {
    %c0_i32 = arith.constant 0 : i32
    %c0_i32_0 = arith.constant 0 : i32
    %c0_i32_1 = arith.constant 0 : i32
    return %c0_i32, %c0_i32_0 : i32, i32
  }
  func.func @transform_5(%arg0: i32) -> (i32, i32, i32) {
    %c0_i32 = arith.constant 0 : i32
    %c0_i32_0 = arith.constant 0 : i32
    %c0_i32_1 = arith.constant 0 : i32
    return %arg0, %c0_i32, %c0_i32_0 : i32, i32, i32
  }
  func.func @transform_6(%arg0: i32) -> (i32, i32, i32) {
    %c0_i32 = arith.constant 0 : i32
    %c0_i32_0 = arith.constant 0 : i32
    %c0_i32_1 = arith.constant 0 : i32
    return %arg0, %c0_i32, %c0_i32_0 : i32, i32, i32
  }
  func.func @transform_7(%arg0: i32) -> (i32, i32, i32) {
    %c0_i32 = arith.constant 0 : i32
    %c0_i32_0 = arith.constant 0 : i32
    %c0_i32_1 = arith.constant 0 : i32
    return %arg0, %c0_i32, %c0_i32_0 : i32, i32, i32
  }
  func.func @transform_8(%arg0: i32) -> (i32, i32, i32) {
    %c0_i32 = arith.constant 0 : i32
    %c0_i32_0 = arith.constant 0 : i32
    %c0_i32_1 = arith.constant 0 : i32
    return %arg0, %c0_i32, %c0_i32_0 : i32, i32, i32
  }
  func.func @transform_9(%arg0: i32) -> (i32, i32, i32) {
    %c0_i32 = arith.constant 0 : i32
    %c0_i32_0 = arith.constant 0 : i32
    %c0_i32_1 = arith.constant 0 : i32
    return %arg0, %c0_i32, %c0_i32_0 : i32, i32, i32
  }
  func.func @transform_10(%arg0: i32) -> (i32, i32, i32) {
    %c0_i32 = arith.constant 0 : i32
    %c0_i32_0 = arith.constant 0 : i32
    %c0_i32_1 = arith.constant 0 : i32
    return %arg0, %c0_i32, %c0_i32_0 : i32, i32, i32
  }
  func.func @transform_11(%arg0: i32) -> (i32, i32, i32) {
    %c0_i32 = arith.constant 0 : i32
    %c0_i32_0 = arith.constant 0 : i32
    %c0_i32_1 = arith.constant 0 : i32
    return %arg0, %c0_i32, %c0_i32_0 : i32, i32, i32
  }
  func.func @transform_12(%arg0: i32) -> (i32, i32, i32) {
    %c0_i32 = arith.constant 0 : i32
    %c0_i32_0 = arith.constant 0 : i32
    %c0_i32_1 = arith.constant 0 : i32
    return %arg0, %c0_i32, %c0_i32_0 : i32, i32, i32
  }
  func.func @transform_13(%arg0: i32) -> (i32, i32, i32) {
    %c0_i32 = arith.constant 0 : i32
    %c0_i32_0 = arith.constant 0 : i32
    %c0_i32_1 = arith.constant 0 : i32
    return %arg0, %c0_i32, %c0_i32_0 : i32, i32, i32
  }
  func.func @transform_14(%arg0: i32) -> (i32, i32, i32) {
    %c0_i32 = arith.constant 0 : i32
    %c0_i32_0 = arith.constant 0 : i32
    %c0_i32_1 = arith.constant 0 : i32
    return %arg0, %c0_i32, %c0_i32_0 : i32, i32, i32
  }
  func.func @transform_15(%arg0: i32) -> (i32, i32, i32) {
    %c0_i32 = arith.constant 0 : i32
    %c0_i32_0 = arith.constant 0 : i32
    %c0_i32_1 = arith.constant 0 : i32
    return %arg0, %c0_i32, %c0_i32_0 : i32, i32, i32
  }
  func.func @transform_16(%arg0: i32) -> (i32, i32, i32) {
    %c0_i32 = arith.constant 0 : i32
    %c0_i32_0 = arith.constant 0 : i32
    %c0_i32_1 = arith.constant 0 : i32
    return %arg0, %c0_i32, %c0_i32_0 : i32, i32, i32
  }
  func.func @transform_17(%arg0: i32) -> (i32, i32) {
    %c0_i32 = arith.constant 0 : i32
    %c0_i32_0 = arith.constant 0 : i32
    %c0_i32_1 = arith.constant 0 : i32
    return %c0_i32, %c0_i32_0 : i32, i32
  }
  func.func @transform_18(%arg0: i32) -> (i32, i32) {
    %c0_i32 = arith.constant 0 : i32
    %c0_i32_0 = arith.constant 0 : i32
    %c0_i32_1 = arith.constant 0 : i32
    return %c0_i32, %c0_i32_0 : i32, i32
  }
  func.func @transform_19(%arg0: i32) -> (i32, i32) {
    %c0_i32 = arith.constant 0 : i32
    %c0_i32_0 = arith.constant 0 : i32
    %c0_i32_1 = arith.constant 0 : i32
    return %c0_i32, %c0_i32_0 : i32, i32
  }
  func.func @transform_20(%arg0: i32) -> (i32, i32) {
    %c0_i32 = arith.constant 0 : i32
    %c0_i32_0 = arith.constant 0 : i32
    %c0_i32_1 = arith.constant 0 : i32
    return %c0_i32, %c0_i32_0 : i32, i32
  }
  func.func @transform_21(%arg0: i32) -> (i32, i32) {
    %c0_i32 = arith.constant 0 : i32
    %c0_i32_0 = arith.constant 0 : i32
    %c0_i32_1 = arith.constant 0 : i32
    return %c0_i32, %c0_i32_0 : i32, i32
  }
  func.func @transform_22(%arg0: i32) -> (i32, i32) {
    %c0_i32 = arith.constant 0 : i32
    %c0_i32_0 = arith.constant 0 : i32
    %c0_i32_1 = arith.constant 0 : i32
    return %c0_i32, %c0_i32_0 : i32, i32
  }
  func.func @transform_23(%arg0: i32) -> (i32, i32) {
    %c0_i32 = arith.constant 0 : i32
    %c0_i32_0 = arith.constant 0 : i32
    %c0_i32_1 = arith.constant 0 : i32
    return %c0_i32, %c0_i32_0 : i32, i32
  }
}

</mosaic_0001>

<bundles_post_ra>
// kernel: build_transformer_forward.1
= control target key start
LH: loop header
LB: loop body
LE: loop exit
PB: predicated region body
PF: predicated region fallthrough
CT: control target
= control target key end

     0   :  { %s6482_s0 = inlined_call_operand.vmem [shape: f32[8,192], index: 0, kind: input, shape index: {}]   ;;  %s6483_s1 = inlined_call_operand.hbm [shape: bf16[192,128], index: 1, kind: input, shape index: {}]   ;;  %s6484_s2 = inlined_call_operand.vmem [shape: f32[1,128], index: 2, kind: input, shape index: {}]   ;;  %s6485_s3 = inlined_call_operand.vmem [shape: f32[1,128], index: 3, kind: input, shape index: {}]   ;;  %s6486_s4 = inlined_call_operand.vmem [shape: f32[4,128], index: 4, kind: input, shape index: {}]   ;;  %s6487_s5 = inlined_call_operand.hbm [shape: f32[2,1,128], index: 5, kind: input, shape index: {}]   ;;  %s6488_s6 = inlined_call_operand.hbm [shape: f32[2,1,128], index: 6, kind: input, shape index: {}]   ;;  %s6489_s7 = inlined_call_operand.vmem [shape: bf16[2,128,384], index: 7, kind: input, shape index: {}]   ;;  %s6490_s8 = inlined_call_operand.vmem [shape: f32[2,1,384], index: 8, kind: input, shape index: {}]   ;;  %s6491_s9 = inlined_call_operand.hbm [shape: bf16[2,128,128], index: 9, kind: input, shape index: {}]   ;;  %s6492_s10 = inlined_call_operand.hbm [shape: f32[2,1,128], index: 10, kind: input, shape index: {}]   ;;  %s6493_s11 = inlined_call_operand.hbm [shape: f32[2,1,128], index: 11, kind: input, shape index: {}]   ;;  %s6494_s12 = inlined_call_operand.hbm [shape: f32[2,1,128], index: 12, kind: input, shape index: {}]   ;;  %s6495_s13 = inlined_call_operand.vmem [shape: bf16[2,128,512], index: 13, kind: input, shape index: {}]   ;;  %s6496_s14 = inlined_call_operand.vmem [shape: f32[2,1,512], index: 14, kind: input, shape index: {}]   ;;  %s6497_s15 = inlined_call_operand.hbm [shape: bf16[2,512,128], index: 15, kind: input, shape index: {}]   ;;  %s6498_s16 = inlined_call_operand.hbm [shape: f32[2,1,128], index: 16, kind: input, shape index: {}]   ;;  %s6499_s17 = inlined_call_operand.hbm [shape: f32[1,128], index: 17, kind: input, shape index: {}]   ;;  %s6500_s18 = inlined_call_operand.hbm [shape: f32[1,128], index: 18, kind: input, shape index: {}]   ;;  %s6501_s19 = inlined_call_operand.hbm [shape: f32[1,128], index: 19, kind: input, shape index: {}]   ;;  %s6502_s20 = inlined_call_operand.hbm [shape: f32[1,128], index: 20, kind: input, shape index: {}]   ;;  %s6503_s21 = inlined_call_operand.hbm [shape: bf16[128,128], index: 21, kind: input, shape index: {}]   ;;  %s6504_s22 = inlined_call_operand.hbm [shape: f32[2,128], index: 22, kind: output, shape index: {0}]   ;;  %s6505_s23 = inlined_call_operand.hbm [shape: f32[2,128], index: 23, kind: output, shape index: {1}]  }
   0x1   :  { %6535 = sst [smem:[#allocation45_spill]] %s6482_s0 }
   0x2   :  { %6536 = sst [smem:[#allocation46_spill]] %s6483_s1 }
   0x3   :  { %6537 = sst [smem:[#allocation47_spill]] %s6484_s2 }
   0x4   :  { %6538 = sst [smem:[#allocation48_spill]] %s6485_s3 }
   0x5   :  { %6539 = sst [smem:[#allocation49_spill]] %s6486_s4 }
   0x6   :  { %6540 = sst [smem:[#allocation50_spill]] %s6487_s5 }
   0x7   :  { %6541 = sst [smem:[#allocation51_spill]] %s6488_s6 }
   0x8   :  { %6542 = sst [smem:[#allocation52_spill]] %s6489_s7 }
   0x9   :  { %6543 = sst [smem:[#allocation53_spill]] %s6490_s8 }
   0xa   :  { %6544 = sst [smem:[#allocation54_spill]] %s6491_s9 }
   0xb   :  { %6545 = sst [smem:[#allocation55_spill]] %s6492_s10 }
   0xc   :  { %6546 = sst [smem:[#allocation56_spill]] %s6493_s11 }
   0xd   :  { %6547 = sst [smem:[#allocation57_spill]] %s6494_s12 }
   0xe   :  { %6548 = sst [smem:[#allocation58_spill]] %s6495_s13 }
   0xf   :  { %6549 = sst [smem:[#allocation59_spill]] %s6496_s14 }
  0x10   :  { %6550 = sst [smem:[#allocation60_spill]] %s6499_s17 }
  0x11   :  { %6551 = sst [smem:[#allocation61_spill]] %s6501_s19 }
  0x12   :  { %6552 = sst [smem:[#allocation62_spill]] %s6504_s22 }
  0x13   :  { %6553 = sst [smem:[#allocation63_spill]] %s6505_s23 }
  0x14   :  { %29 = vsyncpa [#allocation4], 0 }
  0x15   :  { %30 = vsyncpa [#allocation7], 0 }
  0x16   :  { %32 = vsyncpa [#allocation7 + $0x1], 0 }
  0x17   :  { %33 = vsyncpa [#allocation10], 0 }
  0x18   :  { %35 = vsyncpa [#allocation10 + $0x1], 0 }
  0x19   :  { %36 = vsyncpa [#allocation13], 0 }
  0x1a   :  { %38 = vsyncpa [#allocation13 + $0x1], 0 }
  0x1b   :  { %39 = vsyncpa [#allocation16], 0 }
  0x1c   :  { %41 = vsyncpa [#allocation16 + $0x1], 0 }
  0x1d   :  { %42 = vsyncpa [#allocation19], 0 }
  0x1e   :  { %43 = vsyncpa [#allocation22], 0 }
  0x1f   :  { %44 = vsyncpa [#allocation25], 0 }
  0x20   :  { %45 = vsyncpa [#allocation5], 0 }
  0x21   :  { %46 = vsyncpa [#allocation28], 0  ;;  %s5540_s4 = smov 0   ;;  %s5542_s30 = smov 0  }
  0x22   :  { %s5544_s24 = smov 0   ;;  %s5546_s25 = smov 0  }
  0x23 LB: > { %6554 = sst [smem:[#allocation39_spill]] %s5382_s30  ;;  %s5559_s5 = sadd.s32 4294967295, %s5390_s25   ;;  %s5390_s25 = sphi %s5546_s25, %s6617_s25   ;;  %s5386_s24 = sphi %s5544_s24, %s6620_s24   ;;  %s5382_s30 = sphi %s5542_s30, %s6619_s30   ;;  %s5378_s4 = sphi %s5540_s4, %s6618_s4  }
  0x24   : > { %6555 = sst [smem:[#allocation40_spill]] %s5386_s24  ;;  %p177_p0 = scmp.ne.s32.totalorder %s5382_s30, %s5378_s4 }
  0x25   : > { %6556 = sst [smem:[#allocation41_spill]] %s5559_s5  ;;  %p6511_p1 = scmp.eq.s32.totalorder %s5559_s5, 0 }
  0x26   : > { %p4049_p2 = scmp.ge.s32.totalorder %s5390_s25, 1  ;;  %p621_p3 = scmp.lt.s32.totalorder %s5390_s25, 3 }
  0x27   : > { %p5568_p5 = por %p6511_p1, %p177_p0  ;;  %s5392_s2 = smov [#allocation18]  }
  0x28   : > { %p5572_p6 = pnand %p4049_p2, %p621_p3  ;;  %s659_s6 = sshll.u32 %s5392_s2, 4  ;;  %s660_s6 = int_to_ptr.vmem [resolvable:$true] %s659_s6 }
  0x29   : > { %s6557_s1 = scalar_select %p5568_p5, 1, 0 }
  0x2a   : > { %s6559_s26 = scalar_select %p5572_p6, 1, 0 }
  0x2b   : > { %6558 = sst [smem:[#allocation42_spill]] %s6557_s1  ;;  %p4546_p7 = pneg %p5572_p6 }
  0x2c   : > { %s5393_s27 = smov [#allocation21]   ;;  %s5585_s29 = sadd.s32 1, %s5390_s25  }
  0x2d   : > { %s681_s7 = sshll.u32 %s5393_s27, 4  ;;  %p5580_p8 = pnand %p4546_p7, %p6511_p1  ;;  %s682_s7 = int_to_ptr.vmem [resolvable:$true] %s681_s7 }
  0x2e   : > { %6561 = sst [smem:[#allocation43_spill]] %s5585_s29  ;;  %s161_s3 = ssub.s32 %s5390_s25, %s5585_s29 }
  0x2f   : > { %s6560_s28 = scalar_select %p5580_p8, 1, 0 }
  0x30   : > { %p5591_p9 = pneg %p5580_p8  ;;  %s4903_s4 = scalar_lea.vmem %s660_s6, 16 }
  0x31   : > { %p4904_p10 = scmp.ne.s32.totalorder %s660_s6, %s4903_s4  ;;  %s4910_s2 = scalar_lea.vmem %s660_s6, 32 }
  0x32   : > { %s6562_s0 = scalar_select %p5591_p9, 1, 0 }
  0x33   : > { %p4906_p11 = pnand %p4904_p10, %p5591_p9  ;;  %p4911_p13 = scmp.lt.s32.totalorder %s660_s6, %s660_s6 }
  0x34   : > { %p4912_p0 = scmp.lt.s32.totalorder %s4910_s2, %s4903_s4 }
  0x35   : > { %p4907_p12 = pneg %p4906_p11 }
  0x36   : > { %p4913_p2 = por %p4912_p0, %p4911_p13 }
  0x38   : > { %p4914_p3 = pnand %p4913_p2, %p4907_p12 }
  0x3a   : > { %4917 = shalt.err (!%p4914_p3)
}
  0x3b   : > { %s6563_s17 = sld [smem:[#allocation60_spill]]  ;;  %s4929_s23 = scalar_lea.vmem %s682_s7, 16 }
  0x3c   : > { %p4930_p7 = scmp.ne.s32.totalorder %s682_s7, %s4929_s23  ;;  %s4936_s22 = scalar_lea.vmem %s682_s7, 32 }
  0x3d   : > { %p4937_p10 = scmp.lt.s32.totalorder %s682_s7, %s682_s7  ;;  %p4938_p11 = scmp.lt.s32.totalorder %s4936_s22, %s4929_s23 }
  0x3e   : > { %p4932_p4 = pnand %p4930_p7, %p5591_p9 }
  0x3f   : > { %p4939_p5 = por %p4938_p11, %p4937_p10 }
  0x40   : > { %p4933_p1 = pneg %p4932_p4 }
  0x41   : > { %4552 = dma.hbm_to_vmem [thread:$0]  (!%p5580_p8), %s6563_s17, 16, %s660_s6, [#allocation19]  }
  0x42   : > { %p4940_p6 = pnand %p4939_p5, %p4933_p1 }
  0x44   : > { %4943 = shalt.err (!%p4940_p6)
}
  0x45   : > { %s6564_s19 = sld [smem:[#allocation61_spill]]  ;;  %p162_p4 = scmp.eq.s32.totalorder %s161_s3, 0 }
  0x46   : > { %s164_s22 = sadd.s32 1, %s5386_s24  ;;  %p171_p12 = scmp.ne.s32.totalorder %s5386_s24, %s5382_s30 }
  0x47   : > { %p172_p1 = scmp.eq.s32.totalorder %s5390_s25, 0  ;;  %p4596_p6 = scmp.lt.s32.totalorder %s5390_s25, 2 }
  0x48   : > { %s5614_s23 = scalar_select %p162_p4, %s5386_s24, %s164_s22  }
  0x49   : > { %p173_p5 = por %p172_p1, %p171_p12  ;;  %s5618_s6 = sand.u32 1, %s5390_s25  }
  0x4a   : > { %6565 = sst [smem:[#allocation44_spill]] %s5614_s23  ;;  %s5621_s29 = sand.u32 1, %s5386_s24  }
  0x4b   : > { %4558 = dma.hbm_to_vmem [thread:$0]  (!%p5580_p8), %s6564_s19, 16, %s682_s7, [#allocation22]  }
  0x4c   : > { %s5624_s27 = sshll.u32 %s5390_s25, 4  ;;  %s719_s4 = scalar_lea.vmem [#allocation6], %s5621_s29 }
  0x4d   : > { %s726_s7 = sshll.u32 %s719_s4, 4  ;;  %s6566_s17 = sld [smem:[#allocation50_spill]]  ;;  %s5633_s7 = int_to_ptr.vmem [resolvable:$true] %s726_s7 }
  0x4e   : > { %p5635_p13 = pnand %p4596_p6, %p173_p5 }
  0x50   : > { %s6567_s22 = scalar_select %p5635_p13, 1, 0 }
  0x51   : > { %p5645_p2 = pneg %p5635_p13 }
  0x53   : > { %s5631_s19 = scalar_lea.hbm %s6566_s17, %s5624_s27  ;;  %s4949_s8 = scalar_lea.hbm %s6566_s17, 32 }
  0x54   : > { %s4944_s14 = scalar_lea.hbm %s5631_s19, 16  ;;  %p4950_p10 = scmp.lt.s32.totalorder %s5631_s19, %s6566_s17 }
  0x55   : > { %p4945_p0 = scmp.ne.s32.totalorder %s5631_s19, %s4944_s14  ;;  %p4951_p11 = scmp.lt.s32.totalorder %s4949_s8, %s4944_s14 }
  0x56   : > { %s6568_s4 = scalar_select %p5645_p2, 1, 0 }
  0x57   : > { %p4947_p3 = pnand %p5645_p2, %p4945_p0  ;;  %p4952_p4 = por %p4951_p11, %p4950_p10 }
  0x59   : > { %p4948_p7 = pneg %p4947_p3 }
  0x5b   : > { %p4953_p12 = pnand %p4952_p4, %p4948_p7 }
  0x5d   : > { %4956 = shalt.err (!%p4953_p12)
}
  0x5e   : > { %s4957_s23 = scalar_lea.vmem %s5633_s7, 16  ;;  %s5394_s24 = smov [#allocation6]  }
  0x5f   : > { %p4958_p1 = scmp.ne.s32.totalorder %s5633_s7, %s4957_s23  ;;  %s4962_s3 = sshll.u32 %s5394_s24, 4  ;;  %s4963_s3 = int_to_ptr.vmem [resolvable:$false] %s4962_s3 }
  0x60   : > { %s4964_s2 = scalar_lea.vmem %s4963_s3, 32  ;;  %p4965_p0 = scmp.lt.s32.totalorder %s5633_s7, %s4963_s3 }
  0x61   : > { %p4960_p5 = pnand %p4958_p1, %p5645_p2  ;;  %p4966_p3 = scmp.lt.s32.totalorder %s4964_s2, %s4957_s23 }
  0x63   : > { %p4961_p6 = pneg %p4960_p5  ;;  %p4967_p8 = por %p4966_p3, %p4965_p0 }
  0x65   : > { %p4968_p9 = pnand %p4967_p8, %p4961_p6 }
  0x67   : > { %4971 = shalt.err (!%p4968_p9)
}
  0x68   : > { %s6569_s8 = scalar_lea.sflag [#allocation7], %s5618_s6  ;;  %s4234_s13 = sshll.u32 %s5390_s25, 10 }
  0x69   : > { %4568 = dma.hbm_to_vmem [thread:$0]  (!%p5635_p13), %s5631_s19, 16, %s5633_s7, %s6569_s8  }
  0x6a   : > { %s6570_s9 = sld [smem:[#allocation54_spill]]  ;;  %s6571_s23 = sshll.u32 %s5621_s29, 6 }
  0x6b   : > { %s769_s3 = scalar_lea.vmem [#allocation9], %s6571_s23  ;;  %s6526_s17 = scalar_lea.sflag [#allocation10], %s5618_s6 }
  0x6c   : > { %s776_s2 = sshll.u32 %s769_s3, 4  ;;  %s5677_s2 = int_to_ptr.vmem [resolvable:$true] %s776_s2 }
  0x70   : > { %s5673_s1 = scalar_lea.hbm %s6570_s9, %s4234_s13  ;;  %s4977_s8 = scalar_lea.hbm %s6570_s9, 2048 }
  0x71   : > { %s4972_s30 = scalar_lea.hbm %s5673_s1, 1024  ;;  %p4978_p10 = scmp.lt.s32.totalorder %s5673_s1, %s6570_s9 }
  0x72   : > { %p4973_p8 = scmp.ne.s32.totalorder %s5673_s1, %s4972_s30  ;;  %p4979_p11 = scmp.lt.s32.totalorder %s4977_s8, %s4972_s30 }
  0x74   : > { %p4975_p9 = pnand %p4973_p8, %p5645_p2  ;;  %p4980_p4 = por %p4979_p11, %p4978_p10 }
  0x76   : > { %p4976_p7 = pneg %p4975_p9 }
  0x78   : > { %p4981_p12 = pnand %p4980_p4, %p4976_p7 }
  0x7a   : > { %4984 = shalt.err (!%p4981_p12)
}
  0x7b   : > { %s4985_s24 = scalar_lea.vmem %s5677_s2, 1024  ;;  %s5395_s23 = smov [#allocation9]  }
  0x7c   : > { %p4986_p1 = scmp.ne.s32.totalorder %s5677_s2, %s4985_s24  ;;  %s4990_s3 = sshll.u32 %s5395_s23, 4  ;;  %s4991_s3 = int_to_ptr.vmem [resolvable:$false] %s4990_s3 }
  0x7d   : > { %s4992_s19 = scalar_lea.vmem %s4991_s3, 2048  ;;  %p4993_p0 = scmp.lt.s32.totalorder %s5677_s2, %s4991_s3 }
  0x7e   : > { %p4988_p5 = pnand %p4986_p1, %p5645_p2  ;;  %p4994_p3 = scmp.lt.s32.totalorder %s4992_s19, %s4985_s24 }
  0x80   : > { %p4989_p6 = pneg %p4988_p5  ;;  %p4995_p8 = por %p4994_p3, %p4993_p0 }
  0x82   : > { %p4996_p9 = pnand %p4995_p8, %p4989_p6 }
  0x84   : > { %4999 = shalt.err (!%p4996_p9)
}
  0x85   : > { %s6527_s30 = smov 64   ;;  %s6529_s7 = smov 4  }
  0x86   : > { %4574 = dma.hbm_to_vmem [thread:$0]  (!%p5635_p13), %s5673_s1, 1024, %s5677_s2, %s6526_s17, %s6527_s30, %s6527_s30, %s6529_s7  }
  0x87   : > { %s6572_s11 = sld [smem:[#allocation56_spill]]  ;;  %s806_s24 = scalar_lea.vmem [#allocation12], %s5621_s29 }
  0x88   : > { %s813_s23 = sshll.u32 %s806_s24, 4  ;;  %s4065_s3 = sshll.u32 %s5621_s29, 8  ;;  %s814_s23 = int_to_ptr.vmem [resolvable:$true] %s813_s23 }
  0x89   : > { %s804_s19 = scalar_lea.sflag [#allocation13], %s5618_s6 }
  0x8d   : > { %s5709_s14 = scalar_lea.hbm %s6572_s11, %s5624_s27  ;;  %s5005_s2 = scalar_lea.hbm %s6572_s11, 32 }
  0x8e   : > { %s5000_s9 = scalar_lea.hbm %s5709_s14, 16  ;;  %p5006_p4 = scmp.lt.s32.totalorder %s5709_s14, %s6572_s11 }
  0x8f   : > { %p5001_p7 = scmp.ne.s32.totalorder %s5709_s14, %s5000_s9  ;;  %p5007_p12 = scmp.lt.s32.totalorder %s5005_s2, %s5000_s9 }
  0x91   : > { %p5003_p10 = pnand %p5001_p7, %p5645_p2  ;;  %p5008_p1 = por %p5007_p12, %p5006_p4 }
  0x93   : > { %p5004_p11 = pneg %p5003_p10 }
  0x95   : > { %p5009_p5 = pnand %p5008_p1, %p5004_p11 }
  0x97   : > { %5012 = shalt.err (!%p5009_p5)
}
  0x98   : > { %s5013_s24 = scalar_lea.vmem %s814_s23, 16  ;;  %s5398_s17 = smov [#allocation12]  }
  0x99   : > { %p5014_p6 = scmp.ne.s32.totalorder %s814_s23, %s5013_s24  ;;  %s5018_s30 = sshll.u32 %s5398_s17, 4  ;;  %s5019_s30 = int_to_ptr.vmem [resolvable:$false] %s5018_s30 }
  0x9a   : > { %s5020_s7 = scalar_lea.vmem %s5019_s30, 32  ;;  %p5021_p8 = scmp.lt.s32.totalorder %s814_s23, %s5019_s30 }
  0x9b   : > { %p5016_p0 = pnand %p5014_p6, %p5645_p2  ;;  %p5022_p9 = scmp.lt.s32.totalorder %s5020_s7, %s5013_s24 }
  0x9d   : > { %p5017_p3 = pneg %p5016_p0  ;;  %p5023_p7 = por %p5022_p9, %p5021_p8 }
  0x9f   : > { %p5024_p10 = pnand %p5023_p7, %p5017_p3 }
  0xa1   : > { %5027 = shalt.err (!%p5024_p10)
}
  0xa2   : > { %4580 = dma.hbm_to_vmem [thread:$0]  (!%p5635_p13), %s5709_s14, 16, %s814_s23, %s804_s19  }
  0xa3   : > { %s4235_s9 = sshll.u32 %s5390_s25, 12  ;;  %s856_s30 = scalar_lea.vmem [#allocation15], %s4065_s3 }
  0xa4   : > { %s5736_s17 = scalar_lea.hbm %s6497_s15, %s4235_s9  ;;  %s863_s7 = sshll.u32 %s856_s30, 4  ;;  %s5738_s7 = int_to_ptr.vmem [resolvable:$true] %s863_s7 }
  0xa5   : > { %s853_s2 = scalar_lea.sflag [#allocation16], %s5618_s6  ;;  %s5028_s8 = scalar_lea.hbm %s5736_s17, 4096 }
  0xa6   : > { %p5029_p11 = scmp.ne.s32.totalorder %s5736_s17, %s5028_s8  ;;  %s5033_s23 = scalar_lea.hbm %s6497_s15, 8192 }
  0xa7   : > { %p5034_p1 = scmp.lt.s32.totalorder %s5736_s17, %s6497_s15  ;;  %p5035_p5 = scmp.lt.s32.totalorder %s5033_s23, %s5028_s8 }
  0xa8   : > { %p5031_p4 = pnand %p5029_p11, %p5645_p2 }
  0xa9   : > { %p5036_p6 = por %p5035_p5, %p5034_p1 }
  0xaa   : > { %p5032_p12 = pneg %p5031_p4 }
  0xac   : > { %p5037_p0 = pnand %p5036_p6, %p5032_p12 }
  0xae   : > { %5040 = shalt.err (!%p5037_p0)
}
  0xaf   : > { %s5041_s3 = scalar_lea.vmem %s5738_s7, 4096  ;;  %s5399_s9 = smov [#allocation15]  }
  0xb0   : > { %p5042_p3 = scmp.ne.s32.totalorder %s5738_s7, %s5041_s3  ;;  %s5046_s5 = sshll.u32 %s5399_s9, 4  ;;  %s5047_s5 = int_to_ptr.vmem [resolvable:$false] %s5046_s5 }
  0xb1   : > { %s5048_s1 = scalar_lea.vmem %s5047_s5, 8192  ;;  %p5049_p7 = scmp.lt.s32.totalorder %s5738_s7, %s5047_s5 }
  0xb2   : > { %p5044_p8 = pnand %p5042_p3, %p5645_p2  ;;  %p5050_p10 = scmp.lt.s32.totalorder %s5048_s1, %s5041_s3 }
  0xb4   : > { %p5045_p9 = pneg %p5044_p8  ;;  %p5051_p11 = por %p5050_p10, %p5049_p7 }
  0xb6   : > { %p5052_p4 = pnand %p5051_p11, %p5045_p9 }
  0xb8   : > { %5055 = shalt.err (!%p5052_p4)
}
  0xb9   : > { %s6573_s30 = smov 4   ;;  %s6574_s8 = smov 64  }
  0xba   : > { %4586 = dma.hbm_to_vmem [thread:$0]  (!%p5635_p13), %s5736_s17, 4096, %s5738_s7, %s853_s2, %s6574_s8, %s6574_s8, %s6573_s30  }
  0xbb   : > { %s5400_s14 = smov [#allocation3]   ;;  %s5401_s23 = smov [#allocation20]  }
  0xbc   : > { %s636_s25 = sshll.u32 %s5400_s14, 4  ;;  %s670_s13 = sshll.u32 %s5401_s23, 4  ;;  %s637_s25 = int_to_ptr.vmem [resolvable:$true] %s636_s25  ;;  %s671_s13 = int_to_ptr.vmem [resolvable:$true] %s670_s13 }
  0xbd   : > { %s5067_s24 = scalar_lea.vmem %s637_s25, 1536  ;;  %p6575_p1 = scmp.ne.s32.totalorder %s6562_s0, 0 }
  0xbe   : > { %p5068_p12 = scmp.ne.s32.totalorder %s637_s25, %s5067_s24  ;;  %p5075_p0 = scmp.lt.s32.totalorder %s637_s25, %s637_s25 }
  0xbf   : > { %p5076_p3 = scmp.lt.s32.totalorder %s5067_s24, %s5067_s24 }
  0xc0   : > { %p5070_p5 = pnand %p5068_p12, %p6575_p1 }
  0xc1   : > { %p5077_p8 = por %p5076_p3, %p5075_p0 }
  0xc2   : > { %p5071_p6 = pneg %p5070_p5 }
  0xc4   : > { %p5078_p9 = pnand %p5077_p8, %p5071_p6 }
  0xc6   : > { %5081 = shalt.err (!%p5078_p9)
}
  0xc7   : > { %p6576_p7 = scmp.ne.s32.totalorder %s6560_s28, 0  ;;  %s6577_s3 = sld [smem:[#allocation46_spill]] }
  0xc8   : > { %s5093_s9 = scalar_lea.vmem %s671_s13, 16  ;;  %s5100_s5 = scalar_lea.vmem %s671_s13, 32 }
  0xc9   : > { %p5094_p10 = scmp.ne.s32.totalorder %s671_s13, %s5093_s9  ;;  %p5101_p12 = scmp.lt.s32.totalorder %s671_s13, %s671_s13 }
  0xca   : > { %p5102_p5 = scmp.lt.s32.totalorder %s5100_s5, %s5093_s9 }
  0xcb   : > { %p5096_p11 = pnand %p5094_p10, %p6575_p1 }
  0xcc   : > { %p5103_p6 = por %p5102_p5, %p5101_p12 }
  0xcd   : > { %4549 = dma.hbm_to_vmem [thread:$0]  (!%p6576_p7), %s6577_s3, 1536, %s637_s25, [#allocation4], %s6574_s8, %s6574_s8, %s6573_s30  }
  0xce   : > { %p5097_p4 = pneg %p5096_p11 }
  0xd0   : > { %p5104_p0 = pnand %p5103_p6, %p5097_p4 }
  0xd2   : > { %5107 = shalt.err (!%p5104_p0)
}
  0xd3   : > { %4555 = dma.hbm_to_vmem [thread:$0]  (!%p6576_p7), %s6500_s18, 16, %s671_s13, [#allocation19]  }
  0xd4   : > { %s5402_s25 = smov [#allocation23]   ;;  %s5403_s24 = smov [#allocation24]  }
  0xd5   : > { %s692_s23 = sshll.u32 %s5402_s25, 4  ;;  %s702_s17 = sshll.u32 %s5403_s24, 4  ;;  %s693_s23 = int_to_ptr.vmem [resolvable:$true] %s692_s23  ;;  %s703_s17 = int_to_ptr.vmem [resolvable:$true] %s702_s17 }
  0xd6   : > { %s5119_s7 = scalar_lea.vmem %s693_s23, 16  ;;  %s5126_s3 = scalar_lea.vmem %s693_s23, 32 }
  0xd7   : > { %p5120_p3 = scmp.ne.s32.totalorder %s693_s23, %s5119_s7  ;;  %p5127_p10 = scmp.lt.s32.totalorder %s693_s23, %s693_s23 }
  0xd8   : > { %p5128_p11 = scmp.lt.s32.totalorder %s5126_s3, %s5119_s7 }
  0xd9   : > { %p5122_p8 = pnand %p5120_p3, %p6575_p1 }
  0xda   : > { %p5129_p4 = por %p5128_p11, %p5127_p10 }
  0xdb   : > { %p5123_p9 = pneg %p5122_p8 }
  0xdd   : > { %p5130_p12 = pnand %p5129_p4, %p5123_p9 }
  0xdf   : > { %5133 = shalt.err (!%p5130_p12)
}
  0xe0   : > { %4561 = dma.hbm_to_vmem [thread:$0]  (!%p6576_p7), %s6502_s20, 16, %s693_s23, [#allocation22]  }
  0xe1   : > { %s5145_s5 = scalar_lea.vmem %s703_s17, 1024  ;;  %p5153_p3 = scmp.lt.s32.totalorder %s703_s17, %s703_s17 }
  0xe2   : > { %p5146_p5 = scmp.ne.s32.totalorder %s703_s17, %s5145_s5  ;;  %p5154_p8 = scmp.lt.s32.totalorder %s5145_s5, %s5145_s5 }
  0xe4   : > { %p5148_p6 = pnand %p5146_p5, %p6575_p1  ;;  %p5155_p13 = por %p5154_p8, %p5153_p3 }
  0xe6   : > { %p5149_p0 = pneg %p5148_p6 }
  0xe8   : > { %p5156_p2 = pnand %p5155_p13, %p5149_p0 }
  0xea   : > { %5159 = shalt.err (!%p5156_p2)
}
  0xeb   : > { %4564 = dma.hbm_to_vmem [thread:$0]  (!%p6576_p7), %s6503_s21, 1024, %s703_s17, [#allocation25], %s6574_s8, %s6574_s8, %s6573_s30  }
  0xec   : > { %s6578_s23 = sld [smem:[#allocation51_spill]]  ;;  %s736_s7 = scalar_lea.vmem [#allocation8], %s5621_s29 }
  0xed   : > { %s743_s3 = sshll.u32 %s736_s7, 4  ;;  %p6579_p2 = scmp.ne.s32.totalorder %s6568_s4, 0  ;;  %s744_s3 = int_to_ptr.vmem [resolvable:$true] %s743_s3 }
  0xf2   : > { %s741_s24 = scalar_lea.hbm %s6578_s23, %s5624_s27  ;;  %s5165_s5 = scalar_lea.hbm %s6578_s23, 32 }
  0xf3   : > { %s5160_s9 = scalar_lea.hbm %s741_s24, 16  ;;  %p5166_p7 = scmp.lt.s32.totalorder %s741_s24, %s6578_s23 }
  0xf4   : > { %p5161_p13 = scmp.ne.s32.totalorder %s741_s24, %s5160_s9  ;;  %p5167_p10 = scmp.lt.s32.totalorder %s5165_s5, %s5160_s9 }
  0xf6   : > { %p5163_p1 = pnand %p5161_p13, %p6579_p2  ;;  %p5168_p11 = por %p5167_p10, %p5166_p7 }
  0xf8   : > { %p5164_p9 = pneg %p5163_p1 }
  0xfa   : > { %p5169_p4 = pnand %p5168_p11, %p5164_p9 }
  0xfc   : > { %5172 = shalt.err (!%p5169_p4)
}
  0xfd   : > { %s5173_s30 = scalar_lea.vmem %s744_s3, 16  ;;  %s5404_s8 = smov [#allocation8]  }
  0xfe   : > { %p5174_p12 = scmp.ne.s32.totalorder %s744_s3, %s5173_s30  ;;  %s5178_s17 = sshll.u32 %s5404_s8, 4  ;;  %s5179_s17 = int_to_ptr.vmem [resolvable:$false] %s5178_s17 }
  0xff   : > { %s5180_s0 = scalar_lea.vmem %s5179_s17, 32  ;;  %p5181_p0 = scmp.lt.s32.totalorder %s744_s3, %s5179_s17 }
 0x100   : > { %p5176_p5 = pnand %p5174_p12, %p6579_p2  ;;  %p5182_p3 = scmp.lt.s32.totalorder %s5180_s0, %s5173_s30 }
 0x102   : > { %p5177_p6 = pneg %p5176_p5  ;;  %p5183_p8 = por %p5182_p3, %p5181_p0 }
 0x104   : > { %p5184_p13 = pnand %p5183_p8, %p5177_p6 }
 0x106   : > { %5187 = shalt.err (!%p5184_p13)
}
 0x107   : > { %p6580_p1 = scmp.ne.s32.totalorder %s6567_s22, 0  ;;  %s6581_s25 = scalar_lea.sflag [#allocation7], %s5618_s6 }
 0x108   : > { %s6582_s10 = sld [smem:[#allocation55_spill]]  ;;  %s789_s13 = scalar_lea.vmem [#allocation11], %s5621_s29 }
 0x109   : > { %4571 = dma.hbm_to_vmem [thread:$0]  (!%p6580_p1), %s741_s24, 16, %s744_s3, %s6581_s25  }
 0x10a   : > { %s796_s5 = sshll.u32 %s789_s13, 4  ;;  %s797_s5 = int_to_ptr.vmem [resolvable:$true] %s796_s5 }
 0x10e   : > { %s794_s28 = scalar_lea.hbm %s6582_s10, %s5624_s27  ;;  %s5193_s8 = scalar_lea.hbm %s6582_s10, 32 }
 0x10f   : > { %s5188_s1 = scalar_lea.hbm %s794_s28, 16  ;;  %p5194_p11 = scmp.lt.s32.totalorder %s794_s28, %s6582_s10 }
 0x110   : > { %p5189_p9 = scmp.ne.s32.totalorder %s794_s28, %s5188_s1  ;;  %p5195_p4 = scmp.lt.s32.totalorder %s5193_s8, %s5188_s1 }
 0x112   : > { %p5191_p7 = pnand %p5189_p9, %p6579_p2  ;;  %p5196_p12 = por %p5195_p4, %p5194_p11 }
 0x114   : > { %p5192_p10 = pneg %p5191_p7 }
 0x116   : > { %p5197_p5 = pnand %p5196_p12, %p5192_p10 }
 0x118   : > { %5200 = shalt.err (!%p5197_p5)
}
 0x119   : > { %s5201_s24 = scalar_lea.vmem %s797_s5, 16  ;;  %s5405_s3 = smov [#allocation11]  }
 0x11a   : > { %p5202_p6 = scmp.ne.s32.totalorder %s797_s5, %s5201_s24  ;;  %s5206_s25 = sshll.u32 %s5405_s3, 4  ;;  %s5207_s25 = int_to_ptr.vmem [resolvable:$false] %s5206_s25 }
 0x11b   : > { %s5208_s7 = scalar_lea.vmem %s5207_s25, 32  ;;  %p5209_p8 = scmp.lt.s32.totalorder %s797_s5, %s5207_s25 }
 0x11c   : > { %p5204_p0 = pnand %p5202_p6, %p6579_p2  ;;  %p5210_p13 = scmp.lt.s32.totalorder %s5208_s7, %s5201_s24 }
 0x11e   : > { %p5205_p3 = pneg %p5204_p0  ;;  %p5211_p9 = por %p5210_p13, %p5209_p8 }
 0x120   : > { %p5212_p7 = pnand %p5211_p9, %p5205_p3 }
 0x122   : > { %5215 = shalt.err (!%p5212_p7)
}
 0x123   : > { %s6583_s9 = scalar_lea.sflag [#allocation10], %s5618_s6  ;;  %s6584_s12 = sld [smem:[#allocation57_spill]] }
 0x124   : > { %4577 = dma.hbm_to_vmem [thread:$0]  (!%p6580_p1), %s794_s28, 16, %s797_s5, %s6583_s9  }
 0x125   : > { %s823_s30 = scalar_lea.vmem [#allocation14], %s5621_s29 }
 0x126   : > { %s830_s8 = sshll.u32 %s823_s30, 4  ;;  %s831_s8 = int_to_ptr.vmem [resolvable:$true] %s830_s8 }
 0x129   : > { %s828_s14 = scalar_lea.hbm %s6584_s12, %s5624_s27  ;;  %s5221_s3 = scalar_lea.hbm %s6584_s12, 32 }
 0x12a   : > { %s5216_s17 = scalar_lea.hbm %s828_s14, 16  ;;  %p5222_p12 = scmp.lt.s32.totalorder %s828_s14, %s6584_s12 }
 0x12b   : > { %p5217_p10 = scmp.ne.s32.totalorder %s828_s14, %s5216_s17  ;;  %p5223_p5 = scmp.lt.s32.totalorder %s5221_s3, %s5216_s17 }
 0x12d   : > { %p5219_p11 = pnand %p5217_p10, %p6579_p2  ;;  %p5224_p6 = por %p5223_p5, %p5222_p12 }
 0x12f   : > { %p5220_p4 = pneg %p5219_p11 }
 0x131   : > { %p5225_p0 = pnand %p5224_p6, %p5220_p4 }
 0x133   : > { %5228 = shalt.err (!%p5225_p0)
}
 0x134   : > { %s5229_s28 = scalar_lea.vmem %s831_s8, 16  ;;  %s5406_s5 = smov [#allocation14]  }
 0x135   : > { %p5230_p3 = scmp.ne.s32.totalorder %s831_s8, %s5229_s28  ;;  %s5234_s9 = sshll.u32 %s5406_s5, 4  ;;  %s5235_s9 = int_to_ptr.vmem [resolvable:$false] %s5234_s9 }
 0x136   : > { %s5236_s13 = scalar_lea.vmem %s5235_s9, 32  ;;  %p5237_p9 = scmp.lt.s32.totalorder %s831_s8, %s5235_s9 }
 0x137   : > { %p5232_p8 = pnand %p5230_p3, %p6579_p2  ;;  %p5238_p7 = scmp.lt.s32.totalorder %s5236_s13, %s5229_s28 }
 0x139   : > { %p5233_p13 = pneg %p5232_p8  ;;  %p5239_p10 = por %p5238_p7, %p5237_p9 }
 0x13b   : > { %p5240_p11 = pnand %p5239_p10, %p5233_p13 }
 0x13d   : > { %5243 = shalt.err (!%p5240_p11)
}
 0x13e   : > { %4583 = dma.hbm_to_vmem [thread:$0]  (!%p6580_p1), %s828_s14, 16, %s831_s8, %s804_s19  }
 0x13f   : > { %s881_s17 = scalar_lea.hbm %s6498_s16, %s5624_s27  ;;  %s876_s0 = scalar_lea.vmem [#allocation17], %s5621_s29 }
 0x140   : > { %s883_s24 = sshll.u32 %s876_s0, 4  ;;  %s5244_s3 = scalar_lea.hbm %s881_s17, 16  ;;  %s884_s24 = int_to_ptr.vmem [resolvable:$true] %s883_s24 }
 0x141   : > { %p5245_p4 = scmp.ne.s32.totalorder %s881_s17, %s5244_s3  ;;  %s5249_s28 = scalar_lea.hbm %s6498_s16, 32 }
 0x142   : > { %p5250_p6 = scmp.lt.s32.totalorder %s881_s17, %s6498_s16  ;;  %p5251_p0 = scmp.lt.s32.totalorder %s5249_s28, %s5244_s3 }
 0x143   : > { %p5247_p12 = pnand %p5245_p4, %p6579_p2 }
 0x144   : > { %p5252_p3 = por %p5251_p0, %p5250_p6 }
 0x145   : > { %p5248_p5 = pneg %p5247_p12 }
 0x147   : > { %p5253_p8 = pnand %p5252_p3, %p5248_p5 }
 0x149   : > { %5256 = shalt.err (!%p5253_p8)
}
 0x14a   : > { %s5257_s29 = scalar_lea.vmem %s884_s24, 16  ;;  %s5407_s27 = smov [#allocation17]  }
 0x14b   : > { %p5258_p13 = scmp.ne.s32.totalorder %s884_s24, %s5257_s29  ;;  %s5262_s19 = sshll.u32 %s5407_s27, 4  ;;  %s5263_s19 = int_to_ptr.vmem [resolvable:$false] %s5262_s19 }
 0x14c   : > { %s5264_s14 = scalar_lea.vmem %s5263_s19, 32  ;;  %p5265_p10 = scmp.lt.s32.totalorder %s884_s24, %s5263_s19 }
 0x14d   : > { %p5260_p9 = pnand %p5258_p13, %p6579_p2  ;;  %p5266_p11 = scmp.lt.s32.totalorder %s5264_s14, %s5257_s29 }
 0x14f   : > { %p5261_p7 = pneg %p5260_p9  ;;  %p5267_p4 = por %p5266_p11, %p5265_p10 }
 0x151   : > { %p5268_p12 = pnand %p5267_p4, %p5261_p7 }
 0x153   : > { %5271 = shalt.err (!%p5268_p12)
}
 0x154   : > { %4589 = dma.hbm_to_vmem [thread:$0]  (!%p6580_p1), %s881_s17, 16, %s884_s24, %s853_s2  }
 0x155   : > { %p6585_p5 = scmp.ne.s32.totalorder %s6559_s26, 0 }
 0x156   : > { %s6586_s4 = sld [smem:[#allocation41_spill]] (!%p6585_p5) }
 0x157   : > { %892 = sbr.rel (%p6585_p5) target bundleno = 4167 (0x1047), region = 108 }
 0x15c   : > { %p6587_p2 = scmp.eq.s32.totalorder %s6586_s4, 0 }
 0x15e   : > { %5337 = dma.done.wait (%p6587_p2), [#allocation4], 1536   ;;  %p6588_p6 = pmov %p6587_p2 }
 0x15f   : > { %s6589_s8 = sld [smem:[#allocation39_spill]]  ;;  %s898_s1 = sand.u32 1, %s6586_s4  }
 0x160   : > { %5339 = vsyncadd (%p6588_p6), [#allocation4], 4294965760  ;;  %s6590_s13 = sld [smem:[#allocation42_spill]]  ;;  %s899_s22 = scalar_lea.sflag [#allocation7], %s898_s1 }
 0x165   : > { %s5884_s30 = sand.u32 1, %s6589_s8  }
 0x166   : > { %p6591_p0 = scmp.ne.s32.totalorder %s6590_s13, 0 }
 0x168   : > { %5341 = dma.done.wait (%p6591_p0), %s899_s22, 32  }
 0x169   : > { %5343 = vsyncadd (%p6591_p0), %s899_s22, 4294967264  ;;  %s4071_s26 = sshll.u32 %s5884_s30, 6  ;;  %s915_s2 = scalar_lea.sflag [#allocation10], %s898_s1 }
 0x16a   : > { %s5893_s17 = scalar_lea.vmem [#allocation9], %s4071_s26 }
 0x16b   : > { %5345 = dma.done.wait (%p6591_p0), %s915_s2, 1040  }
 0x16c   : > { %5347 = vsyncadd (%p6591_p0), %s915_s2, 4294966256  ;;  %s932_s3 = scalar_lea.sflag [#allocation13], %s898_s1 }
 0x16d   : > { %5349 = dma.done.wait (%p6591_p0), %s932_s3, 32  }
 0x16e   : > { %5351 = vsyncadd (%p6591_p0), %s932_s3, 4294967264  ;;  %s4072_s7 = sshll.u32 %s5884_s30, 8  ;;  %s948_s5 = scalar_lea.sflag [#allocation16], %s898_s1 }
 0x16f   : > { %s5907_s9 = scalar_lea.vmem [#allocation15], %s4072_s7 }
 0x170   : > { %5353 = dma.done.wait (%p6591_p0), %s948_s5, 4112  }
 0x171   : > { %5355 = vsyncadd (%p6591_p0), %s948_s5, 4294963184  ;;  %p6592_p1 = pmov %p6587_p2 }
 0x173   : > { %5357 = dma.done.wait (%p6592_p1), [#allocation19], 32   ;;  %p6593_p3 = pmov %p6592_p1 }
 0x174   : > { %p6594_p8 = pmov %p6592_p1 }
 0x175   : > { %5359 = vsyncadd (%p6593_p3), [#allocation19], 4294967264 }
 0x176   : > { %5361 = dma.done.wait (%p6594_p8), [#allocation22], 32   ;;  %p6595_p13 = pmov %p6592_p1 }
 0x177   : > { %p6596_p9 = pmov %p6592_p1 }
 0x178   : > { %5363 = vsyncadd (%p6595_p13), [#allocation22], 4294967264 }
 0x179   : > { %5365 = dma.done.wait (%p6596_p9), [#allocation25], 1024   ;;  %p6597_p7 = pmov %p6592_p1 }
 0x17a   : > { %p1084_p10 = scmp.lt.s32.totalorder %s6586_s4, 1  ;;  %s6598_s22 = sld [smem:[#allocation58_spill]] }
 0x17b   : > { %5367 = vsyncadd (%p6597_p7), [#allocation25], 4294966272  ;;  %s6599_s7 = sld [smem:[#allocation52_spill]]  ;;  %p6602_p11 = scmp.ne.s32.totalorder %s6586_s4, 0 }
 0x17c   : > { %s1085_s27 = scalar_select %p1084_p10, %s6586_s4, 1 }
 0x17d   : > { %s6600_s24 = sld [smem:[#allocation53_spill]] }
 0x17e   : > { %s4496_s19 = smul.u32 192, %s1085_s27  ;;  %s4236_s14 = sshll.u32 %s1085_s27, 8 }
 0x17f   : > { %s4497_s8 = smul.u32 3, %s1085_s27  ;;  %s4081_s29 = sshll.u32 %s1085_s27, 2 }
 0x180   : > { %s5931_s26 = scalar_lea.vmem %s6598_s22, %s4236_s14  ;;  %s6601_s11 = sld [smem:[#allocation59_spill]] }
 0x181   : > { %s5936_s5 = scalar_lea.vmem %s6599_s7, %s4496_s19  ;;  %s6603_s10 = sld [smem:[#allocation45_spill]] (!%p6602_p11) }
 0x182   : > { %1106 = sbr.rel (%p6602_p11) target bundleno = 642 (0x282), region = 168  ;;  %s6605_s14 = sld [smem:[#allocation47_spill]] (!%p6602_p11) }
 0x183   : > { %s5941_s6 = scalar_lea.vmem %s6600_s24, %s4497_s8  ;;  %s6606_s1 = sld [smem:[#allocation48_spill]] (!%p6602_p11) }
 0x186   : > { %s5946_s12 = scalar_lea.vmem %s6601_s11, %s4081_s29  ;;  %s6604_s29 = sld [smem:[#allocation49_spill]] (!%p6602_p11) }
 0x187   : > { %v4659_v0 = vld [vmem:[#allocation3 + $0x38] sm:$0xff]   ;;  %v5408_v1 = vmov 0   ;;  %v4660_v2 = vld [vmem:[#allocation3 + $0x30] sm:$0xff]   ;;  %v4661_v3 = vld [vmem:[#allocation3 + $0x28] sm:$0xff]   ;;  %vm1214_vm0 = vcmask 523264   ;;  %vm1271_vm1 = vcmask 1040384  }
 0x188   : > { %1218 = vmatprep.subr.bf16.mxu0 %v5408_v1  ;;  %v4662_v4 = vld [vmem:[#allocation3 + $0x20] sm:$0xff]   ;;  %v1108_v5 = vld [vmem:[%s6603_s10 + $0x8] sm:$0xff]  ;;  %v4664_v8 = vld [vmem:[#allocation3 + $0x10] sm:$0xff]   ;;  %vm1273_vm2 = vcmask 1044480  }
 0x189   : > { %1219 = vmatpush1.bf16.msra.mxu0 %v4659_v0  ;;  %v1110_v6 = vpack.c.bf16 %v1108_v5, %v1108_v5  ;;  %v4663_v7 = vld [vmem:[#allocation3 + $0x18] sm:$0xff]   ;;  %v4665_v9 = vld [vmem:[#allocation3 + $0x8] sm:$0xff]   ;;  %v4666_v10 = vld [vmem:[#allocation3] sm:$0xff]  }
 0x18a   : > { %1220 = vmatprep.subr.bf16.mxu0 %v5408_v1  ;;  %v4667_v11 = vld [vmem:[#allocation3 + $0x58] sm:$0xff]   ;;  %v4668_v12 = vld [vmem:[#allocation3 + $0x50] sm:$0xff]   ;;  %v4669_v13 = vld [vmem:[#allocation3 + $0x48] sm:$0xff]  }
 0x18b   : > { %4096 = vmatprep.mubr.msk.bf16.mxu0 %vm1214_vm0, %v1110_v6  ;;  %v4670_v14 = vld [vmem:[#allocation3 + $0x40] sm:$0xff]   ;;  %v1107_v15 = vld [vmem:[%s6603_s10] sm:$0xff] }
 0x18c   : > { %v1109_v16 = vpack.c.bf16 %v1107_v15, %v1107_v15  ;;  %v1259_v17 = vld [vmem:[%s6604_s29] sm:$0xf] }
 0x18d   : > { %1221 = vmatpush1.bf16.msra.mxu0 %v4660_v2  ;;  %v4083_v18 = vld [vmem:[%s6605_s14] ss:$0 sm:$0xff]  ;;  %v1262_v19 = vrot.slane %v1259_v17, 4 }
 0x18e   : > { %1222 = vmatprep.subr.bf16.mxu0 %v5408_v1  ;;  %v1258_v25 = vld [vmem:[%s6606_s1] sm:$0x1] }
 0x191   : > { %1223 = vmatpush1.bf16.msra.mxu0 %v4661_v3 }
 0x192   : > { %1224 = vmatprep.subr.bf16.mxu0 %v5408_v1 }
 0x195   : > { %1225 = vmatpush1.bf16.msra.mxu0 %v4662_v4 }
 0x196   : > { %1226 = vmatprep.subr.bf16.mxu0 %v5408_v1 }
 0x199   : > { %1227 = vmatpush1.bf16.msra.mxu0 %v4663_v7 }
 0x19a   : > { %1228 = vmatprep.subr.bf16.mxu0 %v5408_v1 }
 0x19d   : > { %1229 = vmatpush1.bf16.msra.mxu0 %v4664_v8 }
 0x19e   : > { %1230 = vmatprep.subr.bf16.mxu0 %v5408_v1 }
 0x1a1   : > { %1231 = vmatpush1.bf16.msra.mxu0 %v4665_v9 }
 0x1a2   : > { %1232 = vmatprep.subr.bf16.mxu0 %v5408_v1 }
 0x1a5   : > { %1233 = vmatpush1.bf16.msra.mxu0 %v4666_v10 }
 0x1a6   : > { %1242 = vmatprep.subr.bf16.mxu0 %v5408_v1 }
 0x1a9   : > { %1243 = vmatpush2.bf16.msra.mxu0 %v4667_v11 }
 0x1aa   : > { %1244 = vmatprep.subr.bf16.mxu0 %v5408_v1 }
 0x1ad   : > { %1245 = vmatpush2.bf16.msra.mxu0 %v4668_v12 }
 0x1ae   : > { %1246 = vmatprep.subr.bf16.mxu0 %v5408_v1 }
 0x1b1   : > { %1247 = vmatpush2.bf16.msra.mxu0 %v4669_v13 }
 0x1b2   : > { %1248 = vmatprep.subr.bf16.mxu0 %v5408_v1 }
 0x1b5   : > { %1249 = vmatpush2.bf16.msra.mxu0 %v4670_v14 }
 0x1b8   : > { %1251 = vmatmul.mubr.bf16.vlgmr.msra.gmra.mxu0 %v1109_v16 }
 0x278   : > { %v1252_v20 = vpop.f32.mrf.mxu0 }
 0x279   : > { %v1253_v21 = vadd.f32 %v4083_v18, %v1252_v20 }
 0x27a   : > { %v1254_v22 = vpop.f32.mrf.mxu0 }
 0x27b   : > { %v1260_v23 = vadd.f32 %v1259_v17, %v1253_v21  ;;  %v1264_v24 = vadd.f32 %v1262_v19, %v1253_v21 }
 0x27c   : > { %v1255_v26 = vpop.f32.mrf.mxu0 }
 0x27d   : > { %v1266_v27 = vrot.slane %v1260_v23, 7  ;;  %v1269_v28 = vrot.slane %v1264_v24, 3 }
 0x27e   : > { %v1256_v29 = vpop.f32.mrf.mxu0 }
 0x27f   : > { %v1272_v30 = vsel %vm1271_vm1, %v1258_v25, %v1266_v27  ;;  %v1275_v31 = vsel %vm1271_vm1, %v1258_v25, %v1269_v28 }
 0x280   : > { %v1274_v32 = vsel %vm1273_vm2, %v1272_v30, 0.0  ;;  %v1276_v33 = vsel %vm1273_vm2, %v1275_v31, 0.0 }
 0x281   : > { %1277 = vst [vmem:[#allocation2] sm:$0xff] %v1274_v32  ;;  %1278 = vst [vmem:[#allocation2 + $0x8] sm:$0xff] %v1276_v33 }
 0x282 PF: > { %v4686_v36 = vld [vmem:[%s5936_s5 + $0xac] ss:$12 sps:$4 sm:$0xff]   ;;  %v4688_v37 = vld [vmem:[%s5936_s5 + $0xa8] ss:$12 sps:$4 sm:$0xff]   ;;  %v5409_v38 = vmov 0.0   ;;  %v5410_v61 = vmov 0   ;;  %v1357_v23 = vlaneseq }
 0x283   : > { %4340 = vmatprep.subr.bf16.mxu1 %v5409_v38  ;;  %v4689_v39 = vld [vmem:[%s5936_s5 + $0xb0] ss:$12 sps:$4 sm:$0xff]   ;;  %1500 = vmatprep.subr.bf16.mxu0 %v4686_v36  ;;  %v4690_v48 = vld [vmem:[%s5936_s5 + $0x94] ss:$12 sps:$4 sm:$0xff]   ;;  %v4693_v50 = vld [vmem:[%s5936_s5 + $0x98] ss:$12 sps:$4 sm:$0xff]  }
 0x284   : > { %1501 = vmatpush1.bf16.msra.mxu0 %v4688_v37  ;;  %4341 = vmatpush3.bf16.msra.mxu1 %v4689_v39  ;;  %v4692_v49 = vld [vmem:[%s5936_s5 + $0x90] ss:$12 sps:$4 sm:$0xff]   ;;  %v4696_v52 = vld [vmem:[%s5936_s5 + $0x78] ss:$12 sps:$4 sm:$0xff]   ;;  %v4697_v53 = vld [vmem:[%s5936_s5 + $0x80] ss:$12 sps:$4 sm:$0xff]  }
 0x285   : > { %4342 = vmatprep.subr.bf16.mxu1 %v5409_v38  ;;  %1502 = vmatprep.subr.bf16.mxu0 %v4690_v48  ;;  %v4694_v51 = vld [vmem:[%s5936_s5 + $0x7c] ss:$12 sps:$4 sm:$0xff]   ;;  %v4698_v54 = vld [vmem:[%s5936_s5 + $0x64] ss:$12 sps:$4 sm:$0xff]   ;;  %v4700_v55 = vld [vmem:[%s5936_s5 + $0x60] ss:$12 sps:$4 sm:$0xff]  }
 0x286   : > { %v4701_v56 = vld [vmem:[%s5936_s5 + $0x68] ss:$12 sps:$4 sm:$0xff]   ;;  %v4702_v57 = vld [vmem:[%s5936_s5 + $0x4c] ss:$12 sps:$4 sm:$0xff]   ;;  %v4705_v59 = vld [vmem:[%s5936_s5 + $0x50] ss:$12 sps:$4 sm:$0xff]   ;;  %1532 = vmatprep.mubr.bf16.mxu0 %v5410_v61 }
 0x287   : > { %v4704_v58 = vld [vmem:[%s5936_s5 + $0x48] ss:$12 sps:$4 sm:$0xff]   ;;  %vm5411_vm3 = vmmov 0   ;;  %v4708_v62 = vld [vmem:[%s5936_s5 + $0x30] ss:$12 sps:$4 sm:$0xff]   ;;  %s6607_s22 = scalar_lea.vmem [#allocation6], %s5884_s30 }
 0x288   : > { %v1279_v34 = vld [vmem:[#allocation2] sm:$0xff]  ;;  %v1280_v35 = vld [vmem:[#allocation2 + $0x8] sm:$0xff]  ;;  %1503 = vmatpush1.bf16.msra.mxu0 %v4692_v49  ;;  %4343 = vmatpush3.bf16.msra.mxu1 %v4693_v50  ;;  %s6608_s2 = scalar_lea.vmem [#allocation8], %s5884_s30  ;;  %v6020_v24 = vshrl.u32 %v1357_v23, 7  ;;  %vm1592_vm4 = vcmask 261120   ;;  %vm1655_vm5 = vcmask 1043456  }
 0x289   : > { %1283 = vadd.xlane.f32.xlu0 %v1279_v34  ;;  %4344 = vmatprep.subr.bf16.mxu1 %v5409_v38  ;;  %v4706_v60 = vld [vmem:[%s5936_s5 + $0x34] ss:$12 sps:$4 sm:$0xff]   ;;  %v4709_v63 = vld [vmem:[%s5936_s5 + $0x38] ss:$12 sps:$4 sm:$0xff]   ;;  %v4710_v0 = vld [vmem:[%s5936_s5 + $0x1c] ss:$12 sps:$4 sm:$0xff]  }
 0x28a   : > { %1504 = vmatprep.subr.bf16.mxu0 %v4694_v51  ;;  %4356 = vmatprep.mubr.msk.bf16.mxu1 %vm5411_vm3, %v5409_v38  ;;  %v4712_v1 = vld [vmem:[%s5936_s5 + $0x18] ss:$12 sps:$4 sm:$0xff]   ;;  %v4713_v2 = vld [vmem:[%s5936_s5 + $0x20] ss:$12 sps:$4 sm:$0xff]   ;;  %v4717_v5 = vld [vmem:[%s5936_s5 + $0x8] ss:$12 sps:$4 sm:$0xff]  }
 0x28b   : > { %v4714_v3 = vld [vmem:[%s5936_s5 + $0x4] ss:$12 sps:$4 sm:$0xff]   ;;  %v4716_v4 = vld [vmem:[%s5936_s5] ss:$12 sps:$4 sm:$0xff]   ;;  %v1363_v25 = vsub.s32 1, %v6020_v24  ;;  %v1359_v26 = vsub.s32 0, %v6020_v24 }
 0x28c   : > { %1505 = vmatpush1.bf16.msra.mxu0 %v4696_v52  ;;  %4345 = vmatpush3.bf16.msra.mxu1 %v4697_v53  ;;  %v4097_v14 = vld [vmem:[%s6607_s22] ss:$0 sm:$0xff]  ;;  %v1367_v28 = vsub.s32 2, %v6020_v24  ;;  %v1585_v51 = vand.u32 127, %v1357_v23  ;;  %v5412_v52 = vmov -1e+30  }
 0x28d   : > { %1285 = vadd.xlane.f32.xlu0 %v1280_v35  ;;  %4346 = vmatprep.subr.bf16.mxu1 %v5409_v38  ;;  %v4098_v18 = vld [vmem:[%s6608_s2] ss:$0 sm:$0xff]  ;;  %vm1639_vm7 = vcmask 64512   ;;  %s5414_s3 = smov 32   ;;  %s5415_s7 = smov 64   ;;  %vm2045_vm8 = vcmask 523264  }
 0x28e   : > { %1506 = vmatprep.subr.bf16.mxu0 %v4698_v54  ;;  %v1355_v27 = vld [vmem:[%s5941_s6] sm:$0x7]  ;;  %vm1586_vm6 = vcmp.lt.s32.totalorder %v1585_v51, 5  ;;  %s5413_s6 = smov 96   ;;  %vm2047_vm9 = vcmask 785408   ;;  %s6611_s5 = scalar_lea.vmem [#allocation14], %s5884_s30 }
 0x28f   : > { %v1364_v29 = vrot.slane %v1355_v27, %v1363_v25  ;;  %v1360_v32 = vrot.slane %v1355_v27, %v1359_v26  ;;  %v6044_v53 = vsel %vm1586_vm6, 0.0, %v5412_v52 }
 0x290   : > { %1507 = vmatpush1.bf16.msra.mxu0 %v4700_v55  ;;  %4347 = vmatpush3.bf16.msra.mxu1 %v4701_v56 }
 0x291   : > { %1508 = vmatprep.subr.bf16.mxu0 %v4702_v57  ;;  %4348 = vmatprep.subr.bf16.mxu1 %v5409_v38 }
 0x294   : > { %1509 = vmatpush1.bf16.msra.mxu0 %v4704_v58  ;;  %4349 = vmatpush3.bf16.msra.mxu1 %v4705_v59 }
 0x295   : > { %1510 = vmatprep.subr.bf16.mxu0 %v4706_v60  ;;  %4350 = vmatprep.subr.bf16.mxu1 %v5409_v38 }
 0x298   : > { %1511 = vmatpush1.bf16.msra.mxu0 %v4708_v62  ;;  %4351 = vmatpush3.bf16.msra.mxu1 %v4709_v63 }
 0x299   : > { %1512 = vmatprep.subr.bf16.mxu0 %v4710_v0  ;;  %4352 = vmatprep.subr.bf16.mxu1 %v5409_v38 }
 0x29c   : > { %1513 = vmatpush1.bf16.msra.mxu0 %v4712_v1  ;;  %4353 = vmatpush3.bf16.msra.mxu1 %v4713_v2 }
 0x29d   : > { %1514 = vmatprep.subr.bf16.mxu0 %v4714_v3  ;;  %4354 = vmatprep.subr.bf16.mxu1 %v5409_v38 }
 0x2a0   : > { %1515 = vmatpush1.bf16.msra.mxu0 %v4716_v4  ;;  %4355 = vmatpush3.bf16.msra.mxu1 %v4717_v5 }
 0x2a1   : > { %4360 = vmatprep.subr.bf16.mxu1 %v5409_v38  ;;  %4384 = vmatprep.subr.bf16.mxu0 %v5409_v38 }
 0x312   : > { %v1284_v40 = vpop.xlane.xlu0 %1283 }
 0x313   : > { %v1288_v41 = vmul.f32 0.0078125, %v1284_v40 }
 0x315   : > { %v5970_v42 = vsub.f32 %v1279_v34, %v1288_v41 }
 0x316   : > { %v1286_v43 = vpop.xlane.xlu0 %1285 }
 0x317   : > { %v1289_v44 = vmul.f32 0.0078125, %v1286_v43  ;;  %v1292_v45 = vmul.f32 %v5970_v42, %v5970_v42 }
 0x319   : > { %v5974_v46 = vsub.f32 %v1280_v35, %v1289_v44  ;;  %1294 = vadd.xlane.f32.xlu1 %v1292_v45  ;;  %v1368_v35 = vrot.slane %v1355_v27, %v1367_v28 }
 0x31b   : > { %v1293_v47 = vmul.f32 %v5974_v46, %v5974_v46 }
 0x31d   : > { %1296 = vadd.xlane.f32.xlu1 %v1293_v47 }
 0x3a2   : > { %v1295_v6 = vpop.xlane.xlu1 %1294 }
 0x3a3   : > { %v1298_v7 = vmul.f32 0.0078125, %v1295_v6 }
 0x3a5   : > { %v1300_v8 = vadd.f32 1e-06, %v1298_v7 }
 0x3a6   : > { %v1297_v9 = vpop.xlane.xlu1 %1296 }
 0x3a7   : > { %4806 = vrsqrt.f32 %v1300_v8  ;;  %v1299_v10 = vmul.f32 0.0078125, %v1297_v9 }
 0x3a9   : > { %v1301_v11 = vadd.f32 1e-06, %v1299_v10 }
 0x3ab   : > { %4808 = vrsqrt.f32 %v1301_v11 }
 0x3b4   : > { %v4807_v12 = vpop.eup %4806 }
 0x3b5   : > { %v1304_v13 = vmul.f32 %v4807_v12, %v5970_v42 }
 0x3b7   : > { %v1312_v17 = vmul.f32 %v4097_v14, %v1304_v13 }
 0x3b8   : > { %v4809_v15 = vpop.eup %4808 }
 0x3b9   : > { %v1305_v16 = vmul.f32 %v4809_v15, %v5974_v46  ;;  %v1320_v20 = vadd.f32 %v4098_v18, %v1312_v17 }
 0x3bb   : > { %v1313_v19 = vmul.f32 %v4097_v14, %v1305_v16 }
 0x3bd   : > { %v1321_v21 = vadd.f32 %v4098_v18, %v1313_v19 }
 0x3bf   : > { %v1322_v22 = vpack.c.bf16 %v1321_v21, %v1320_v20 }
 0x3c1   : > { %1533 = vmatmul.mubr.bf16.vlgmr.msra.gmra.mxu0 %v1322_v22  ;;  %4357 = vmatmul.mubr.bf16.vlgmr.msra.gmra.mxu1 %v1322_v22 }
 0x3c2   : > { %4362 = vmatprep.mubr.msk.bf16.mxu1 %vm5411_vm3, %v5409_v38  ;;  %4386 = vmatprep.mubr.msk.bf16.mxu0 %vm5411_vm3, %v5409_v38 }
 0x481   : > { %v1534_v30 = vpop.f32.mrf.mxu0  ;;  %v1577_v31 = vpop.f32.mrf.mxu1 }
 0x482   : > { %v1535_v40 = vadd.f32 %v1534_v30, %v1360_v32  ;;  %v1578_v45 = vadd.f32 %v1577_v31, %v1368_v35 }
 0x483   : > { %v1536_v33 = vpop.f32.mrf.mxu0  ;;  %v4358_v34 = vpop.f32.mrf.mxu1 }
 0x484   : > { %v1537_v36 = vadd.f32 %v1536_v33, %v1364_v29  ;;  %v1588_v47 = vmul.f32 0.17677669, %v1535_v40  ;;  %v6036_v48 = vpack.c.bf16 %v1578_v45, %v1578_v45 }
 0x485   : > { %v1538_v37 = vpop.f32.mrf.mxu0  ;;  %v1580_v39 = vpop.f32.mrf.mxu1 }
 0x486   : > { %v1590_v41 = vpack.c.bf16 %v1537_v36, %v1537_v36  ;;  %v1539_v42 = vadd.f32 %v1538_v37, %v1360_v32  ;;  %v6032_v43 = vadd.f32 %v1580_v39, %v1368_v35  ;;  %v1589_v49 = vpack.c.bf16 %v1588_v47, %v1588_v47 }
 0x487   : > { %v4359_v44 = vpop.f32.mrf.mxu1  ;;  %v1657_v50 = vsel %vm1655_vm5, %v6036_v48, 0  ;;  %v1540_v60 = vpop.f32.mrf.mxu0 }
 0x488   : > { %v1597_v46 = vsel %vm1592_vm4, %v1590_v41, 0  ;;  %v1541_v62 = vadd.f32 %v1540_v60, %v1364_v29  ;;  %v2049_v5 = vmul.f32 0.17677669, %v1539_v42 }
 0x489   : > { %4361 = vmatpush3.bf16.xpose.msra.mxu1 %v1597_v46 }
 0x48a   : > { %4366 = vmatprep.subr.bf16.mxu1 %v5409_v38  ;;  %v2051_v63 = vpack.c.bf16 %v1541_v62, %v1541_v62  ;;  %v2050_v6 = vpack.c.bf16 %v2049_v5, %v2049_v5 }
 0x48c   : > { %v2057_v20 = vsel %vm1592_vm4, %v2051_v63, 0 }
 0x490   : > { %4363 = vmatmul.mubr.msk.bf16.vlgmr.msra.gmra.mxu1 %vm1592_vm4, %v1589_v49 }
 0x491   : > { %4367 = vmatpush3.bf16.msra.mxu1 %v1657_v50  ;;  %4368 = vmatprep.mubr.msk.bf16.mxu1 %vm5411_vm3, %v5409_v38 }
 0x492   : > { %4372 = vmatprep.subr.bf16.mxu1 %v5409_v38 }
 0x550   : > { %v1633_v54 = vpop.f32.mrf.mxu1 }
 0x551   : > { %v1634_v55 = vadd.f32 %v1633_v54, %v6044_v53 }
 0x552   : > { %v4364_v56 = vpop.f32.mrf.mxu1 }
 0x553   : > { %v1640_v57 = vsel %vm1639_vm7, %v1634_v55, -inf }
 0x554   : > { %1641 = vmax.xlane.f32.xlu0 %v1640_v57  ;;  %v1636_v58 = vpop.f32.mrf.mxu1 }
 0x556   : > { %v4365_v59 = vpop.f32.mrf.mxu1 }
 0x56a   : > { %1703 = vrot.lane.b32.xlu0 %v1590_v41, %s5413_s6 }
 0x56e   : > { %1924 = vrot.lane.b32.xlu0 %v1590_v41, %s5414_s3 }
 0x572   : > { %2161 = vrot.lane.b32.xlu0 %v2051_v63, %s5413_s6 }
 0x576   : > { %2272 = vrot.lane.b32.xlu0 %v2051_v63, %s5415_s7 }
 0x57a   : > { %2382 = vrot.lane.b32.xlu0 %v2051_v63, %s5414_s3 }
 0x5dd   : > { %v1642_v0 = vpop.xlane.xlu0 %1641 }
 0x5de   : > { %v1643_v1 = vsub.f32 %v1634_v55, %v1642_v0 }
 0x5e0   : > { %v1644_v2 = vmul.f32 1.442695, %v1643_v1 }
 0x5e1   : > { %v1704_v9 = vpop.permute.xlu0 %1703 }
 0x5e2   : > { %4810 = vpow2.f32 %v1644_v2  ;;  %v1709_v18 = vsel %vm1592_vm4, %v1704_v9, 0 }
 0x5e5   : > { %v1925_v13 = vpop.permute.xlu0 %1924 }
 0x5e6   : > { %v1930_v16 = vsel %vm1592_vm4, %v1925_v13, 0 }
 0x5e9   : > { %v2162_v21 = vpop.permute.xlu0 %2161 }
 0x5ea   : > { %v2167_v22 = vsel %vm1592_vm4, %v2162_v21, 0 }
 0x5ed   : > { %v2273_v23 = vpop.permute.xlu0 %2272 }
 0x5ee   : > { %v2278_v29 = vsel %vm1592_vm4, %v2273_v23, 0 }
 0x5ef   : > { %v4811_v3 = vpop.eup %4810 }
 0x5f0   : > { %v1646_v4 = vsel %vm1639_vm7, %v4811_v3, 0.0 }
 0x5f1   : > { %1647 = vadd.xlane.f32.xlu1 %v1646_v4  ;;  %v2383_v30 = vpop.permute.xlu0 %2382 }
 0x5f2   : > { %v2388_v32 = vsel %vm1592_vm4, %v2383_v30, 0 }
 0x602   : > { %1700 = vrot.lane.b32.xlu1 %v1589_v49, %s5413_s6 }
 0x606   : > { %1814 = vrot.lane.b32.xlu1 %v1590_v41, %s5415_s7 }
 0x60a   : > { %1812 = vrot.lane.b32.xlu1 %v1589_v49, %s5415_s7 }
 0x60e   : > { %1922 = vrot.lane.b32.xlu1 %v1589_v49, %s5414_s3 }
 0x612   : > { %2158 = vrot.lane.b32.xlu1 %v2050_v6, %s5413_s6 }
 0x616   : > { %2270 = vrot.lane.b32.xlu1 %v2050_v6, %s5415_s7 }
 0x61a   : > { %2380 = vrot.lane.b32.xlu1 %v2050_v6, %s5414_s3 }
 0x67a   : > { %v1648_v7 = vpop.xlane.xlu1 %1647 }
 0x67b   : > { %4812 = vrcp.f32 %v1648_v7 }
 0x67e   : > { %v1701_v8 = vpop.permute.xlu1 %1700 }
 0x682   : > { %v1815_v10 = vpop.permute.xlu1 %1814 }
 0x683   : > { %v1820_v11 = vsel %vm1592_vm4, %v1815_v10, 0 }
 0x684   : > { %4385 = vmatpush3.bf16.xpose.msra.mxu0 %v1820_v11 }
 0x685   : > { %4396 = vmatprep.subr.bf16.mxu0 %v5409_v38 }
 0x686   : > { %v1813_v15 = vpop.permute.xlu1 %1812 }
 0x688   : > { %v4813_v12 = vpop.eup %4812 }
 0x689   : > { %v1650_v14 = vmul.f32 %v4813_v12, %v4811_v3 }
 0x68a   : > { %v1923_v19 = vpop.permute.xlu1 %1922 }
 0x68b   : > { %4387 = vmatmul.mubr.msk.bf16.vlgmr.msra.gmra.mxu0 %vm1592_vm4, %v1813_v15  ;;  %v1651_v17 = vpack.c.bf16 %v1650_v14, %v1650_v14 }
 0x68c   : > { %4397 = vmatpush3.bf16.xpose.msra.mxu0 %v1930_v16  ;;  %4398 = vmatprep.mubr.msk.bf16.mxu0 %vm5411_vm3, %v5409_v38 }
 0x68d   : > { %4369 = vmatmul.mubr.msk.bf16.vlgmr.msra.gmra.mxu1 %vm1639_vm7, %v1651_v17  ;;  %4408 = vmatprep.subr.bf16.mxu0 %v5409_v38 }
 0x68e   : > { %4373 = vmatpush3.bf16.xpose.msra.mxu1 %v1709_v18  ;;  %4374 = vmatprep.mubr.msk.bf16.mxu1 %vm5411_vm3, %v5409_v38  ;;  %v2159_v27 = vpop.permute.xlu1 %2158 }
 0x68f   : > { %4378 = vmatprep.subr.bf16.mxu1 %v5409_v38 }
 0x692   : > { %v2271_v31 = vpop.permute.xlu1 %2270 }
 0x693   : > { %4399 = vmatmul.mubr.msk.bf16.vlgmr.msra.gmra.mxu0 %vm1592_vm4, %v1923_v19 }
 0x694   : > { %4409 = vmatpush3.bf16.xpose.msra.mxu0 %v2057_v20  ;;  %4410 = vmatprep.mubr.msk.bf16.mxu0 %vm5411_vm3, %v5409_v38 }
 0x695   : > { %4375 = vmatmul.mubr.msk.bf16.vlgmr.msra.gmra.mxu1 %vm1592_vm4, %v1701_v8  ;;  %4420 = vmatprep.subr.bf16.mxu0 %v5409_v38 }
 0x696   : > { %4380 = vmatprep.mubr.msk.bf16.mxu1 %vm5411_vm3, %v5409_v38  ;;  %v2381_v33 = vpop.permute.xlu1 %2380 }
 0x69b   : > { %4411 = vmatmul.mubr.msk.bf16.vlgmr.msra.gmra.mxu0 %vm1592_vm4, %v2050_v6 }
 0x69c   : > { %4421 = vmatpush3.bf16.xpose.msra.mxu0 %v2167_v22  ;;  %4422 = vmatprep.mubr.msk.bf16.mxu0 %vm5411_vm3, %v5409_v38 }
 0x69d   : > { %4432 = vmatprep.subr.bf16.mxu0 %v5409_v38 }
 0x6a3   : > { %4423 = vmatmul.mubr.msk.bf16.vlgmr.msra.gmra.mxu0 %vm1592_vm4, %v2159_v27 }
 0x6a4   : > { %4433 = vmatpush3.bf16.xpose.msra.mxu0 %v2278_v29  ;;  %4434 = vmatprep.mubr.msk.bf16.mxu0 %vm5411_vm3, %v5409_v38 }
 0x6a5   : > { %4444 = vmatprep.subr.bf16.mxu0 %v5409_v38 }
 0x6ab   : > { %4435 = vmatmul.mubr.msk.bf16.vlgmr.msra.gmra.mxu0 %vm1592_vm4, %v2271_v31 }
 0x6ac   : > { %4445 = vmatpush3.bf16.xpose.msra.mxu0 %v2388_v32  ;;  %4446 = vmatprep.mubr.msk.bf16.mxu0 %vm5411_vm3, %v5409_v38 }
 0x6ad   : > { %4456 = vmatprep.subr.bf16.mxu0 %v5409_v38 }
 0x6b3   : > { %4447 = vmatmul.mubr.msk.bf16.vlgmr.msra.gmra.mxu0 %vm1592_vm4, %v2381_v33 }
 0x6b4   : > { %4472 = vmatprep.mubr.msk.bf16.mxu0 %vm5411_vm3, %v5409_v38 }
 0x74b   : > { %v1856_v34 = vpop.f32.mrf.mxu0 }
 0x74c   : > { %v1857_v35 = vadd.f32 %v1856_v34, %v6044_v53 }
 0x74d   : > { %v6100_v36 = vpop.f32.mrf.mxu1  ;;  %v4388_v37 = vpop.f32.mrf.mxu0 }
 0x74e   : > { %v1862_v39 = vsel %vm1639_vm7, %v1857_v35, -inf }
 0x74f   : > { %1863 = vmax.xlane.f32.xlu1 %v1862_v39  ;;  %v4370_v40 = vpop.f32.mrf.mxu1  ;;  %v1859_v41 = vpop.f32.mrf.mxu0 }
 0x751   : > { %v1696_v42 = vpop.f32.mrf.mxu1  ;;  %v4389_v44 = vpop.f32.mrf.mxu0 }
 0x753   : > { %v4371_v45 = vpop.f32.mrf.mxu1  ;;  %v1966_v46 = vpop.f32.mrf.mxu0 }
 0x754   : > { %v1967_v54 = vadd.f32 %v1966_v46, %v6044_v53 }
 0x755   : > { %v1745_v47 = vpop.f32.mrf.mxu1  ;;  %v4400_v49 = vpop.f32.mrf.mxu0 }
 0x756   : > { %v1746_v50 = vadd.f32 %v1745_v47, %v6044_v53  ;;  %v1972_v62 = vsel %vm1639_vm7, %v1967_v54, -inf }
 0x757   : > { %v4376_v51 = vpop.f32.mrf.mxu1  ;;  %v1969_v52 = vpop.f32.mrf.mxu0 }
 0x758   : > { %v1751_v55 = vsel %vm1639_vm7, %v1746_v50, -inf }
 0x759   : > { %v4401_v56 = vpop.f32.mrf.mxu0  ;;  %1752 = vmax.xlane.f32.xlu0 %v1751_v55  ;;  %v1748_v57 = vpop.f32.mrf.mxu1 }
 0x75b   : > { %v4377_v58 = vpop.f32.mrf.mxu1  ;;  %v2093_v59 = vpop.f32.mrf.mxu0 }
 0x75c   : > { %v2094_v60 = vadd.f32 %v2093_v59, %v6044_v53 }
 0x75d   : > { %v4412_v63 = vpop.f32.mrf.mxu0  ;;  %1973 = vmax.xlane.f32.xlu0 %v1972_v62 }
 0x75e   : > { %v2099_v1 = vsel %vm1639_vm7, %v2094_v60, -inf }
 0x75f   : > { %v2096_v0 = vpop.f32.mrf.mxu0 }
 0x761   : > { %v4413_v2 = vpop.f32.mrf.mxu0  ;;  %2100 = vmax.xlane.f32.xlu0 %v2099_v1 }
 0x763   : > { %v2203_v3 = vpop.f32.mrf.mxu0 }
 0x764   : > { %v2204_v4 = vadd.f32 %v2203_v3, %v6044_v53 }
 0x765   : > { %v4424_v5 = vpop.f32.mrf.mxu0 }
 0x766   : > { %v2209_v6 = vsel %vm1639_vm7, %v2204_v4, -inf }
 0x767   : > { %v2206_v7 = vpop.f32.mrf.mxu0  ;;  %2210 = vmax.xlane.f32.xlu0 %v2209_v6 }
 0x769   : > { %v4425_v8 = vpop.f32.mrf.mxu0 }
 0x76b   : > { %v2314_v9 = vpop.f32.mrf.mxu0 }
 0x76c   : > { %v2315_v10 = vadd.f32 %v2314_v9, %v6044_v53 }
 0x76d   : > { %v4436_v11 = vpop.f32.mrf.mxu0 }
 0x76e   : > { %v2320_v12 = vsel %vm1639_vm7, %v2315_v10, -inf }
 0x76f   : > { %2321 = vmax.xlane.f32.xlu1 %v2320_v12  ;;  %v2317_v13 = vpop.f32.mrf.mxu0 }
 0x771   : > { %v4437_v14 = vpop.f32.mrf.mxu0 }
 0x773   : > { %v2424_v15 = vpop.f32.mrf.mxu0 }
 0x774   : > { %v2425_v16 = vadd.f32 %v2424_v15, %v6044_v53 }
 0x775   : > { %v4448_v17 = vpop.f32.mrf.mxu0 }
 0x776   : > { %v2430_v18 = vsel %vm1639_vm7, %v2425_v16, -inf }
 0x777   : > { %v2427_v19 = vpop.f32.mrf.mxu0  ;;  %2431 = vmax.xlane.f32.xlu0 %v2430_v18 }
 0x779   : > { %v4449_v20 = vpop.f32.mrf.mxu0 }
 0x7d8   : > { %v1864_v21 = vpop.xlane.xlu1 %1863 }
 0x7d9   : > { %v1865_v22 = vsub.f32 %v1857_v35, %v1864_v21 }
 0x7db   : > { %v1866_v23 = vmul.f32 1.442695, %v1865_v22 }
 0x7dd   : > { %4814 = vpow2.f32 %v1866_v23 }
 0x7e2   : > { %v1753_v27 = vpop.xlane.xlu0 %1752 }
 0x7e3   : > { %v1754_v29 = vsub.f32 %v1746_v50, %v1753_v27 }
 0x7e5   : > { %v1755_v32 = vmul.f32 1.442695, %v1754_v29 }
 0x7e6   : > { %v1974_v30 = vpop.xlane.xlu0 %1973 }
 0x7e7   : > { %v1975_v31 = vsub.f32 %v1967_v54, %v1974_v30 }
 0x7e9   : > { %v1976_v33 = vmul.f32 1.442695, %v1975_v31 }
 0x7ea   : > { %v6115_v34 = vpop.eup %4814  ;;  %v2101_v37 = vpop.xlane.xlu0 %2100 }
 0x7eb   : > { %4816 = vpow2.f32 %v1976_v33  ;;  %v2102_v53 = vsub.f32 %v2094_v60, %v2101_v37  ;;  %v1868_v39 = vsel %vm1639_vm7, %v6115_v34, 0.0 }
 0x7ec   : > { %1869 = vadd.xlane.f32.xlu0 %v1868_v39  ;;  %4818 = vpow2.f32 %v1755_v32 }
 0x7ed   : > { %v2103_v40 = vmul.f32 1.442695, %v2102_v53 }
 0x7ef   : > { %4820 = vpow2.f32 %v2103_v40 }
 0x7f0   : > { %v2211_v35 = vpop.xlane.xlu0 %2210 }
 0x7f1   : > { %v2212_v41 = vsub.f32 %v2204_v4, %v2211_v35 }
 0x7f3   : > { %v2213_v42 = vmul.f32 1.442695, %v2212_v41 }
 0x7f5   : > { %4822 = vpow2.f32 %v2213_v42 }
 0x7f8   : > { %v6119_v44 = vpop.eup %4816  ;;  %v2322_v54 = vpop.xlane.xlu1 %2321 }
 0x7f9   : > { %v1978_v45 = vsel %vm1639_vm7, %v6119_v44, 0.0  ;;  %v4819_v46 = vpop.eup %4818  ;;  %v2323_v55 = vsub.f32 %v2315_v10, %v2322_v54 }
 0x7fa   : > { %1979 = vadd.xlane.f32.xlu1 %v1978_v45  ;;  %v1757_v49 = vsel %vm1639_vm7, %v4819_v46, 0.0 }
 0x7fb   : > { %v2324_v56 = vmul.f32 1.442695, %v2323_v55 }
 0x7fc   : > { %v6123_v47 = vpop.eup %4820 }
 0x7fd   : > { %v2105_v50 = vsel %vm1639_vm7, %v6123_v47, 0.0  ;;  %4824 = vpow2.f32 %v2324_v56 }
 0x7fe   : > { %1758 = vadd.xlane.f32.xlu1 %v1757_v49  ;;  %2106 = vadd.xlane.f32.xlu0 %v2105_v50  ;;  %v4719_v49 = vld [vmem:[%s5893_s17 + $0x30] sm:$0xff]  }
 0x800   : > { %v2432_v57 = vpop.xlane.xlu0 %2431 }
 0x801   : > { %v2433_v58 = vsub.f32 %v2425_v16, %v2432_v57 }
 0x802   : > { %v6128_v51 = vpop.eup %4822 }
 0x803   : > { %v2215_v52 = vsel %vm1639_vm7, %v6128_v51, 0.0  ;;  %v2434_v59 = vmul.f32 1.442695, %v2433_v58 }
 0x804   : > { %2216 = vadd.xlane.f32.xlu0 %v2215_v52 }
 0x805   : > { %4826 = vpow2.f32 %v2434_v59 }
 0x80a   : > { %v6138_v60 = vpop.eup %4824 }
 0x80b   : > { %v2326_v62 = vsel %vm1639_vm7, %v6138_v60, 0.0 }
 0x80f   : > { %1764 = vrot.lane.b32.xlu1 %v6036_v48, %s5413_s6 }
 0x812   : > { %v6142_v63 = vpop.eup %4826 }
 0x813   : > { %v2436_v0 = vsel %vm1639_vm7, %v6142_v63, 0.0 }
 0x81a   : > { %1874 = vrot.lane.b32.xlu0 %v6036_v48, %s5415_s7 }
 0x81e   : > { %1984 = vrot.lane.b32.xlu0 %v6036_v48, %s5414_s3  ;;  %v2052_v48 = vpack.c.bf16 %v6032_v43, %v6032_v43 }
 0x820   : > { %v2115_v21 = vsel %vm1655_vm5, %v2052_v48, 0 }
 0x833   : > { %2327 = vadd.xlane.f32.xlu1 %v2326_v62 }
 0x83d   : > { %2437 = vadd.xlane.f32.xlu0 %v2436_v0 }
 0x844   : > { %2222 = vrot.lane.b32.xlu1 %v2052_v48, %s5413_s6 }
 0x848   : > { %2442 = vrot.lane.b32.xlu1 %v2052_v48, %s5414_s3 }
 0x853   : > { %2332 = vrot.lane.b32.xlu0 %v2052_v48, %s5415_s7 }
 0x875   : > { %v1870_v3 = vpop.xlane.xlu0 %1869 }
 0x883   : > { %v1980_v1 = vpop.xlane.xlu1 %1979 }
 0x887   : > { %v1759_v2 = vpop.xlane.xlu1 %1758  ;;  %v2107_v6 = vpop.xlane.xlu0 %2106 }
 0x888   : > { %4828 = vrcp.f32 %v1759_v2 }
 0x889   : > { %4830 = vrcp.f32 %v1870_v3  ;;  %v4720_v3 = vld [vmem:[%s5893_s17 + $0x28] sm:$0xff]  }
 0x88a   : > { %4832 = vrcp.f32 %v1980_v1 }
 0x88b   : > { %v1765_v4 = vpop.permute.xlu1 %1764  ;;  %4834 = vrcp.f32 %v2107_v6 }
 0x88c   : > { %v1770_v5 = vsel %vm1655_vm5, %v1765_v4, 0  ;;  %v4721_v4 = vld [vmem:[%s5893_s17 + $0x20] sm:$0xff]  }
 0x88d   : > { %4379 = vmatpush3.bf16.msra.mxu1 %v1770_v5  ;;  %v2217_v7 = vpop.xlane.xlu0 %2216  ;;  %v4722_v5 = vld [vmem:[%s5893_s17 + $0x18] sm:$0xff]  }
 0x88e   : > { %4390 = vmatprep.subr.bf16.mxu1 %v5409_v38  ;;  %4836 = vrcp.f32 %v2217_v7 }
 0x891   : > { %v1875_v9 = vpop.permute.xlu0 %1874 }
 0x892   : > { %v1880_v12 = vsel %vm1655_vm5, %v1875_v9, 0 }
 0x895   : > { %v4829_v43 = vpop.eup %4828  ;;  %v1985_v14 = vpop.permute.xlu0 %1984 }
 0x896   : > { %v1761_v8 = vmul.f32 %v4829_v43, %v4819_v46  ;;  %v4831_v11 = vpop.eup %4830  ;;  %v1990_v17 = vsel %vm1655_vm5, %v1985_v14, 0  ;;  %v4725_v14 = vld [vmem:[%s5893_s17] sm:$0xff]  }
 0x897   : > { %v1872_v13 = vmul.f32 %v4831_v11, %v6115_v34  ;;  %v4833_v16 = vpop.eup %4832 }
 0x898   : > { %v1762_v10 = vpack.c.bf16 %v1761_v8, %v1761_v8  ;;  %v1982_v18 = vmul.f32 %v4833_v16, %v6119_v44  ;;  %v4835_v20 = vpop.eup %4834  ;;  %v4723_v8 = vld [vmem:[%s5893_s17 + $0x10] sm:$0xff]  }
 0x899   : > { %v1873_v15 = vpack.c.bf16 %v1872_v13, %v1872_v13  ;;  %v2109_v22 = vmul.f32 %v4835_v20, %v6123_v47  ;;  %v4718_v47 = vld [vmem:[%s5893_s17 + $0x38] sm:$0xff]  }
 0x89a   : > { %4381 = vmatmul.mubr.msk.bf16.vlgmr.msra.gmra.mxu1 %vm1639_vm7, %v1762_v10  ;;  %v1983_v19 = vpack.c.bf16 %v1982_v18, %v1982_v18  ;;  %4457 = vmatpush3.bf16.msra.mxu0 %v4718_v47  ;;  %v4724_v10 = vld [vmem:[%s5893_s17 + $0x8] sm:$0xff]   ;;  %s6609_s17 = scalar_lea.vmem [#allocation11], %s5884_s30 }
 0x89b   : > { %4391 = vmatpush3.bf16.msra.mxu1 %v1880_v12  ;;  %4392 = vmatprep.mubr.msk.bf16.mxu1 %vm5411_vm3, %v5409_v38  ;;  %v2110_v23 = vpack.c.bf16 %v2109_v22, %v2109_v22  ;;  %v4837_v27 = vpop.eup %4836 }
 0x89c   : > { %4402 = vmatprep.subr.bf16.mxu1 %v5409_v38  ;;  %v2219_v30 = vmul.f32 %v4837_v27, %v6128_v51  ;;  %4458 = vmatprep.subr.bf16.mxu0 %v5409_v38 }
 0x89e   : > { %v2220_v33 = vpack.c.bf16 %v2219_v30, %v2219_v30  ;;  %4459 = vmatpush3.bf16.msra.mxu0 %v4719_v49 }
 0x89f   : > { %4460 = vmatprep.subr.bf16.mxu0 %v5409_v38 }
 0x8a2   : > { %4393 = vmatmul.mubr.msk.bf16.vlgmr.msra.gmra.mxu1 %vm1639_vm7, %v1873_v15  ;;  %4461 = vmatpush3.bf16.msra.mxu0 %v4720_v3  ;;  %v4734_v3 = vld [vmem:[%s5931_s26 + $0xc4] ss:$16 sps:$4 sm:$0xff]  }
 0x8a3   : > { %4403 = vmatpush3.bf16.msra.mxu1 %v1990_v17  ;;  %4404 = vmatprep.mubr.msk.bf16.mxu1 %vm5411_vm3, %v5409_v38 }
 0x8a4   : > { %4414 = vmatprep.subr.bf16.mxu1 %v5409_v38  ;;  %4462 = vmatprep.subr.bf16.mxu0 %v5409_v38 }
 0x8a6   : > { %4463 = vmatpush3.bf16.msra.mxu0 %v4721_v4  ;;  %v4737_v4 = vld [vmem:[%s5931_s26 + $0xcc] ss:$16 sps:$4 sm:$0xff]  }
 0x8a7   : > { %4464 = vmatprep.subr.bf16.mxu0 %v5409_v38 }
 0x8aa   : > { %4405 = vmatmul.mubr.msk.bf16.vlgmr.msra.gmra.mxu1 %vm1639_vm7, %v1983_v19  ;;  %4465 = vmatpush3.bf16.msra.mxu0 %v4722_v5  ;;  %v4732_v5 = vld [vmem:[%s5931_s26 + $0xc0] ss:$16 sps:$4 sm:$0xff]  }
 0x8ab   : > { %4415 = vmatpush3.bf16.msra.mxu1 %v2115_v21  ;;  %4416 = vmatprep.mubr.msk.bf16.mxu1 %vm5411_vm3, %v5409_v38 }
 0x8ac   : > { %4426 = vmatprep.subr.bf16.mxu1 %v5409_v38  ;;  %4466 = vmatprep.subr.bf16.mxu0 %v5409_v38 }
 0x8ae   : > { %4467 = vmatpush3.bf16.msra.mxu0 %v4723_v8  ;;  %v4738_v8 = vld [vmem:[%s5931_s26 + $0xa0] ss:$16 sps:$4 sm:$0xff]  }
 0x8af   : > { %4468 = vmatprep.subr.bf16.mxu0 %v5409_v38 }
 0x8b2   : > { %4417 = vmatmul.mubr.msk.bf16.vlgmr.msra.gmra.mxu1 %vm1639_vm7, %v2110_v23  ;;  %4469 = vmatpush3.bf16.msra.mxu0 %v4724_v10  ;;  %v4744_v10 = vld [vmem:[%s5931_s26 + $0x80] ss:$16 sps:$4 sm:$0xff]  }
 0x8b3   : > { %4428 = vmatprep.mubr.msk.bf16.mxu1 %vm5411_vm3, %v5409_v38  ;;  %4470 = vmatprep.subr.bf16.mxu0 %v5409_v38 }
 0x8b6   : > { %4471 = vmatpush3.bf16.msra.mxu0 %v4725_v14  ;;  %v4752_v14 = vld [vmem:[%s5931_s26 + $0x64] ss:$16 sps:$4 sm:$0xff]  }
 0x8bc   : > { %v2328_v29 = vpop.xlane.xlu1 %2327 }
 0x8bd   : > { %4838 = vrcp.f32 %v2328_v29 }
 0x8c0   : > { %v2223_v31 = vpop.permute.xlu1 %2222 }
 0x8c1   : > { %v2228_v32 = vsel %vm1655_vm5, %v2223_v31, 0 }
 0x8c2   : > { %4427 = vmatpush3.bf16.msra.mxu1 %v2228_v32 }
 0x8c3   : > { %4438 = vmatprep.subr.bf16.mxu1 %v5409_v38 }
 0x8c4   : > { %v2443_v35 = vpop.permute.xlu1 %2442 }
 0x8c5   : > { %4429 = vmatmul.mubr.msk.bf16.vlgmr.msra.gmra.mxu1 %vm1639_vm7, %v2220_v33  ;;  %v2448_v42 = vsel %vm1655_vm5, %v2443_v35, 0 }
 0x8c6   : > { %v2438_v34 = vpop.xlane.xlu0 %2437  ;;  %4440 = vmatprep.mubr.msk.bf16.mxu1 %vm5411_vm3, %v5409_v38 }
 0x8c7   : > { %4840 = vrcp.f32 %v2438_v34 }
 0x8ca   : > { %v4839_v37 = vpop.eup %4838  ;;  %v2333_v53 = vpop.permute.xlu0 %2332 }
 0x8cb   : > { %v2338_v39 = vsel %vm1655_vm5, %v2333_v53, 0  ;;  %v2330_v40 = vmul.f32 %v4839_v37, %v6138_v60 }
 0x8cc   : > { %4439 = vmatpush3.bf16.msra.mxu1 %v2338_v39 }
 0x8cd   : > { %v2331_v41 = vpack.c.bf16 %v2330_v40, %v2330_v40  ;;  %4450 = vmatprep.subr.bf16.mxu1 %v5409_v38 }
 0x8cf   : > { %4441 = vmatmul.mubr.msk.bf16.vlgmr.msra.gmra.mxu1 %vm1639_vm7, %v2331_v41 }
 0x8d0   : > { %4451 = vmatpush3.bf16.msra.mxu1 %v2448_v42  ;;  %4452 = vmatprep.mubr.msk.bf16.mxu1 %vm5411_vm3, %v5409_v38 }
 0x8d4   : > { %v4841_v44 = vpop.eup %4840 }
 0x8d5   : > { %v2440_v45 = vmul.f32 %v4841_v44, %v6142_v63  ;;  %v4139_v44 = vld [vmem:[%s6609_s17] ss:$0 sm:$0xff] }
 0x8d7   : > { %v2441_v46 = vpack.c.bf16 %v2440_v45, %v2440_v45 }
 0x8d9   : > { %4453 = vmatmul.mubr.msk.bf16.vlgmr.msra.gmra.mxu1 %vm1639_vm7, %v2441_v46 }
 0x8da   : > { %2907 = vmatprep.mubr.bf16.mxu1 %v5410_v61 }
 0x95a   : > { %v1806_v50 = vpop.f32.mrf.mxu1 }
 0x95c   : > { %v4382_v51 = vpop.f32.mrf.mxu1 }
 0x95e   : > { %v1809_v52 = vpop.f32.mrf.mxu1 }
 0x960   : > { %v4383_v54 = vpop.f32.mrf.mxu1 }
 0x961   : > { %v4879_v54 = vld [vmem:[#allocation2 + $0x8] sm:$0xff] }
 0x962   : > { %v1916_v55 = vpop.f32.mrf.mxu1 }
 0x964   : > { %v4394_v56 = vpop.f32.mrf.mxu1 }
 0x965   : > { %v4728_v56 = vld [vmem:[%s5931_s26 + $0xe4] ss:$16 sps:$4 sm:$0xff]  }
 0x966   : > { %v1919_v57 = vpop.f32.mrf.mxu1  ;;  %2875 = vmatprep.subr.bf16.mxu1 %v4728_v56  ;;  %v4776_v56 = vld [vmem:[%s5907_s9 + $0x38] sm:$0xff]  }
 0x967   : > { %v4729_v57 = vld [vmem:[%s5931_s26 + $0xe8] ss:$16 sps:$4 sm:$0xff]  }
 0x968   : > { %v4395_v58 = vpop.f32.mrf.mxu1 }
 0x969   : > { %v4731_v58 = vld [vmem:[%s5931_s26 + $0xec] ss:$16 sps:$4 sm:$0xff]  }
 0x96a   : > { %v2026_v59 = vpop.f32.mrf.mxu1  ;;  %2918 = vmatprep.subr.bf16.mxu0 %v4731_v58  ;;  %v4778_v58 = vld [vmem:[%s5907_s9 + $0x70] sm:$0xff]  }
 0x96c   : > { %v4406_v60 = vpop.f32.mrf.mxu1 }
 0x96e   : > { %v2029_v62 = vpop.f32.mrf.mxu1 }
 0x970   : > { %v4407_v63 = vpop.f32.mrf.mxu1 }
 0x972   : > { %v2151_v0 = vpop.f32.mrf.mxu1 }
 0x974   : > { %v4418_v48 = vpop.f32.mrf.mxu1 }
 0x976   : > { %v2154_v1 = vpop.f32.mrf.mxu1 }
 0x978   : > { %v4419_v2 = vpop.f32.mrf.mxu1 }
 0x985   : > { %v2264_v6 = vpop.f32.mrf.mxu1 }
 0x986   : > { %v4671_v7 = vpack.i.bf16 %v2264_v6, %v1806_v50  ;;  %v4735_v6 = vld [vmem:[%s5931_s26 + $0xc8] ss:$16 sps:$4 sm:$0xff]  }
 0x987   : > { %v4430_v43 = vpop.f32.mrf.mxu1 }
 0x988   : > { %4672 = vrot.lane.b32.xlu1 %v4671_v7, %s5414_s3  ;;  %v4740_v7 = vld [vmem:[%s5931_s26 + $0xa4] ss:$16 sps:$4 sm:$0xff]   ;;  %v4743_v43 = vld [vmem:[%s5931_s26 + $0xac] ss:$16 sps:$4 sm:$0xff]  }
 0x989   : > { %v2267_v9 = vpop.f32.mrf.mxu1 }
 0x98a   : > { %v4741_v9 = vld [vmem:[%s5931_s26 + $0xa8] ss:$16 sps:$4 sm:$0xff]  }
 0x98b   : > { %v4431_v11 = vpop.f32.mrf.mxu1 }
 0x98c   : > { %v4746_v11 = vld [vmem:[%s5931_s26 + $0x84] ss:$16 sps:$4 sm:$0xff]  }
 0x98f   : > { %v2374_v12 = vpop.f32.mrf.mxu1 }
 0x990   : > { %v4676_v13 = vpack.i.bf16 %v2374_v12, %v1916_v55  ;;  %v4747_v12 = vld [vmem:[%s5931_s26 + $0x88] ss:$16 sps:$4 sm:$0xff]  }
 0x991   : > { %v4442_v15 = vpop.f32.mrf.mxu1 }
 0x992   : > { %4677 = vrot.lane.b32.xlu1 %v4676_v13, %s5415_s7  ;;  %v4749_v13 = vld [vmem:[%s5931_s26 + $0x8c] ss:$16 sps:$4 sm:$0xff]  }
 0x993   : > { %v2377_v16 = vpop.f32.mrf.mxu1  ;;  %v4755_v15 = vld [vmem:[%s5931_s26 + $0x6c] ss:$16 sps:$4 sm:$0xff]  }
 0x994   : > { %v4750_v16 = vld [vmem:[%s5931_s26 + $0x60] ss:$16 sps:$4 sm:$0xff]  }
 0x995   : > { %v4443_v17 = vpop.f32.mrf.mxu1 }
 0x996   : > { %v4753_v17 = vld [vmem:[%s5931_s26 + $0x68] ss:$16 sps:$4 sm:$0xff]  }
 0x999   : > { %v2484_v18 = vpop.f32.mrf.mxu1 }
 0x99a   : > { %v4681_v19 = vpack.i.bf16 %v2484_v18, %v2026_v59  ;;  %v4758_v18 = vld [vmem:[%s5931_s26 + $0x44] ss:$16 sps:$4 sm:$0xff]  }
 0x99b   : > { %v4454_v20 = vpop.f32.mrf.mxu1 }
 0x99c   : > { %4682 = vrot.lane.b32.xlu1 %v4681_v19, %s5413_s6  ;;  %v4761_v19 = vld [vmem:[%s5931_s26 + $0x4c] ss:$16 sps:$4 sm:$0xff]   ;;  %v4756_v20 = vld [vmem:[%s5931_s26 + $0x40] ss:$16 sps:$4 sm:$0xff]  }
 0x99d   : > { %v2487_v21 = vpop.f32.mrf.mxu1 }
 0x99e   : > { %v4759_v21 = vld [vmem:[%s5931_s26 + $0x48] ss:$16 sps:$4 sm:$0xff]  }
 0x99f   : > { %v4455_v22 = vpop.f32.mrf.mxu1 }
 0x9a0   : > { %v4764_v22 = vld [vmem:[%s5931_s26 + $0x24] ss:$16 sps:$4 sm:$0xff]  }
 0x9fa   : > { %v4673_v23 = vpop.permute.xlu1 %4672 }
 0x9fb   : > { %v4675_v29 = vunpack.i.h.bf16 %v4673_v23  ;;  %v4674_v30 = vunpack.i.l.bf16 %v4673_v23  ;;  %v4767_v23 = vld [vmem:[%s5931_s26 + $0x2c] ss:$16 sps:$4 sm:$0xff]  }
 0x9fd   : > { %v2502_v33 = vsel %vm1592_vm4, %v2151_v0, %v4675_v29  ;;  %v2044_v34 = vsel %vm1592_vm4, %v6100_v36, %v4674_v30  ;;  %v4878_v36 = vld [vmem:[#allocation2] sm:$0xff]  ;;  %v4765_v29 = vld [vmem:[%s5931_s26 + $0x28] ss:$16 sps:$4 sm:$0xff]  }
 0x9fe   : > { %v4770_v30 = vld [vmem:[%s5931_s26 + $0x4] ss:$16 sps:$4 sm:$0xff]  }
 0xa04   : > { %v4678_v27 = vpop.permute.xlu1 %4677 }
 0xa05   : > { %v4680_v38 = vunpack.i.h.bf16 %v4678_v27  ;;  %v4679_v31 = vunpack.i.l.bf16 %v4678_v27  ;;  %v4762_v27 = vld [vmem:[%s5931_s26 + $0x20] ss:$16 sps:$4 sm:$0xff]  }
 0xa07   : > { %v2503_v39 = vsel %vm2045_vm8, %v2502_v33, %v4680_v38  ;;  %v2046_v40 = vsel %vm2045_vm8, %v2044_v34, %v4679_v31  ;;  %v4773_v38 = vld [vmem:[%s5931_s26 + $0xc] ss:$16 sps:$4 sm:$0xff]   ;;  %v4768_v31 = vld [vmem:[%s5931_s26] ss:$16 sps:$4 sm:$0xff]  }
 0xa0e   : > { %v4683_v32 = vpop.permute.xlu1 %4682 }
 0xa0f   : > { %v4685_v37 = vunpack.i.h.bf16 %v4683_v32  ;;  %v4684_v53 = vunpack.i.l.bf16 %v4683_v32  ;;  %v4771_v32 = vld [vmem:[%s5931_s26 + $0x8] ss:$16 sps:$4 sm:$0xff]  }
 0xa11   : > { %v2504_v35 = vsel %vm2047_vm9, %v2503_v39, %v4685_v37  ;;  %v2048_v41 = vsel %vm2047_vm9, %v2046_v40, %v4684_v53 }
 0xa12   : > { %v2505_v42 = vpack.c.bf16 %v2504_v35, %v2048_v41 }
 0xa14   : > { %4473 = vmatmul.mubr.bf16.vlgmr.msra.gmra.mxu0 %v2505_v42 }
 0xa15   : > { %2950 = vmatprep.mubr.bf16.mxu0 %v5410_v61  ;;  %v4726_v61 = vld [vmem:[%s5931_s26 + $0xe0] ss:$16 sps:$4 sm:$0xff]   ;;  %2919 = vmatpush1.bf16.msra.mxu0 %v4729_v57  ;;  %s6610_s26 = scalar_lea.vmem [#allocation12], %s5884_s30 }
 0xa16   : > { %2876 = vmatpush1.bf16.msra.mxu1 %v4726_v61  ;;  %2920 = vmatprep.subr.bf16.mxu0 %v4737_v4  ;;  %v4148_v42 = vld [vmem:[%s6610_s26] ss:$0 sm:$0xff]  ;;  %v4775_v61 = vld [vmem:[%s5907_s9 + $0xf8] sm:$0xff]  }
 0xa17   : > { %2877 = vmatprep.subr.bf16.mxu1 %v4734_v3  ;;  %v4777_v57 = vld [vmem:[%s5907_s9 + $0xb8] sm:$0xff]   ;;  %v4787_v3 = vld [vmem:[%s5907_s9 + $0xe0] sm:$0xff]  }
 0xa18   : > { %v4788_v4 = vld [vmem:[%s5907_s9 + $0x20] sm:$0xff]  }
 0xa19   : > { %2921 = vmatpush1.bf16.msra.mxu0 %v4735_v6  ;;  %v4790_v6 = vld [vmem:[%s5907_s9 + $0x58] sm:$0xff]  }
 0xa1a   : > { %2878 = vmatpush1.bf16.msra.mxu1 %v4732_v5  ;;  %2922 = vmatprep.subr.bf16.mxu0 %v4743_v43  ;;  %v4789_v5 = vld [vmem:[%s5907_s9 + $0xa0] sm:$0xff]   ;;  %v4792_v43 = vld [vmem:[%s5907_s9 + $0x18] sm:$0xff]  }
 0xa1b   : > { %2879 = vmatprep.subr.bf16.mxu1 %v4740_v7  ;;  %v4791_v7 = vld [vmem:[%s5907_s9 + $0xd8] sm:$0xff]  }
 0xa1d   : > { %2923 = vmatpush1.bf16.msra.mxu0 %v4741_v9  ;;  %v4794_v9 = vld [vmem:[%s5907_s9 + $0x50] sm:$0xff]  }
 0xa1e   : > { %2880 = vmatpush1.bf16.msra.mxu1 %v4738_v8  ;;  %2924 = vmatprep.subr.bf16.mxu0 %v4749_v13  ;;  %v4793_v8 = vld [vmem:[%s5907_s9 + $0x98] sm:$0xff]   ;;  %v4798_v13 = vld [vmem:[%s5907_s9 + $0x48] sm:$0xff]  }
 0xa1f   : > { %2881 = vmatprep.subr.bf16.mxu1 %v4746_v11  ;;  %v4796_v11 = vld [vmem:[%s5907_s9 + $0x10] sm:$0xff]  }
 0xa21   : > { %2925 = vmatpush1.bf16.msra.mxu0 %v4747_v12  ;;  %v4797_v12 = vld [vmem:[%s5907_s9 + $0x90] sm:$0xff]  }
 0xa22   : > { %2882 = vmatpush1.bf16.msra.mxu1 %v4744_v10  ;;  %2926 = vmatprep.subr.bf16.mxu0 %v4755_v15  ;;  %v4795_v10 = vld [vmem:[%s5907_s9 + $0xd0] sm:$0xff]   ;;  %v4800_v15 = vld [vmem:[%s5907_s9 + $0x8] sm:$0xff]  }
 0xa23   : > { %2883 = vmatprep.subr.bf16.mxu1 %v4752_v14  ;;  %v4799_v14 = vld [vmem:[%s5907_s9 + $0xc8] sm:$0xff]  }
 0xa25   : > { %2927 = vmatpush1.bf16.msra.mxu0 %v4753_v17  ;;  %v4802_v17 = vld [vmem:[%s5907_s9 + $0x40] sm:$0xff]  }
 0xa26   : > { %2884 = vmatpush1.bf16.msra.mxu1 %v4750_v16  ;;  %2928 = vmatprep.subr.bf16.mxu0 %v4761_v19  ;;  %v4801_v16 = vld [vmem:[%s5907_s9 + $0x88] sm:$0xff]   ;;  %v4804_v19 = vld [vmem:[%s5907_s9] sm:$0xff]  }
 0xa27   : > { %2885 = vmatprep.subr.bf16.mxu1 %v4758_v18  ;;  %v4803_v18 = vld [vmem:[%s5907_s9 + $0xc0] sm:$0xff]  }
 0xa29   : > { %2929 = vmatpush1.bf16.msra.mxu0 %v4759_v21  ;;  %v2693_v21 = vld [vmem:[%s5946_s12] sm:$0xf]  ;;  %s6612_s12 = scalar_lea.vmem [#allocation17], %s5884_s30  ;;  %s6613_s30 = sld [smem:[#allocation41_spill]] }
 0xa2a   : > { %2886 = vmatpush1.bf16.msra.mxu1 %v4756_v20  ;;  %2930 = vmatprep.subr.bf16.mxu0 %v4767_v23  ;;  %v4805_v20 = vld [vmem:[%s5907_s9 + $0x80] sm:$0xff]   ;;  %v2698_v23 = vrot.slane %v2693_v21, %v1359_v26 }
 0xa2b   : > { %2887 = vmatprep.subr.bf16.mxu1 %v4764_v22  ;;  %v2709_v22 = vsub.s32 3, %v6020_v24 }
 0xa2d   : > { %2931 = vmatpush1.bf16.msra.mxu0 %v4765_v29 }
 0xa2e   : > { %2888 = vmatpush1.bf16.msra.mxu1 %v4762_v27  ;;  %2932 = vmatprep.subr.bf16.mxu0 %v4773_v38  ;;  %v2706_v27 = vrot.slane %v2693_v21, %v1367_v28  ;;  %v2702_v38 = vrot.slane %v2693_v21, %v1363_v25 }
 0xa2f   : > { %2889 = vmatprep.subr.bf16.mxu1 %v4770_v30  ;;  %p4215_p4 = scmp.ne.s32.totalorder %s6613_s30, 1 }
 0xa31   : > { %2933 = vmatpush1.bf16.msra.mxu0 %v4771_v32 }
 0xa32   : > { %2890 = vmatpush1.bf16.msra.mxu1 %v4768_v31  ;;  %4309 = vmatprep.subr.bf16.mxu0 %v4775_v61  ;;  %v2710_v31 = vrot.slane %v2693_v21, %v2709_v22 }
 0xad4   : > { %v2611_v45 = vpop.f32.mrf.mxu0 }
 0xad5   : > { %v2612_v46 = vadd.f32 %v4139_v44, %v2611_v45 }
 0xad6   : > { %v4474_v47 = vpop.f32.mrf.mxu0 }
 0xad7   : > { %v6214_v49 = vadd.f32 %v4878_v36, %v2612_v46  ;;  %v4149_v47 = vld [vmem:[%s6611_s5] ss:$0 sm:$0xff] }
 0xad8   : > { %v2614_v50 = vpop.f32.mrf.mxu0 }
 0xad9   : > { %v2615_v51 = vadd.f32 %v4139_v44, %v2614_v50  ;;  %2622 = vadd.xlane.f32.xlu1 %v6214_v49 }
 0xada   : > { %v4475_v52 = vpop.f32.mrf.mxu0 }
 0xadb   : > { %v6217_v55 = vadd.f32 %v4879_v54, %v2615_v51  ;;  %v4774_v54 = vld [vmem:[%s5907_s9 + $0x78] sm:$0xff]  }
 0xadc   : > { %4287 = vmatprep.subr.bf16.mxu1 %v4774_v54 }
 0xadd   : > { %2624 = vadd.xlane.f32.xlu0 %v6217_v55 }
 0xb62   : > { %v2623_v59 = vpop.xlane.xlu1 %2622 }
 0xb63   : > { %v2626_v60 = vmul.f32 0.0078125, %v2623_v59  ;;  %v4779_v59 = vld [vmem:[%s5907_s9 + $0xf0] sm:$0xff]  }
 0xb65   : > { %v6225_v62 = vsub.f32 %v6214_v49, %v2626_v60  ;;  %v4780_v60 = vld [vmem:[%s5907_s9 + $0x30] sm:$0xff]  }
 0xb66   : > { %v2625_v63 = vpop.xlane.xlu0 %2624 }
 0xb67   : > { %v2627_v0 = vmul.f32 0.0078125, %v2625_v63  ;;  %v2630_v48 = vmul.f32 %v6225_v62, %v6225_v62  ;;  %v4782_v63 = vld [vmem:[%s5907_s9 + $0x68] sm:$0xff]  }
 0xb69   : > { %v6230_v1 = vsub.f32 %v6217_v55, %v2627_v0  ;;  %2632 = vadd.xlane.f32.xlu0 %v2630_v48  ;;  %v4783_v0 = vld [vmem:[%s5907_s9 + $0xe8] sm:$0xff]  }
 0xb6a   : > { %v4784_v48 = vld [vmem:[%s5907_s9 + $0x28] sm:$0xff]  }
 0xb6b   : > { %v2631_v2 = vmul.f32 %v6230_v1, %v6230_v1 }
 0xb6d   : > { %2634 = vadd.xlane.f32.xlu0 %v2631_v2  ;;  %v4786_v2 = vld [vmem:[%s5907_s9 + $0x60] sm:$0xff]  }
 0xbf2   : > { %v2633_v33 = vpop.xlane.xlu0 %2632 }
 0xbf3   : > { %v2636_v34 = vmul.f32 0.0078125, %v2633_v33 }
 0xbf5   : > { %v2638_v37 = vadd.f32 1e-06, %v2636_v34 }
 0xbf6   : > { %v2635_v53 = vpop.xlane.xlu0 %2634 }
 0xbf7   : > { %4842 = vrsqrt.f32 %v2638_v37  ;;  %v2637_v39 = vmul.f32 0.0078125, %v2635_v53 }
 0xbf9   : > { %v2639_v40 = vadd.f32 1e-06, %v2637_v39 }
 0xbfb   : > { %4844 = vrsqrt.f32 %v2639_v40 }
 0xc04   : > { %v4843_v35 = vpop.eup %4842 }
 0xc05   : > { %v2642_v41 = vmul.f32 %v4843_v35, %v6225_v62  ;;  %v4781_v62 = vld [vmem:[%s5907_s9 + $0xb0] sm:$0xff]  }
 0xc07   : > { %v2650_v46 = vmul.f32 %v4148_v42, %v2642_v41 }
 0xc08   : > { %v4845_v44 = vpop.eup %4844 }
 0xc09   : > { %v2643_v45 = vmul.f32 %v4845_v44, %v6230_v1  ;;  %v2658_v50 = vadd.f32 %v4149_v47, %v2650_v46  ;;  %v4785_v1 = vld [vmem:[%s5907_s9 + $0xa8] sm:$0xff]  }
 0xc0b   : > { %v2651_v36 = vmul.f32 %v4148_v42, %v2643_v45 }
 0xc0d   : > { %v2659_v51 = vadd.f32 %v4149_v47, %v2651_v36 }
 0xc0f   : > { %v2660_v52 = vpack.c.bf16 %v2659_v51, %v2658_v50 }
 0xc11   : > { %2908 = vmatmul.mubr.bf16.vlgmr.msra.gmra.mxu1 %v2660_v52  ;;  %2951 = vmatmul.mubr.bf16.vlgmr.msra.gmra.mxu0 %v2660_v52 }
 0xc12   : > { %4288 = vmatpush3.bf16.msra.mxu1 %v4776_v56  ;;  %4310 = vmatpush3.bf16.msra.mxu0 %v4777_v57 }
 0xc13   : > { %4289 = vmatprep.subr.bf16.mxu1 %v4778_v58  ;;  %4311 = vmatprep.subr.bf16.mxu0 %v4779_v59 }
 0xc16   : > { %4290 = vmatpush3.bf16.msra.mxu1 %v4780_v60  ;;  %4312 = vmatpush3.bf16.msra.mxu0 %v4781_v62 }
 0xc17   : > { %4291 = vmatprep.subr.bf16.mxu1 %v4782_v63  ;;  %4313 = vmatprep.subr.bf16.mxu0 %v4783_v0 }
 0xc1a   : > { %4292 = vmatpush3.bf16.msra.mxu1 %v4784_v48  ;;  %4314 = vmatpush3.bf16.msra.mxu0 %v4785_v1 }
 0xc1b   : > { %4293 = vmatprep.subr.bf16.mxu1 %v4786_v2  ;;  %4315 = vmatprep.subr.bf16.mxu0 %v4787_v3 }
 0xc1e   : > { %4294 = vmatpush3.bf16.msra.mxu1 %v4788_v4  ;;  %4316 = vmatpush3.bf16.msra.mxu0 %v4789_v5 }
 0xc1f   : > { %4295 = vmatprep.subr.bf16.mxu1 %v4790_v6  ;;  %4317 = vmatprep.subr.bf16.mxu0 %v4791_v7 }
 0xc22   : > { %4296 = vmatpush3.bf16.msra.mxu1 %v4792_v43  ;;  %4318 = vmatpush3.bf16.msra.mxu0 %v4793_v8 }
 0xc23   : > { %4297 = vmatprep.subr.bf16.mxu1 %v4794_v9  ;;  %4319 = vmatprep.subr.bf16.mxu0 %v4795_v10 }
 0xc26   : > { %4298 = vmatpush3.bf16.msra.mxu1 %v4796_v11  ;;  %4320 = vmatpush3.bf16.msra.mxu0 %v4797_v12 }
 0xc27   : > { %4299 = vmatprep.subr.bf16.mxu1 %v4798_v13  ;;  %4321 = vmatprep.subr.bf16.mxu0 %v4799_v14 }
 0xc2a   : > { %4300 = vmatpush3.bf16.msra.mxu1 %v4800_v15  ;;  %4322 = vmatpush3.bf16.msra.mxu0 %v4801_v16 }
 0xc2b   : > { %4301 = vmatprep.subr.bf16.mxu1 %v4802_v17  ;;  %4323 = vmatprep.subr.bf16.mxu0 %v4803_v18 }
 0xc2e   : > { %4302 = vmatpush3.bf16.msra.mxu1 %v4804_v19  ;;  %4324 = vmatpush3.bf16.msra.mxu0 %v4805_v20 }
 0xcd1   : > { %v2909_v29 = vpop.f32.mrf.mxu1  ;;  %v2952_v30 = vpop.f32.mrf.mxu0 }
 0xcd2   : > { %v6308_v32 = vadd.f32 %v2909_v29, %v2698_v23  ;;  %v6310_v33 = vadd.f32 %v2952_v30, %v2706_v27 }
 0xcd3   : > { %v2911_v34 = vpop.f32.mrf.mxu1  ;;  %v2954_v37 = vpop.f32.mrf.mxu0 }
 0xcd4   : > { %v6313_v53 = vmul.f32 0.70710677, %v6308_v32  ;;  %v6316_v26 = vmul.f32 0.70710677, %v6310_v33  ;;  %v6318_v39 = vadd.f32 %v2911_v34, %v2702_v38  ;;  %v6320_v28 = vadd.f32 %v2954_v37, %v2710_v31 }
 0xcd5   : > { %v2913_v44 = vpop.f32.mrf.mxu1  ;;  %v2956_v54 = vpop.f32.mrf.mxu0 }
 0xcd6   : > { %v2977_v24 = vand.u32 2147483647, %v6313_v53  ;;  %v2979_v25 = vand.u32 2147483647, %v6316_v26  ;;  %v6325_v40 = vmul.f32 0.70710677, %v6318_v39  ;;  %v6332_v52 = vadd.f32 %v2913_v44, %v2698_v23 }
 0xcd7   : > { %v6328_v35 = vmul.f32 0.70710677, %v6320_v28  ;;  %v2915_v61 = vpop.f32.mrf.mxu1  ;;  %v6337_v59 = vadd.f32 %v2956_v54, %v2706_v27  ;;  %v2958_v63 = vpop.f32.mrf.mxu0  ;;  %vm3153_vm10 = vcmp.ge.f32.partialorder %v6313_v53, 0.0  ;;  %vm3155_vm0 = vcmp.ge.f32.partialorder %v6316_v26, 0.0 }
 0xcd8   : > { %v2985_v41 = vmul.f32 0.3275911, %v2977_v24  ;;  %v2987_v42 = vmul.f32 0.3275911, %v2979_v25  ;;  %v2978_v45 = vand.u32 2147483647, %v6325_v40  ;;  %v6339_v60 = vadd.f32 %v2915_v61, %v2702_v38 }
 0xcd9   : > { %v2980_v46 = vand.u32 2147483647, %v6328_v35  ;;  %v6335_v58 = vmul.f32 0.70710677, %v6332_v52  ;;  %v6343_v0 = vmul.f32 0.70710677, %v6337_v59  ;;  %v6349_v4 = vadd.f32 %v2958_v63, %v2710_v31 }
 0xcda   : > { %v2993_v47 = vadd.f32 1.0, %v2985_v41  ;;  %v2995_v36 = vadd.f32 1.0, %v2987_v42  ;;  %v2986_v50 = vmul.f32 0.3275911, %v2978_v45  ;;  %v6346_v1 = vmul.f32 0.70710677, %v6339_v60 }
 0xcdb   : > { %v2988_v51 = vmul.f32 0.3275911, %v2980_v46  ;;  %v2981_v62 = vand.u32 2147483647, %v6335_v58  ;;  %v3105_v2 = vsub.f32 0.0, %v2977_v24  ;;  %v3107_v5 = vsub.f32 0.0, %v2979_v25 }
 0xcdc   : > { %4846 = vrcp.f32 %v2993_v47  ;;  %v2994_v56 = vadd.f32 1.0, %v2986_v50  ;;  %v2983_v3 = vand.u32 2147483647, %v6343_v0  ;;  %v2982_v7 = vand.u32 2147483647, %v6346_v1 }
 0xcdd   : > { %4848 = vrcp.f32 %v2995_v36  ;;  %v2996_v57 = vadd.f32 1.0, %v2988_v51  ;;  %v2989_v48 = vmul.f32 0.3275911, %v2981_v62  ;;  %v6353_v8 = vmul.f32 0.70710677, %v6349_v4 }
 0xcde   : > { %4850 = vrcp.f32 %v2994_v56  ;;  %v2991_v43 = vmul.f32 0.3275911, %v2983_v3  ;;  %v2990_v9 = vmul.f32 0.3275911, %v2982_v7  ;;  %v3113_v10 = vmul.f32 %v3105_v2, %v2977_v24 }
 0xcdf   : > { %4852 = vrcp.f32 %v2996_v57  ;;  %v2997_v6 = vadd.f32 1.0, %v2989_v48  ;;  %v3106_v11 = vsub.f32 0.0, %v2978_v45  ;;  %v6356_v13 = vand.u32 2147483647, %v6353_v8 }
 0xce0   : > { %v2999_v12 = vadd.f32 1.0, %v2991_v43  ;;  %v3115_v14 = vmul.f32 %v3107_v5, %v2979_v25  ;;  %v2998_v15 = vadd.f32 1.0, %v2990_v9  ;;  %v3108_v20 = vsub.f32 0.0, %v2980_v46 }
 0xce1   : > { %4854 = vrcp.f32 %v2997_v6  ;;  %v2992_v17 = vmul.f32 0.3275911, %v6356_v13  ;;  %v3121_v21 = vmul.f32 1.442695, %v3113_v10  ;;  %v3114_v23 = vmul.f32 %v3106_v11, %v2978_v45 }
 0xce2   : > { %4856 = vrcp.f32 %v2999_v12  ;;  %v3125_v30 = vmul.f32 1.442695, %v3115_v14  ;;  %v3109_v34 = vsub.f32 0.0, %v2981_v62  ;;  %v3111_v37 = vsub.f32 0.0, %v2983_v3 }
 0xce3   : > { %4858 = vrcp.f32 %v2998_v15  ;;  %v6359_v27 = vadd.f32 1.0, %v2992_v17  ;;  %v3116_v41 = vmul.f32 %v3108_v20, %v2980_v46  ;;  %v3110_v63 = vsub.f32 0.0, %v2982_v7 }
 0xce4   : > { %v3117_v54 = vmul.f32 %v3109_v34, %v2981_v62  ;;  %v3119_v61 = vmul.f32 %v3111_v37, %v2983_v3  ;;  %vm3154_vm11 = vcmp.ge.f32.partialorder %v6325_v40, 0.0  ;;  %vm3157_vm12 = vcmp.ge.f32.partialorder %v6335_v58, 0.0 }
 0xce5   : > { %4860 = vrcp.f32 %v6359_v27  ;;  %v3127_v46 = vmul.f32 1.442695, %v3116_v41  ;;  %vm3158_vm13 = vcmp.ge.f32.partialorder %v6346_v1, 0.0  ;;  %vm3159_vm14 = vcmp.ge.f32.partialorder %v6343_v0, 0.0 }
 0xce6   : > { %4862 = vpow2.f32 %v3121_v21  ;;  %v3129_v62 = vmul.f32 1.442695, %v3117_v54  ;;  %v3133_v3 = vmul.f32 1.442695, %v3119_v61  ;;  %vm3156_vm15 = vcmp.ge.f32.partialorder %v6328_v35, 0.0 }
 0xce7   : > { %4864 = vpow2.f32 %v3125_v30  ;;  %v3112_v30 = vsub.f32 0.0, %v6356_v13  ;;  %vm3160_vm1 = vcmp.ge.f32.partialorder %v6353_v8, 0.0  ;;  %v2964_v26 = vmul.f32 0.5, %v6320_v28  ;;  %v4182_v28 = vld [vmem:[%s6612_s12] ss:$0 sm:$0xff] }
 0xce9   : > { %v4847_v16 = vpop.eup %4846 }
 0xcea   : > { %v4849_v18 = vpop.eup %4848  ;;  %v3009_v19 = vmul.f32 %v4847_v16, %v2993_v47  ;;  %v3123_v47 = vmul.f32 1.442695, %v3114_v23 }
 0xceb   : > { %v3011_v22 = vmul.f32 %v4849_v18, %v2995_v36  ;;  %v4851_v38 = vpop.eup %4850 }
 0xcec   : > { %v3017_v29 = vsub.f32 2.0, %v3009_v19  ;;  %v3010_v25 = vmul.f32 %v4851_v38, %v2994_v56  ;;  %v4853_v42 = vpop.eup %4852  ;;  %4866 = vpow2.f32 %v3123_v47 }
 0xced   : > { %v3019_v31 = vsub.f32 2.0, %v3011_v22  ;;  %v3012_v50 = vmul.f32 %v4853_v42, %v2996_v57  ;;  %4868 = vpow2.f32 %v3127_v46 }
 0xcee   : > { %v6362_v24 = vmul.f32 %v4847_v16, %v3017_v29  ;;  %v3018_v36 = vsub.f32 2.0, %v3010_v25  ;;  %v4855_v5 = vpop.eup %4854  ;;  %v3118_v16 = vmul.f32 %v3110_v63, %v2982_v7  ;;  %4870 = vpow2.f32 %v3129_v62 }
 0xcef   : > { %v6364_v44 = vmul.f32 %v4849_v18, %v3019_v31  ;;  %v3020_v56 = vsub.f32 2.0, %v3012_v50  ;;  %v3013_v57 = vmul.f32 %v4855_v5, %v2997_v6  ;;  %v4857_v17 = vpop.eup %4856  ;;  %4872 = vpow2.f32 %v3133_v3 }
 0xcf0   : > { %v3033_v45 = vmul.f32 1.0614054, %v6362_v24  ;;  %v6368_v2 = vmul.f32 %v4851_v38, %v3018_v36  ;;  %v4859_v21 = vpop.eup %4858  ;;  %v3015_v29 = vmul.f32 %v4857_v17, %v2999_v12  ;;  %v3131_v41 = vmul.f32 1.442695, %v3118_v16 }
 0xcf1   : > { %v3035_v51 = vmul.f32 1.0614054, %v6364_v44  ;;  %v6372_v11 = vmul.f32 %v4853_v42, %v3020_v56  ;;  %v3021_v23 = vsub.f32 2.0, %v3013_v57  ;;  %v3014_v34 = vmul.f32 %v4859_v21, %v2998_v15 }
 0xcf2   : > { %v3041_v48 = vadd.f32 -1.4531521, %v3033_v45  ;;  %v3034_v10 = vmul.f32 1.0614054, %v6368_v2  ;;  %v3023_v25 = vsub.f32 2.0, %v3015_v29  ;;  %v4861_v42 = vpop.eup %4860  ;;  %4874 = vpow2.f32 %v3131_v41 }
 0xcf3   : > { %v3043_v43 = vadd.f32 -1.4531521, %v3035_v51  ;;  %v3036_v20 = vmul.f32 1.0614054, %v6372_v11  ;;  %v6380_v37 = vmul.f32 %v4855_v5, %v3021_v23  ;;  %v3022_v12 = vsub.f32 2.0, %v3014_v34  ;;  %v4863_v15 = vpop.eup %4862 }
 0xcf4   : > { %v3049_v9 = vmul.f32 %v3041_v48, %v6362_v24  ;;  %v3042_v19 = vadd.f32 -1.4531521, %v3034_v10  ;;  %v6384_v54 = vmul.f32 %v4857_v17, %v3023_v25  ;;  %v3016_v61 = vmul.f32 %v4861_v42, %v6359_v27  ;;  %v4865_v5 = vpop.eup %4864 }
 0xcf5   : > { %v3051_v14 = vmul.f32 %v3043_v43, %v6364_v44  ;;  %v3044_v31 = vadd.f32 -1.4531521, %v3036_v20  ;;  %v3037_v51 = vmul.f32 1.0614054, %v6380_v37  ;;  %v6389_v46 = vmul.f32 %v4859_v21, %v3022_v12 }
 0xcf6   : > { %v3057_v18 = vadd.f32 1.4214138, %v3049_v9  ;;  %v3050_v6 = vmul.f32 %v3042_v19, %v6368_v2  ;;  %v3039_v9 = vmul.f32 1.0614054, %v6384_v54  ;;  %v3024_v10 = vsub.f32 2.0, %v3016_v61 }
 0xcf7   : > { %v3059_v22 = vadd.f32 1.4214138, %v3051_v14  ;;  %v3052_v36 = vmul.f32 %v3044_v31, %v6372_v11  ;;  %v3045_v43 = vadd.f32 -1.4531521, %v3037_v51  ;;  %v3038_v27 = vmul.f32 1.0614054, %v6389_v46 }
 0xcf8   : > { %v3065_v38 = vmul.f32 %v3057_v18, %v6362_v24  ;;  %v3058_v45 = vadd.f32 1.4214138, %v3050_v6  ;;  %v3047_v18 = vadd.f32 -1.4531521, %v3039_v9  ;;  %v6395_v19 = vmul.f32 %v4861_v42, %v3024_v10 }
 0xcf9   : > { %v3067_v7 = vmul.f32 %v3059_v22, %v6364_v44  ;;  %v3060_v56 = vadd.f32 1.4214138, %v3052_v36  ;;  %v3053_v17 = vmul.f32 %v3045_v43, %v6380_v37  ;;  %v4867_v20 = vpop.eup %4866  ;;  %v3046_v62 = vadd.f32 -1.4531521, %v3038_v27 }
 0xcfa   : > { %v3073_v47 = vadd.f32 -0.28449672, %v3065_v38  ;;  %v3066_v48 = vmul.f32 %v3058_v45, %v6368_v2  ;;  %v3120_v23 = vmul.f32 %v3112_v30, %v6356_v13  ;;  %v3055_v3 = vmul.f32 %v3047_v18, %v6384_v54  ;;  %v4869_v25 = vpop.eup %4868 }
 0xcfb   : > { %v3075_v50 = vadd.f32 -0.28449672, %v3067_v7  ;;  %v3068_v14 = vmul.f32 %v3060_v56, %v6372_v11  ;;  %v3061_v38 = vadd.f32 1.4214138, %v3053_v17  ;;  %v3040_v6 = vmul.f32 1.0614054, %v6395_v19  ;;  %v4871_v17 = vpop.eup %4870 }
 0xcfc   : > { %v3081_v63 = vmul.f32 %v3073_v47, %v6362_v24  ;;  %v3074_v57 = vadd.f32 -0.28449672, %v3066_v48  ;;  %v3054_v7 = vmul.f32 %v3046_v62, %v6389_v46  ;;  %v3063_v45 = vadd.f32 1.4214138, %v3055_v3 }
 0xcfd   : > { %v3076_v22 = vadd.f32 -0.28449672, %v3068_v14  ;;  %v3083_v29 = vmul.f32 %v3075_v50, %v6364_v44  ;;  %v3069_v47 = vmul.f32 %v3061_v38, %v6380_v37  ;;  %v3048_v13 = vadd.f32 -1.4531521, %v3040_v6 }
 0xcfe   : > { %v3089_v16 = vadd.f32 0.2548296, %v3081_v63  ;;  %v3082_v21 = vmul.f32 %v3074_v57, %v6368_v2  ;;  %v3062_v12 = vadd.f32 1.4214138, %v3054_v7  ;;  %v3135_v50 = vmul.f32 1.442695, %v3120_v23 }
 0xcff   : > { %v3084_v34 = vmul.f32 %v3076_v22, %v6372_v11  ;;  %v3091_v51 = vadd.f32 0.2548296, %v3083_v29  ;;  %v3077_v61 = vadd.f32 -0.28449672, %v3069_v47  ;;  %v3071_v63 = vmul.f32 %v3063_v45, %v6384_v54 }
 0xd00   : > { %v3090_v31 = vadd.f32 0.2548296, %v3082_v21  ;;  %v3097_v42 = vmul.f32 %v3089_v16, %v6362_v24  ;;  %v3056_v48 = vmul.f32 %v3048_v13, %v6395_v19  ;;  %v3070_v41 = vmul.f32 %v3062_v12, %v6389_v46  ;;  %v4873_v21 = vpop.eup %4872 }
 0xd01   : > { %v3092_v36 = vadd.f32 0.2548296, %v3084_v34  ;;  %v3085_v24 = vmul.f32 %v3077_v61, %v6380_v37  ;;  %v3079_v9 = vadd.f32 -0.28449672, %v3071_v63  ;;  %4876 = vpow2.f32 %v3135_v50  ;;  %v4875_v7 = vpop.eup %4874 }
 0xd02   : > { %v3098_v30 = vmul.f32 %v3090_v31, %v6368_v2  ;;  %v3137_v43 = vmul.f32 %v4863_v15, %v3097_v42  ;;  %v3064_v10 = vadd.f32 1.4214138, %v3056_v48  ;;  %v3078_v2 = vadd.f32 -0.28449672, %v3070_v41 }
 0xd03   : > { %v3100_v57 = vmul.f32 %v3092_v36, %v6372_v11  ;;  %v3099_v14 = vmul.f32 %v3091_v51, %v6364_v44  ;;  %v3093_v27 = vadd.f32 0.2548296, %v3085_v24  ;;  %v3087_v16 = vmul.f32 %v3079_v9, %v6384_v54 }
 0xd04   : > { %v3138_v56 = vmul.f32 %v4867_v20, %v3098_v30  ;;  %v3086_v20 = vmul.f32 %v3078_v2, %v6389_v46  ;;  %v3145_v22 = vsub.f32 1.0, %v3137_v43  ;;  %v3072_v23 = vmul.f32 %v3064_v10, %v6395_v19 }
 0xd05   : > { %v3101_v15 = vmul.f32 %v3093_v27, %v6380_v37  ;;  %v3095_v62 = vadd.f32 0.2548296, %v3087_v16  ;;  %v3140_v29 = vmul.f32 %v4869_v25, %v3100_v57  ;;  %v3139_v38 = vmul.f32 %v4865_v5, %v3099_v14 }
 0xd06   : > { %v3146_v18 = vsub.f32 1.0, %v3138_v56  ;;  %v3094_v11 = vadd.f32 0.2548296, %v3086_v20  ;;  %v3080_v6 = vadd.f32 -0.28449672, %v3072_v23  ;;  %v2961_v42 = vmul.f32 0.5, %v6308_v32 }
 0xd07   : > { %v3141_v3 = vmul.f32 %v4871_v17, %v3101_v15  ;;  %v3103_v44 = vmul.f32 %v3095_v62, %v6384_v54  ;;  %v3161_v47 = vsub.f32 0.0, %v3145_v22  ;;  %v3148_v37 = vsub.f32 1.0, %v3140_v29 }
 0xd08   : > { %v3162_v31 = vsub.f32 0.0, %v3146_v18  ;;  %v3102_v34 = vmul.f32 %v3094_v11, %v6389_v46  ;;  %v3088_v25 = vmul.f32 %v3080_v6, %v6395_v19  ;;  %v3147_v5 = vsub.f32 1.0, %v3139_v38 }
 0xd09   : > { %v3149_v45 = vsub.f32 1.0, %v3141_v3  ;;  %v3143_v13 = vmul.f32 %v4873_v21, %v3103_v44  ;;  %v3169_v32 = vsel %vm3153_vm10, %v3145_v22, %v3161_v47  ;;  %v2962_v51 = vmul.f32 0.5, %v6318_v39 }
 0xd0a   : > { %v3142_v30 = vmul.f32 %v4875_v7, %v3102_v34  ;;  %v3170_v12 = vsel %vm3154_vm11, %v3146_v18, %v3162_v31  ;;  %v3096_v50 = vadd.f32 0.2548296, %v3088_v25  ;;  %v3164_v53 = vsub.f32 0.0, %v3148_v37 }
 0xd0b   : > { %v3165_v54 = vsub.f32 0.0, %v3149_v45  ;;  %v3151_v36 = vsub.f32 1.0, %v3143_v13  ;;  %v3163_v24 = vsub.f32 0.0, %v3147_v5  ;;  %v3178_v40 = vadd.f32 1.0, %v3170_v12 }
 0xd0c   : > { %v3150_v46 = vsub.f32 1.0, %v3142_v30  ;;  %v3104_v41 = vmul.f32 %v3096_v50, %v6395_v19  ;;  %v2965_v9 = vmul.f32 0.5, %v6332_v52  ;;  %v3177_v58 = vadd.f32 1.0, %v3169_v32 }
 0xd0d   : > { %v3173_v61 = vsel %vm3157_vm12, %v3149_v45, %v3165_v54  ;;  %v3167_v63 = vsub.f32 0.0, %v3151_v36  ;;  %v2966_v2 = vmul.f32 0.5, %v6339_v60  ;;  %v3172_v19 = vsel %vm3156_vm15, %v3148_v37, %v3164_v53 }
 0xd0e   : > { %v3181_v48 = vadd.f32 1.0, %v3173_v61  ;;  %v3166_v56 = vsub.f32 0.0, %v3150_v46  ;;  %v4877_v43 = vpop.eup %4876  ;;  %v3171_v17 = vsel %vm3155_vm0, %v3147_v5, %v3163_v24  ;;  %v3186_v52 = vmul.f32 %v3178_v40, %v2962_v51 }
 0xd0f   : > { %v3144_v57 = vmul.f32 %v4877_v43, %v3104_v41  ;;  %v3175_v39 = vsel %vm3159_vm14, %v3151_v36, %v3167_v63  ;;  %v3185_v1 = vmul.f32 %v3177_v58, %v2961_v42  ;;  %v3180_v0 = vadd.f32 1.0, %v3172_v19 }
 0xd10   : > { %v3174_v10 = vsel %vm3158_vm13, %v3150_v46, %v3166_v56  ;;  %v3189_v27 = vmul.f32 %v3181_v48, %v2965_v9  ;;  %v3183_v20 = vadd.f32 1.0, %v3175_v39  ;;  %v3179_v35 = vadd.f32 1.0, %v3171_v17 }
 0xd11   : > { %v3182_v14 = vadd.f32 1.0, %v3174_v10  ;;  %v3152_v16 = vsub.f32 1.0, %v3144_v57  ;;  %v2967_v60 = vmul.f32 0.5, %v6337_v59  ;;  %v2968_v23 = vmul.f32 0.5, %v6349_v4 }
 0xd12   : > { %v3193_v15 = vpack.c.bf16 %v3189_v27, %v3185_v1  ;;  %v2963_v11 = vmul.f32 0.5, %v6310_v33  ;;  %v3188_v3 = vmul.f32 %v3180_v0, %v2964_v26 }
 0xd13   : > { %v3190_v18 = vmul.f32 %v3182_v14, %v2966_v2  ;;  %v3168_v21 = vsub.f32 0.0, %v3152_v16  ;;  %v3191_v38 = vmul.f32 %v3183_v20, %v2967_v60 }
 0xd14   : > { %v3187_v8 = vmul.f32 %v3179_v35, %v2963_v11 }
 0xd15   : > { %v3194_v22 = vpack.c.bf16 %v3190_v18, %v3186_v52  ;;  %v3176_v62 = vsel %vm3160_vm1, %v3152_v16, %v3168_v21 }
 0xd16   : > { %v3184_v29 = vadd.f32 1.0, %v3176_v62  ;;  %v3195_v31 = vpack.c.bf16 %v3191_v38, %v3187_v8 }
 0xd17   : > { %3492 = vmatprep.mubr.bf16.mxu1 %v3194_v22 }
 0xd18   : > { %3493 = vmatmul.mubr.bf16.vlgmr.msra.gmra.mxu1 %v3193_v15  ;;  %v3192_v44 = vmul.f32 %v3184_v29, %v2968_v23 }
 0xd1a   : > { %v3196_v6 = vpack.c.bf16 %v3192_v44, %v3188_v3 }
 0xd1c   : > { %3533 = vmatprep.mubr.bf16.mxu0 %v3196_v6 }
 0xd1d   : > { %3534 = vmatmul.mubr.bf16.vlgmr.msra.gmra.mxu0 %v3195_v31 }
 0xdd8   : > { %v4303_v59 = vpop.f32.mrf.mxu1 }
 0xdda   : > { %v4304_v34 = vpop.f32.mrf.mxu1 }
 0xddb   : > { %v4305_v7 = vadd.f32 %v4304_v34, %v4303_v59 }
 0xddc   : > { %v4306_v4 = vpop.f32.mrf.mxu1 }
 0xddd   : > { %v4325_v42 = vpop.f32.mrf.mxu0  ;;  %v3495_v45 = vadd.f32 %v4305_v7, %v4182_v28 }
 0xdde   : > { %v4307_v47 = vpop.f32.mrf.mxu1 }
 0xddf   : > { %v4308_v13 = vadd.f32 %v4307_v47, %v4306_v4  ;;  %v4326_v33 = vpop.f32.mrf.mxu0 }
 0xde0   : > { %v4327_v37 = vadd.f32 %v4326_v33, %v4325_v42 }
 0xde1   : > { %v4328_v30 = vpop.f32.mrf.mxu0  ;;  %v3498_v5 = vadd.f32 %v4308_v13, %v4182_v28 }
 0xde2   : > { %v3536_v25 = vadd.f32 %v4327_v37, %v3495_v45 }
 0xde3   : > { %v4329_v54 = vpop.f32.mrf.mxu0 }
 0xde4   : > { %v3542_v36 = vadd.f32 %v3536_v25, %v6214_v49  ;;  %v4330_v12 = vadd.f32 %v4329_v54, %v4328_v30 }
 0xde6   : > { %3544 = vst [vmem:[#allocation2] sm:$0xff] %v3542_v36  ;;  %v3539_v46 = vadd.f32 %v4330_v12, %v3498_v5  ;;  %3549 = sbr.rel (%p4215_p4) target bundleno = 4131 (0x1023), region = 172 }
 0xde8   : > { %v3543_v50 = vadd.f32 %v3539_v46, %v6217_v55 }
 0xdea   : > { %3545 = vst [vmem:[#allocation2 + $0x8] sm:$0xff] %v3543_v50 }
 0xdeb   : > { %v3551_v32 = vrot.slane %v3543_v50, 7  ;;  %vm3553_vm2 = vcmask 1040384   ;;  %vm3557_vm3 = vcmask 1041408   ;;  %v4880_v41 = vld [vmem:[#allocation24 + $0x38] sm:$0xff]   ;;  %v5416_v55 = vmov 0.0   ;;  %v4881_v43 = vld [vmem:[#allocation24 + $0x30] sm:$0xff]  }
 0xdec   : > { %4476 = vmatprep.subr.bf16.mxu0 %v5416_v55  ;;  %vm5417_vm4 = vmmov 0   ;;  %v4882_v24 = vld [vmem:[#allocation24 + $0x28] sm:$0xff]   ;;  %v4883_v40 = vld [vmem:[#allocation24 + $0x20] sm:$0xff]   ;;  %v4884_v9 = vld [vmem:[#allocation24 + $0x18] sm:$0xff]  }
 0xded   : > { %v3554_v51 = vsel %vm3553_vm2, %v3542_v36, %v3551_v32  ;;  %4492 = vmatprep.mubr.msk.bf16.mxu0 %vm5417_vm4, %v5416_v55  ;;  %4477 = vmatpush3.bf16.msra.mxu0 %v4880_v41  ;;  %v4885_v58 = vld [vmem:[#allocation24 + $0x10] sm:$0xff]   ;;  %v4886_v10 = vld [vmem:[#allocation24 + $0x8] sm:$0xff]   ;;  %v4887_v57 = vld [vmem:[#allocation24] sm:$0xff]  }
 0xdee   : > { %v3558_v61 = vsel %vm3557_vm3, %v3554_v51, 0.0  ;;  %4478 = vmatprep.subr.bf16.mxu0 %v5416_v55  ;;  %v4216_v27 = vld [vmem:[#allocation18] ss:$0 sm:$0xff]  ;;  %v4217_v17 = vld [vmem:[#allocation20] ss:$0 sm:$0xff] }
 0xdef   : > { %3559 = vadd.xlane.f32.xlu0 %v3558_v61  ;;  %v4218_v34 = vld [vmem:[#allocation21] ss:$0 sm:$0xff]  ;;  %v4219_v28 = vld [vmem:[#allocation23] ss:$0 sm:$0xff] }
 0xdf1   : > { %4479 = vmatpush3.bf16.msra.mxu0 %v4881_v43 }
 0xdf2   : > { %4480 = vmatprep.subr.bf16.mxu0 %v5416_v55 }
 0xdf5   : > { %4481 = vmatpush3.bf16.msra.mxu0 %v4882_v24 }
 0xdf6   : > { %4482 = vmatprep.subr.bf16.mxu0 %v5416_v55 }
 0xdf9   : > { %4483 = vmatpush3.bf16.msra.mxu0 %v4883_v40 }
 0xdfa   : > { %4484 = vmatprep.subr.bf16.mxu0 %v5416_v55 }
 0xdfd   : > { %4485 = vmatpush3.bf16.msra.mxu0 %v4884_v9 }
 0xdfe   : > { %4486 = vmatprep.subr.bf16.mxu0 %v5416_v55 }
 0xe01   : > { %4487 = vmatpush3.bf16.msra.mxu0 %v4885_v58 }
 0xe02   : > { %4488 = vmatprep.subr.bf16.mxu0 %v5416_v55 }
 0xe05   : > { %4489 = vmatpush3.bf16.msra.mxu0 %v4886_v10 }
 0xe06   : > { %4490 = vmatprep.subr.bf16.mxu0 %v5416_v55 }
 0xe09   : > { %4491 = vmatpush3.bf16.msra.mxu0 %v4887_v57 }
 0xe78   : > { %v3560_v63 = vpop.xlane.xlu0 %3559 }
 0xe79   : > { %v3561_v53 = vmul.f32 0.0078125, %v3560_v63 }
 0xe7b   : > { %v3562_v48 = vsub.f32 %v3554_v51, %v3561_v53 }
 0xe7d   : > { %v3563_v49 = vmul.f32 %v3562_v48, %v3562_v48 }
 0xe7f   : > { %v3564_v56 = vsel %vm3557_vm3, %v3563_v49, 0.0 }
 0xe80   : > { %3565 = vadd.xlane.f32.xlu0 %v3564_v56 }
 0xf09   : > { %v3566_v39 = vpop.xlane.xlu0 %3565 }
 0xf0a   : > { %v3567_v2 = vmul.f32 0.0078125, %v3566_v39 }
 0xf0c   : > { %v3568_v14 = vadd.f32 1e-06, %v3567_v2 }
 0xf0e   : > { %4888 = vrsqrt.f32 %v3568_v14 }
 0xf1b   : > { %v4889_v19 = vpop.eup %4888 }
 0xf1c   : > { %v3570_v16 = vmul.f32 %v4889_v19, %v3562_v48 }
 0xf1e   : > { %v3577_v52 = vmul.f32 %v4216_v27, %v3570_v16 }
 0xf20   : > { %v3584_v18 = vadd.f32 %v4217_v17, %v3577_v52 }
 0xf22   : > { %3585 = vst [vmem:[#allocation27] sm:$0x3] %v3584_v18  ;;  %v3586_v1 = vsel %vm3557_vm3, %v3584_v18, 0.0 }
 0xf23   : > { %v3587_v20 = vrot.slane %v3586_v1, 4 }
 0xf25   : > { %v3588_v21 = vadd.f32 %v3587_v20, %v3586_v1 }
 0xf27   : > { %v3589_v0 = vrot.slane %v3588_v21, 2 }
 0xf29   : > { %v3590_v22 = vadd.f32 %v3589_v0, %v3588_v21 }
 0xf2b   : > { %v3591_v35 = vrot.slane %v3590_v22, 1 }
 0xf2d   : > { %v3592_v15 = vadd.f32 %v3591_v35, %v3590_v22 }
 0xf2f   : > { %v3594_v60 = vmul.f32 0.5, %v3592_v15 }
 0xf31   : > { %v3595_v62 = vsub.f32 %v3584_v18, %v3594_v60 }
 0xf33   : > { %v3596_v26 = vmul.f32 %v3595_v62, %v3595_v62 }
 0xf35   : > { %v3597_v23 = vsel %vm3557_vm3, %v3596_v26, 0.0 }
 0xf36   : > { %v3598_v29 = vrot.slane %v3597_v23, 4 }
 0xf38   : > { %v3599_v11 = vadd.f32 %v3598_v29, %v3597_v23 }
 0xf3a   : > { %v3600_v38 = vrot.slane %v3599_v11, 2 }
 0xf3c   : > { %v3601_v3 = vadd.f32 %v3600_v38, %v3599_v11 }
 0xf3e   : > { %v3602_v44 = vrot.slane %v3601_v3, 1 }
 0xf40   : > { %v3603_v8 = vadd.f32 %v3602_v44, %v3601_v3 }
 0xf42   : > { %v3604_v6 = vmul.f32 0.5, %v3603_v8 }
 0xf44   : > { %v3605_v31 = vadd.f32 1e-05, %v3604_v6 }
 0xf46   : > { %4890 = vrsqrt.f32 %v3605_v31 }
 0xf53   : > { %v4891_v59 = vpop.eup %4890 }
 0xf54   : > { %v3607_v7 = vmul.f32 %v4891_v59, %v3595_v62 }
 0xf56   : > { %v3615_v4 = vmul.f32 %v4218_v34, %v3607_v7 }
 0xf58   : > { %v3623_v42 = vadd.f32 %v4219_v28, %v3615_v4 }
 0xf5a   : > { %v3624_v47 = vpack.c.bf16 %v3623_v42, %v3623_v42 }
 0xf5c   : > { %4493 = vmatmul.mubr.bf16.vlgmr.msra.gmra.mxu0 %v3624_v47 }
0x101c   : > { %v3723_v45 = vpop.f32.mrf.mxu0 }
0x101d   : > { %3729 = vst [vmem:[#allocation26] sm:$0x3] %v3723_v45 }
0x101e   : > { %v4494_v13 = vpop.f32.mrf.mxu0 }
0x1020   : > { %v3726_v33 = vpop.f32.mrf.mxu0 }
0x1022   : > { %v4495_v37 = vpop.f32.mrf.mxu0 }
0x1023 PF: > { %s6614_s9 = sld [smem:[#allocation41_spill]]  ;;  %s5418_s24 = smov [#allocation26]  }
0x1024   : > { %s3737_s25 = sshll.u32 %s5418_s24, 4  ;;  %s5419_s11 = smov [#allocation27]   ;;  %s3738_s25 = int_to_ptr.vmem [resolvable:$true] %s3737_s25 }
0x1025   : > { %s3748_s4 = sshll.u32 %s5419_s11, 4  ;;  %s5272_s0 = scalar_lea.vmem %s3738_s25, 32  ;;  %s3749_s4 = int_to_ptr.vmem [resolvable:$true] %s3748_s4 }
0x1026   : > { %p5273_p5 = scmp.ne.s32.totalorder %s3738_s25, %s5272_s0  ;;  %p5279_p0 = scmp.lt.s32.totalorder %s3738_s25, %s3738_s25 }
0x1027   : > { %p5280_p1 = scmp.lt.s32.totalorder %s5272_s0, %s5272_s0 }
0x1029   : > { %p4603_p12 = scmp.eq.s32.totalorder %s6614_s9, 1  ;;  %p5281_p3 = por %p5280_p1, %p5279_p0 }
0x102b   : > { %p5274_p2 = pnand %p5273_p5, %p4603_p12 }
0x102d   : > { %p5275_p6 = pneg %p5274_p2 }
0x102f   : > { %p5282_p8 = pnand %p5281_p3, %p5275_p6 }
0x1031   : > { %5285 = shalt.err (!%p5282_p8)
}
0x1032   : > { %s6615_s27 = sld [smem:[#allocation62_spill]]  ;;  %s5296_s19 = scalar_lea.vmem %s3749_s4, 32 }
0x1033   : > { %p5297_p13 = scmp.ne.s32.totalorder %s3749_s4, %s5296_s19  ;;  %p5303_p10 = scmp.lt.s32.totalorder %s3749_s4, %s3749_s4 }
0x1034   : > { %p5304_p11 = scmp.lt.s32.totalorder %s5296_s19, %s5296_s19 }
0x1035   : > { %p5298_p9 = pnand %p5297_p13, %p4603_p12 }
0x1036   : > { %p5305_p4 = por %p5304_p11, %p5303_p10 }
0x1037   : > { %p5299_p7 = pneg %p5298_p9 }
0x1038   : > { %4539 = dma.vmem_to_hbm [thread:$0]  (%p4603_p12), %s3738_s25, 32, %s6615_s27, [#allocation5]  }
0x1039   : > { %p5306_p5 = pnand %p5305_p4, %p5299_p7 }
0x103b   : > { %5309 = shalt.err (!%p5306_p5)
}
0x103c   : > { %s6616_s13 = sld [smem:[#allocation63_spill]] }
0x1042   : > { %4541 = dma.vmem_to_hbm [thread:$0]  (%p4603_p12), %s3749_s4, 32, %s6616_s13, [#allocation28]  }
0x1043   : > { %5369 = dma.done.wait (%p4603_p12), [#allocation5], 32  }
0x1044   : > { %5371 = vsyncadd (%p4603_p12), [#allocation5], 4294967264 }
0x1045   : > { %5373 = dma.done.wait (%p4603_p12), [#allocation28], 32  }
0x1046   : > { %5375 = vsyncadd (%p4603_p12), [#allocation28], 4294967264 }
0x1047 PF: > { %s6617_s25 = sld [smem:[#allocation43_spill]] }
0x1048   : > { %s6618_s4 = sld [smem:[#allocation39_spill]] }
0x1049   : > { %s6619_s30 = sld [smem:[#allocation40_spill]] }
0x104a   : > { %s6620_s24 = sld [smem:[#allocation44_spill]] }
0x104d   : > { %p49_p2 = scmp.ge.s32.totalorder %s6617_s25, 4  }
0x104f   :  { %51 = sbr.rel (!%p49_p2) target bundleno = 35 (0x23), region = 281 }
0x1054   :  { %3765 = vsyncpa [#allocation4], 1 }
0x1055   :  { %3767 = vsyncpa [#allocation4 + $0x1], 1 }
0x1056   :  { %3768 = vsyncpa [#allocation7], 1 }
0x1057   :  { %3770 = vsyncpa [#allocation7 + $0x1], 1 }
0x1058   :  { %3771 = vsyncpa [#allocation10], 1 }
0x1059   :  { %3773 = vsyncpa [#allocation10 + $0x1], 1 }
0x105a   :  { %3774 = vsyncpa [#allocation13], 1 }
0x105b   :  { %3776 = vsyncpa [#allocation13 + $0x1], 1 }
0x105c   :  { %3777 = vsyncpa [#allocation16], 1 }
0x105d   :  { %3779 = vsyncpa [#allocation16 + $0x1], 1 }
0x105e   :  { %3780 = vsyncpa [#allocation19], 1 }
0x105f   :  { %3781 = vsyncpa [#allocation22], 1 }
0x1060   :  { %3782 = vsyncpa [#allocation25], 1 }
0x1061   :  { %3783 = vsyncpa [#allocation5], 1 }
0x1062   :  { %3785 = vsyncpa [#allocation5 + $0x1], 1 }
0x1063   :  { %3786 = vsyncpa [#allocation28], 1 }

</bundles_post_ra>
